<compile_context>
chip_gen: v6e
topology: v6e:2x2x1
jax: 0.10.0
libtpu: 0.0.40
codegen_flags: <defaults>
</compile_context>

<pallas_src>
import functools
import math

import jax
import jax.numpy as jnp
from jax.experimental import pallas as pl
from jax.experimental.pallas import tpu as pltpu


# ----------------------------- in-kernel math -------------------------------

def _layer_norm(v, gamma, beta, eps=1e-5):
    mu = jnp.mean(v, axis=-1, keepdims=True)
    var = jnp.mean(jnp.square(v - mu), axis=-1, keepdims=True)
    return (v - mu) * jax.lax.rsqrt(var + eps) * gamma + beta


def _mha_heads(q2d, k2d, v2d, mask_add, *, num_heads, cdt):
    """Multi-head attention for one batch element.

    q2d: (Sq, D) f32, k2d/v2d: (Skv, D) f32, mask_add: (Sq, Skv) additive f32
    mask or None. head_dim = D // num_heads is a multiple of 128, so every head
    slice and the final concat are lane-aligned (no masked loads / XLU shuffles).
    Returns (Sq, D) f32.
    """
    sq, d = q2d.shape
    dh = d // num_heads
    scale = 1.0 / math.sqrt(dh)

    ctx = []
    for h in range(num_heads):              # static, tiny (H=2) unrolled loop
        lo = h * dh
        qh = q2d[:, lo:lo + dh].astype(cdt)     # (Sq, dh)  lane-aligned slice
        kh = k2d[:, lo:lo + dh].astype(cdt)     # (Skv, dh)
        vh = v2d[:, lo:lo + dh].astype(cdt)     # (Skv, dh)

        # scores: contraction dim = dh (>=128) -> full-depth MXU pass, no
        # explicit transpose (contract last dim of both operands).
        s = jax.lax.dot_general(qh, kh, (((1,), (1,)), ((), ())),
                                preferred_element_type=jnp.float32) * scale
        if mask_add is not None:
            s = s + mask_add

        m = jnp.max(s, axis=-1, keepdims=True)
        p = jnp.exp(s - m)
        denom = jnp.sum(p, axis=-1, keepdims=True)
        attn = p * pl.reciprocal(denom, approx=True)   # EUP, not a VALU divide

        # context: output lane dim = dh (>=128) -> lane-dense result
        ctx.append(jnp.dot(attn.astype(cdt), vh,
                           preferred_element_type=jnp.float32))    # (Sq, dh)

    return jnp.concatenate(ctx, axis=1)                            # (Sq, D)


def decoder_layer_kernel(
    # activations
    x_ref, enc_ref,
    # self-attention (fused QKV) + norm1
    wqkv1, bqkv1, wo1, bo1, g1, be1,
    # cross-attention (fused KV) + norm2
    wq2, bq2, wkv2, bkv2, wo2, bo2, g2, be2,
    # feed-forward + norm3
    w1, b1, w2, b2, g3, be3,
    # output
    out_ref,
    *, num_heads,
):
    S = x_ref.shape[1]
    D = x_ref.shape[2]
    cdt = wqkv1.dtype            # MXU operand dtype (bf16)

    x = x_ref[0]                 # (S, D)  -- one batch element per grid step
    enc = enc_ref[0]             # (Se, D)
    x_f32 = x.astype(jnp.float32)

    # Causal (look-ahead) mask generated in-kernel: no sub-lane-width DMA.
    rows = jax.lax.broadcasted_iota(jnp.int32, (S, S), 0)
    cols = jax.lax.broadcasted_iota(jnp.int32, (S, S), 1)
    causal_add = jnp.where(rows >= cols, 0.0, -1e9).astype(jnp.float32)

    # ---- self attention (fused QKV) + add & norm (dropout == identity) -----
    qkv = jnp.dot(x.astype(cdt), wqkv1[...],
                  preferred_element_type=jnp.float32) + bqkv1[...]
    sa = _mha_heads(qkv[:, :D], qkv[:, D:2 * D], qkv[:, 2 * D:], causal_add,
                    num_heads=num_heads, cdt=cdt)
    sa = jnp.dot(sa.astype(cdt), wo1[...],
                 preferred_element_type=jnp.float32) + bo1[...]
    x1 = _layer_norm(x_f32 + sa, g1[...], be1[...])

    # ---- encoder-decoder attention (fused KV) + add & norm ------------------
    # padding_mask == None in this demo -> no additive mask applied.
    q2 = jnp.dot(x1.astype(cdt), wq2[...],
                 preferred_element_type=jnp.float32) + bq2[...]
    kv = jnp.dot(enc.astype(cdt), wkv2[...],
                 preferred_element_type=jnp.float32) + bkv2[...]
    ca = _mha_heads(q2, kv[:, :D], kv[:, D:], None,
                    num_heads=num_heads, cdt=cdt)
    ca = jnp.dot(ca.astype(cdt), wo2[...],
                 preferred_element_type=jnp.float32) + bo2[...]
    x2 = _layer_norm(x1 + ca, g2[...], be2[...])

    # ---- feed-forward + add & norm ------------------------------------------
    h = jnp.dot(x2.astype(cdt), w1[...],
                preferred_element_type=jnp.float32) + b1[...]
    h = jnp.maximum(h, 0.0).astype(cdt)        # keep (S, F) intermediate in bf16
    f = jnp.dot(h, w2[...],
                preferred_element_type=jnp.float32) + b2[...]
    x3 = _layer_norm(x2 + f, g3[...], be3[...])

    # lane-dense store (D is a multiple of 128)
    out_ref[...] = x3.reshape(1, S, D).astype(out_ref.dtype)


# ------------------------------- wrapper -------------------------------------

def decoder_layer(x, enc, params, num_heads):
    B, S, D = x.shape
    _, Se, _ = enc.shape
    p = params

    # Fuse projections once, outside the kernel (plain XLA concatenations).
    wqkv1 = jnp.concatenate([p["wq1"], p["wk1"], p["wv1"]], axis=1)   # (D, 3D) bf16
    bqkv1 = jnp.concatenate([p["bq1"], p["bk1"], p["bv1"]], axis=1)   # (1, 3D) f32
    wkv2 = jnp.concatenate([p["wk2"], p["wv2"]], axis=1)              # (D, 2D) bf16
    bkv2 = jnp.concatenate([p["bk2"], p["bv2"]], axis=1)              # (1, 2D) f32

    weights = (wqkv1, bqkv1, p["wo1"], p["bo1"], p["g1"], p["be1"],
               p["wq2"], p["bq2"], wkv2, bkv2, p["wo2"], p["bo2"], p["g2"], p["be2"],
               p["w1"], p["b1"], p["w2"], p["b2"], p["g3"], p["be3"])

    # Constant index_map -> weight tile is DMA'd once and stays resident in VMEM
    # across the (parallel) batch grid.
    def resident(a):
        return pl.BlockSpec(a.shape, lambda b: (0, 0))

    in_specs = ([pl.BlockSpec((1, S, D), lambda b: (b, 0, 0)),
                 pl.BlockSpec((1, Se, D), lambda b: (b, 0, 0))]
                + [resident(a) for a in weights])

    kernel = functools.partial(decoder_layer_kernel, num_heads=num_heads)

    return pl.pallas_call(
        kernel,
        out_shape=jax.ShapeDtypeStruct((B, S, D), x.dtype),
        grid_spec=pltpu.PrefetchScalarGridSpec(
            num_scalar_prefetch=0,
            grid=(B,),
            in_specs=in_specs,
            out_specs=pl.BlockSpec((1, S, D), lambda b: (b, 0, 0)),
        ),
        compiler_params=pltpu.CompilerParams(
            dimension_semantics=("parallel",),   # batch rows split across TCs (v7x)
            vmem_limit_bytes=32 * 1024 * 1024,
        ),
    )(x, enc, *weights)


# --------------------------- pure-JAX reference -------------------------------

def _q(a):
    """Mirror the kernel's bf16 MXU-operand quantization (f32 math otherwise)."""
    return a.astype(jnp.bfloat16).astype(jnp.float32)


def decoder_layer_ref(x, enc, p, num_heads):
    """f32 reference matching the module; matmul operands are quantized to bf16
    exactly as the kernel's MXU path does, so the check isolates kernel-path
    correctness (layout / masks / softmax / residual / layernorm)."""

    def layer_norm(v, g, b, eps=1e-5):
        mu = jnp.mean(v, -1, keepdims=True)
        var = jnp.mean((v - mu) ** 2, -1, keepdims=True)
        return (v - mu) / jnp.sqrt(var + eps) * g + b

    def mha(q_in, kv_in, wq, bq, wk, bk, wv, bv, wo, bo, mask):
        S, D = q_in.shape
        H = num_heads
        dh = D // H
        q = (_q(q_in) @ _q(wq) + bq).reshape(S, H, dh)
        k = (_q(kv_in) @ _q(wk) + bk).reshape(-1, H, dh)
        v = (_q(kv_in) @ _q(wv) + bv).reshape(-1, H, dh)
        s = jnp.einsum("qhd,khd->hqk", _q(q), _q(k)) / jnp.sqrt(dh)
        if mask is not None:
            s = s + mask[None]
        a = jax.nn.softmax(s, axis=-1)
        ctx = jnp.einsum("hqk,khd->qhd", _q(a), _q(v)).reshape(S, D)
        return _q(ctx) @ _q(wo) + bo

    def one(xb, eb, causal_mask):
        sa = mha(xb, xb, p["wq1"], p["bq1"], p["wk1"], p["bk1"], p["wv1"],
                 p["bv1"], p["wo1"], p["bo1"], causal_mask)
        x1 = layer_norm(xb + sa, p["g1"], p["be1"])
        ca = mha(x1, eb, p["wq2"], p["bq2"], p["wk2"], p["bk2"], p["wv2"],
                 p["bv2"], p["wo2"], p["bo2"], None)
        x2 = layer_norm(x1 + ca, p["g2"], p["be2"])
        h = jnp.maximum(_q(x2) @ _q(p["w1"]) + p["b1"], 0.0)
        f = _q(h) @ _q(p["w2"]) + p["b2"]
        return layer_norm(x2 + f, p["g3"], p["be3"])

    S = x.shape[1]
    rows = jnp.arange(S)[:, None]
    cols = jnp.arange(S)[None, :]
    causal = jnp.where(rows >= cols, 0.0, -1e9).astype(jnp.float32)
    return jax.vmap(lambda xb, eb: one(xb, eb, causal))(x, enc)


# ------------------------------- main -----------------------------------------

if __name__ == "__main__":
    B, S, Se = 2, 8, 16          # decoder seq = 8, encoder seq = 16
    D, H, F = 256, 2, 512        # head_dim = 128 -> lane-aligned heads

    key = jax.random.PRNGKey(0)
    keys = jax.random.split(key, 32)
    ki = iter(keys)

    def w(shape, scale=0.05, dtype=jnp.bfloat16):
        return (scale * jax.random.normal(next(ki), shape)).astype(dtype)

    f32 = jnp.float32
    params = {
        # self attention (matmul weights in bf16, biases / LN params in f32)
        "wq1": w((D, D)), "bq1": w((1, D), dtype=f32),
        "wk1": w((D, D)), "bk1": w((1, D), dtype=f32),
        "wv1": w((D, D)), "bv1": w((1, D), dtype=f32),
        "wo1": w((D, D)), "bo1": w((1, D), dtype=f32),
        "g1": jnp.ones((1, D), f32), "be1": jnp.zeros((1, D), f32),
        # cross attention
        "wq2": w((D, D)), "bq2": w((1, D), dtype=f32),
        "wk2": w((D, D)), "bk2": w((1, D), dtype=f32),
        "wv2": w((D, D)), "bv2": w((1, D), dtype=f32),
        "wo2": w((D, D)), "bo2": w((1, D), dtype=f32),
        "g2": jnp.ones((1, D), f32), "be2": jnp.zeros((1, D), f32),
        # FFN
        "w1": w((D, F)), "b1": w((1, F), dtype=f32),
        "w2": w((F, D)), "b2": w((1, D), dtype=f32),
        "g3": jnp.ones((1, D), f32), "be3": jnp.zeros((1, D), f32),
    }

    x = jax.random.normal(next(ki), (B, S, D), f32)
    enc = jax.random.normal(next(ki), (B, Se, D), f32)

    out = decoder_layer(x, enc, params, H)
    out = jax.block_until_ready(out)

    params_ref = {k: v.astype(f32) for k, v in params.items()}
    ref = decoder_layer_ref(x, enc, params_ref, H)

    assert out.shape == (B, S, D)
    # tolerance covers the approximate (EUP) softmax reciprocal and MXU-vs-XLA
    # accumulation-order differences; the intended bf16 MXU-operand quantization
    # is mirrored in the reference.
    assert jnp.allclose(out, ref, rtol=1e-2, atol=1e-2), "mismatch vs JAX reference"

    print("KERNEL_OK")
</pallas_src>

<mosaic_0001>
module attributes {stable_mosaic.version = 11 : i64} {
  func.func @decoder_layer_kernel(%arg0: i32, %arg1: memref<1x8x256xf32, #tpu.memory_space<vmem>>, %arg2: memref<1x16x256xf32, #tpu.memory_space<vmem>>, %arg3: memref<256x768xbf16, #tpu.memory_space<vmem>>, %arg4: memref<1x768xf32, #tpu.memory_space<vmem>>, %arg5: memref<256x256xbf16, #tpu.memory_space<vmem>>, %arg6: memref<1x256xf32, #tpu.memory_space<vmem>>, %arg7: memref<1x256xf32, #tpu.memory_space<vmem>>, %arg8: memref<1x256xf32, #tpu.memory_space<vmem>>, %arg9: memref<256x256xbf16, #tpu.memory_space<vmem>>, %arg10: memref<1x256xf32, #tpu.memory_space<vmem>>, %arg11: memref<256x512xbf16, #tpu.memory_space<vmem>>, %arg12: memref<1x512xf32, #tpu.memory_space<vmem>>, %arg13: memref<256x256xbf16, #tpu.memory_space<vmem>>, %arg14: memref<1x256xf32, #tpu.memory_space<vmem>>, %arg15: memref<1x256xf32, #tpu.memory_space<vmem>>, %arg16: memref<1x256xf32, #tpu.memory_space<vmem>>, %arg17: memref<256x512xbf16, #tpu.memory_space<vmem>>, %arg18: memref<1x512xf32, #tpu.memory_space<vmem>>, %arg19: memref<512x256xbf16, #tpu.memory_space<vmem>>, %arg20: memref<1x256xf32, #tpu.memory_space<vmem>>, %arg21: memref<1x256xf32, #tpu.memory_space<vmem>>, %arg22: memref<1x256xf32, #tpu.memory_space<vmem>>, %arg23: memref<1x8x256xf32, #tpu.memory_space<vmem>>) attributes {dimension_semantics = [#tpu.dimension_semantics<parallel>], iteration_bounds = array<i64: 2>, scalar_prefetch = 0 : i64, scratch_operands = 0 : i64, tpu.core_type = #tpu.core_type<tc>, window_params = [{transform_indices = @transform_0, window_bounds = array<i64: 1, 8, 256>}, {transform_indices = @transform_1, window_bounds = array<i64: 1, 16, 256>}, {pipeline_mode = #tpu.pipeline_mode<synchronous>, transform_indices = @transform_2, window_bounds = array<i64: 256, 768>}, {pipeline_mode = #tpu.pipeline_mode<synchronous>, transform_indices = @transform_3, window_bounds = array<i64: 1, 768>}, {pipeline_mode = #tpu.pipeline_mode<synchronous>, transform_indices = @transform_4, window_bounds = array<i64: 256, 256>}, {pipeline_mode = #tpu.pipeline_mode<synchronous>, transform_indices = @transform_5, window_bounds = array<i64: 1, 256>}, {pipeline_mode = #tpu.pipeline_mode<synchronous>, transform_indices = @transform_6, window_bounds = array<i64: 1, 256>}, {pipeline_mode = #tpu.pipeline_mode<synchronous>, transform_indices = @transform_7, window_bounds = array<i64: 1, 256>}, {pipeline_mode = #tpu.pipeline_mode<synchronous>, transform_indices = @transform_8, window_bounds = array<i64: 256, 256>}, {pipeline_mode = #tpu.pipeline_mode<synchronous>, transform_indices = @transform_9, window_bounds = array<i64: 1, 256>}, {pipeline_mode = #tpu.pipeline_mode<synchronous>, transform_indices = @transform_10, window_bounds = array<i64: 256, 512>}, {pipeline_mode = #tpu.pipeline_mode<synchronous>, transform_indices = @transform_11, window_bounds = array<i64: 1, 512>}, {pipeline_mode = #tpu.pipeline_mode<synchronous>, transform_indices = @transform_12, window_bounds = array<i64: 256, 256>}, {pipeline_mode = #tpu.pipeline_mode<synchronous>, transform_indices = @transform_13, window_bounds = array<i64: 1, 256>}, {pipeline_mode = #tpu.pipeline_mode<synchronous>, transform_indices = @transform_14, window_bounds = array<i64: 1, 256>}, {pipeline_mode = #tpu.pipeline_mode<synchronous>, transform_indices = @transform_15, window_bounds = array<i64: 1, 256>}, {pipeline_mode = #tpu.pipeline_mode<synchronous>, transform_indices = @transform_16, window_bounds = array<i64: 256, 512>}, {pipeline_mode = #tpu.pipeline_mode<synchronous>, transform_indices = @transform_17, window_bounds = array<i64: 1, 512>}, {pipeline_mode = #tpu.pipeline_mode<synchronous>, transform_indices = @transform_18, window_bounds = array<i64: 512, 256>}, {pipeline_mode = #tpu.pipeline_mode<synchronous>, transform_indices = @transform_19, window_bounds = array<i64: 1, 256>}, {pipeline_mode = #tpu.pipeline_mode<synchronous>, transform_indices = @transform_20, window_bounds = array<i64: 1, 256>}, {pipeline_mode = #tpu.pipeline_mode<synchronous>, transform_indices = @transform_21, window_bounds = array<i64: 1, 256>}, {transform_indices = @transform_22, window_bounds = array<i64: 1, 8, 256>}]} {
    %c0 = arith.constant 0 : index
    %c0_0 = arith.constant 0 : index
    %c0_1 = arith.constant 0 : index
    %0 = vector.load %arg1[%c0, %c0_0, %c0_1] : memref<1x8x256xf32, #tpu.memory_space<vmem>>, vector<1x8x256xf32>
    %1 = vector.shape_cast %0 : vector<1x8x256xf32> to vector<8x256xf32>
    %c0_2 = arith.constant 0 : index
    %c0_3 = arith.constant 0 : index
    %c0_4 = arith.constant 0 : index
    %2 = vector.load %arg2[%c0_2, %c0_3, %c0_4] : memref<1x16x256xf32, #tpu.memory_space<vmem>>, vector<1x16x256xf32>
    %3 = vector.shape_cast %2 : vector<1x16x256xf32> to vector<16x256xf32>
    %4 = tpu.iota {dimensions = array<i32: 0>} : vector<8x8xi32>
    %5 = tpu.iota {dimensions = array<i32: 1>} : vector<8x8xi32>
    %6 = arith.cmpi sge, %4, %5 : vector<8x8xi32>
    %cst = arith.constant 0.000000e+00 : f32
    %cst_5 = arith.constant -1.000000e+09 : f32
    %7 = vector.broadcast %cst : f32 to vector<8x8xf32>
    %8 = vector.broadcast %cst_5 : f32 to vector<8x8xf32>
    %9 = arith.select %6, %7, %8 : vector<8x8xi1>, vector<8x8xf32>
    %10 = arith.truncf %1 : vector<8x256xf32> to vector<8x256xbf16>
    %c0_6 = arith.constant 0 : index
    %c0_7 = arith.constant 0 : index
    %11 = vector.load %arg3[%c0_6, %c0_7] : memref<256x768xbf16, #tpu.memory_space<vmem>>, vector<256x768xbf16>
    %cst_8 = arith.constant dense<0.000000e+00> : vector<8x768xf32>
    %12 = tpu.matmul %10, %11, %cst_8 {dimension_numbers = #tpu.dot_dimension_numbers<[1], [0], [0], [1], [0, 0, 1, 1], [], []>} : vector<8x256xbf16>, vector<256x768xbf16>, vector<8x768xf32> -> vector<8x768xf32>
    %c0_9 = arith.constant 0 : index
    %c0_10 = arith.constant 0 : index
    %13 = vector.load %arg4[%c0_9, %c0_10] : memref<1x768xf32, #tpu.memory_space<vmem>>, vector<1x768xf32>
    %14 = vector.broadcast %13 : vector<1x768xf32> to vector<8x768xf32>
    %15 = arith.addf %12, %14 : vector<8x768xf32>
    %16 = vector.extract_strided_slice %15 {offsets = [0, 0], sizes = [8, 256], strides = [1, 1]} : vector<8x768xf32> to vector<8x256xf32>
    %17 = vector.extract_strided_slice %15 {offsets = [0, 256], sizes = [8, 256], strides = [1, 1]} : vector<8x768xf32> to vector<8x256xf32>
    %18 = vector.extract_strided_slice %15 {offsets = [0, 512], sizes = [8, 256], strides = [1, 1]} : vector<8x768xf32> to vector<8x256xf32>
    %19 = vector.extract_strided_slice %16 {offsets = [0, 0], sizes = [8, 128], strides = [1, 1]} : vector<8x256xf32> to vector<8x128xf32>
    %20 = arith.truncf %19 : vector<8x128xf32> to vector<8x128xbf16>
    %21 = vector.extract_strided_slice %17 {offsets = [0, 0], sizes = [8, 128], strides = [1, 1]} : vector<8x256xf32> to vector<8x128xf32>
    %22 = arith.truncf %21 : vector<8x128xf32> to vector<8x128xbf16>
    %23 = vector.extract_strided_slice %18 {offsets = [0, 0], sizes = [8, 128], strides = [1, 1]} : vector<8x256xf32> to vector<8x128xf32>
    %24 = arith.truncf %23 : vector<8x128xf32> to vector<8x128xbf16>
    %cst_11 = arith.constant dense<0.000000e+00> : vector<8x8xf32>
    %25 = tpu.matmul %20, %22, %cst_11 {dimension_numbers = #tpu.dot_dimension_numbers<[1], [1], [0], [0], [0, 0, 1, 0], [], []>} : vector<8x128xbf16>, vector<8x128xbf16>, vector<8x8xf32> -> vector<8x8xf32>
    %cst_12 = arith.constant 0.0883883461 : f32
    %26 = vector.broadcast %cst_12 : f32 to vector<8x8xf32>
    %27 = arith.mulf %25, %26 : vector<8x8xf32>
    %28 = arith.addf %27, %9 : vector<8x8xf32>
    %cst_13 = arith.constant dense<0xFF800000> : vector<8xf32>
    %29 = vector.multi_reduction <maximumf>, %28, %cst_13 [1] : vector<8x8xf32> to vector<8xf32>
    %30 = vector.shape_cast %29 : vector<8xf32> to vector<8x1xf32>
    %31 = vector.broadcast %30 : vector<8x1xf32> to vector<8x8xf32>
    %32 = arith.subf %28, %31 : vector<8x8xf32>
    %33 = math.exp %32 : vector<8x8xf32>
    %cst_14 = arith.constant dense<0.000000e+00> : vector<8xf32>
    %34 = vector.multi_reduction <add>, %33, %cst_14 [1] : vector<8x8xf32> to vector<8xf32>
    %35 = vector.shape_cast %34 : vector<8xf32> to vector<8x1xf32>
    %36 = tpu.reciprocal %35 {approx = true} : vector<8x1xf32> -> vector<8x1xf32>
    %37 = vector.broadcast %36 : vector<8x1xf32> to vector<8x8xf32>
    %38 = arith.mulf %33, %37 : vector<8x8xf32>
    %39 = arith.truncf %38 : vector<8x8xf32> to vector<8x8xbf16>
    %cst_15 = arith.constant dense<0.000000e+00> : vector<8x128xf32>
    %40 = tpu.matmul %39, %24, %cst_15 {dimension_numbers = #tpu.dot_dimension_numbers<[1], [0], [0], [1], [0, 0, 1, 1], [], []>} : vector<8x8xbf16>, vector<8x128xbf16>, vector<8x128xf32> -> vector<8x128xf32>
    %41 = vector.extract_strided_slice %16 {offsets = [0, 128], sizes = [8, 128], strides = [1, 1]} : vector<8x256xf32> to vector<8x128xf32>
    %42 = arith.truncf %41 : vector<8x128xf32> to vector<8x128xbf16>
    %43 = vector.extract_strided_slice %17 {offsets = [0, 128], sizes = [8, 128], strides = [1, 1]} : vector<8x256xf32> to vector<8x128xf32>
    %44 = arith.truncf %43 : vector<8x128xf32> to vector<8x128xbf16>
    %45 = vector.extract_strided_slice %18 {offsets = [0, 128], sizes = [8, 128], strides = [1, 1]} : vector<8x256xf32> to vector<8x128xf32>
    %46 = arith.truncf %45 : vector<8x128xf32> to vector<8x128xbf16>
    %cst_16 = arith.constant dense<0.000000e+00> : vector<8x8xf32>
    %47 = tpu.matmul %42, %44, %cst_16 {dimension_numbers = #tpu.dot_dimension_numbers<[1], [1], [0], [0], [0, 0, 1, 0], [], []>} : vector<8x128xbf16>, vector<8x128xbf16>, vector<8x8xf32> -> vector<8x8xf32>
    %cst_17 = arith.constant 0.0883883461 : f32
    %48 = vector.broadcast %cst_17 : f32 to vector<8x8xf32>
    %49 = arith.mulf %47, %48 : vector<8x8xf32>
    %50 = arith.addf %49, %9 : vector<8x8xf32>
    %cst_18 = arith.constant dense<0xFF800000> : vector<8xf32>
    %51 = vector.multi_reduction <maximumf>, %50, %cst_18 [1] : vector<8x8xf32> to vector<8xf32>
    %52 = vector.shape_cast %51 : vector<8xf32> to vector<8x1xf32>
    %53 = vector.broadcast %52 : vector<8x1xf32> to vector<8x8xf32>
    %54 = arith.subf %50, %53 : vector<8x8xf32>
    %55 = math.exp %54 : vector<8x8xf32>
    %cst_19 = arith.constant dense<0.000000e+00> : vector<8xf32>
    %56 = vector.multi_reduction <add>, %55, %cst_19 [1] : vector<8x8xf32> to vector<8xf32>
    %57 = vector.shape_cast %56 : vector<8xf32> to vector<8x1xf32>
    %58 = tpu.reciprocal %57 {approx = true} : vector<8x1xf32> -> vector<8x1xf32>
    %59 = vector.broadcast %58 : vector<8x1xf32> to vector<8x8xf32>
    %60 = arith.mulf %55, %59 : vector<8x8xf32>
    %61 = arith.truncf %60 : vector<8x8xf32> to vector<8x8xbf16>
    %cst_20 = arith.constant dense<0.000000e+00> : vector<8x128xf32>
    %62 = tpu.matmul %61, %46, %cst_20 {dimension_numbers = #tpu.dot_dimension_numbers<[1], [0], [0], [1], [0, 0, 1, 1], [], []>} : vector<8x8xbf16>, vector<8x128xbf16>, vector<8x128xf32> -> vector<8x128xf32>
    %63 = tpu.concatenate %40, %62 in 1 : vector<8x128xf32>, vector<8x128xf32> -> vector<8x256xf32>
    %64 = arith.truncf %63 : vector<8x256xf32> to vector<8x256xbf16>
    %c0_21 = arith.constant 0 : index
    %c0_22 = arith.constant 0 : index
    %65 = vector.load %arg5[%c0_21, %c0_22] : memref<256x256xbf16, #tpu.memory_space<vmem>>, vector<256x256xbf16>
    %cst_23 = arith.constant dense<0.000000e+00> : vector<8x256xf32>
    %66 = tpu.matmul %64, %65, %cst_23 {dimension_numbers = #tpu.dot_dimension_numbers<[1], [0], [0], [1], [0, 0, 1, 1], [], []>} : vector<8x256xbf16>, vector<256x256xbf16>, vector<8x256xf32> -> vector<8x256xf32>
    %c0_24 = arith.constant 0 : index
    %c0_25 = arith.constant 0 : index
    %67 = vector.load %arg6[%c0_24, %c0_25] : memref<1x256xf32, #tpu.memory_space<vmem>>, vector<1x256xf32>
    %68 = vector.broadcast %67 : vector<1x256xf32> to vector<8x256xf32>
    %69 = arith.addf %66, %68 : vector<8x256xf32>
    %70 = arith.addf %1, %69 : vector<8x256xf32>
    %c0_26 = arith.constant 0 : index
    %c0_27 = arith.constant 0 : index
    %71 = vector.load %arg7[%c0_26, %c0_27] : memref<1x256xf32, #tpu.memory_space<vmem>>, vector<1x256xf32>
    %c0_28 = arith.constant 0 : index
    %c0_29 = arith.constant 0 : index
    %72 = vector.load %arg8[%c0_28, %c0_29] : memref<1x256xf32, #tpu.memory_space<vmem>>, vector<1x256xf32>
    %cst_30 = arith.constant dense<0.000000e+00> : vector<8xf32>
    %73 = vector.multi_reduction <add>, %70, %cst_30 [1] : vector<8x256xf32> to vector<8xf32>
    %74 = vector.shape_cast %73 : vector<8xf32> to vector<8x1xf32>
    %cst_31 = arith.constant 2.560000e+02 : f32
    %75 = vector.broadcast %cst_31 : f32 to vector<8x1xf32>
    %76 = arith.divf %74, %75 : vector<8x1xf32>
    %77 = vector.broadcast %76 : vector<8x1xf32> to vector<8x256xf32>
    %78 = arith.subf %70, %77 : vector<8x256xf32>
    %79 = arith.mulf %78, %78 : vector<8x256xf32>
    %cst_32 = arith.constant dense<0.000000e+00> : vector<8xf32>
    %80 = vector.multi_reduction <add>, %79, %cst_32 [1] : vector<8x256xf32> to vector<8xf32>
    %81 = vector.shape_cast %80 : vector<8xf32> to vector<8x1xf32>
    %cst_33 = arith.constant 2.560000e+02 : f32
    %82 = vector.broadcast %cst_33 : f32 to vector<8x1xf32>
    %83 = arith.divf %81, %82 : vector<8x1xf32>
    %84 = vector.broadcast %76 : vector<8x1xf32> to vector<8x256xf32>
    %85 = arith.subf %70, %84 : vector<8x256xf32>
    %cst_34 = arith.constant 9.99999974E-6 : f32
    %86 = vector.broadcast %cst_34 : f32 to vector<8x1xf32>
    %87 = arith.addf %83, %86 : vector<8x1xf32>
    %88 = math.rsqrt %87 : vector<8x1xf32>
    %89 = vector.broadcast %88 : vector<8x1xf32> to vector<8x256xf32>
    %90 = arith.mulf %85, %89 : vector<8x256xf32>
    %91 = vector.broadcast %71 : vector<1x256xf32> to vector<8x256xf32>
    %92 = arith.mulf %90, %91 : vector<8x256xf32>
    %93 = vector.broadcast %72 : vector<1x256xf32> to vector<8x256xf32>
    %94 = arith.addf %92, %93 : vector<8x256xf32>
    %95 = arith.truncf %94 : vector<8x256xf32> to vector<8x256xbf16>
    %c0_35 = arith.constant 0 : index
    %c0_36 = arith.constant 0 : index
    %96 = vector.load %arg9[%c0_35, %c0_36] : memref<256x256xbf16, #tpu.memory_space<vmem>>, vector<256x256xbf16>
    %cst_37 = arith.constant dense<0.000000e+00> : vector<8x256xf32>
    %97 = tpu.matmul %95, %96, %cst_37 {dimension_numbers = #tpu.dot_dimension_numbers<[1], [0], [0], [1], [0, 0, 1, 1], [], []>} : vector<8x256xbf16>, vector<256x256xbf16>, vector<8x256xf32> -> vector<8x256xf32>
    %c0_38 = arith.constant 0 : index
    %c0_39 = arith.constant 0 : index
    %98 = vector.load %arg10[%c0_38, %c0_39] : memref<1x256xf32, #tpu.memory_space<vmem>>, vector<1x256xf32>
    %99 = vector.broadcast %98 : vector<1x256xf32> to vector<8x256xf32>
    %100 = arith.addf %97, %99 : vector<8x256xf32>
    %101 = arith.truncf %3 : vector<16x256xf32> to vector<16x256xbf16>
    %c0_40 = arith.constant 0 : index
    %c0_41 = arith.constant 0 : index
    %102 = vector.load %arg11[%c0_40, %c0_41] : memref<256x512xbf16, #tpu.memory_space<vmem>>, vector<256x512xbf16>
    %cst_42 = arith.constant dense<0.000000e+00> : vector<16x512xf32>
    %103 = tpu.matmul %101, %102, %cst_42 {dimension_numbers = #tpu.dot_dimension_numbers<[1], [0], [0], [1], [0, 0, 1, 1], [], []>} : vector<16x256xbf16>, vector<256x512xbf16>, vector<16x512xf32> -> vector<16x512xf32>
    %c0_43 = arith.constant 0 : index
    %c0_44 = arith.constant 0 : index
    %104 = vector.load %arg12[%c0_43, %c0_44] : memref<1x512xf32, #tpu.memory_space<vmem>>, vector<1x512xf32>
    %105 = vector.broadcast %104 : vector<1x512xf32> to vector<16x512xf32>
    %106 = arith.addf %103, %105 : vector<16x512xf32>
    %107 = vector.extract_strided_slice %106 {offsets = [0, 0], sizes = [16, 256], strides = [1, 1]} : vector<16x512xf32> to vector<16x256xf32>
    %108 = vector.extract_strided_slice %106 {offsets = [0, 256], sizes = [16, 256], strides = [1, 1]} : vector<16x512xf32> to vector<16x256xf32>
    %109 = vector.extract_strided_slice %100 {offsets = [0, 0], sizes = [8, 128], strides = [1, 1]} : vector<8x256xf32> to vector<8x128xf32>
    %110 = arith.truncf %109 : vector<8x128xf32> to vector<8x128xbf16>
    %111 = vector.extract_strided_slice %107 {offsets = [0, 0], sizes = [16, 128], strides = [1, 1]} : vector<16x256xf32> to vector<16x128xf32>
    %112 = arith.truncf %111 : vector<16x128xf32> to vector<16x128xbf16>
    %113 = vector.extract_strided_slice %108 {offsets = [0, 0], sizes = [16, 128], strides = [1, 1]} : vector<16x256xf32> to vector<16x128xf32>
    %114 = arith.truncf %113 : vector<16x128xf32> to vector<16x128xbf16>
    %cst_45 = arith.constant dense<0.000000e+00> : vector<8x16xf32>
    %115 = tpu.matmul %110, %112, %cst_45 {dimension_numbers = #tpu.dot_dimension_numbers<[1], [1], [0], [0], [0, 0, 1, 0], [], []>} : vector<8x128xbf16>, vector<16x128xbf16>, vector<8x16xf32> -> vector<8x16xf32>
    %cst_46 = arith.constant 0.0883883461 : f32
    %116 = vector.broadcast %cst_46 : f32 to vector<8x16xf32>
    %117 = arith.mulf %115, %116 : vector<8x16xf32>
    %cst_47 = arith.constant dense<0xFF800000> : vector<8xf32>
    %118 = vector.multi_reduction <maximumf>, %117, %cst_47 [1] : vector<8x16xf32> to vector<8xf32>
    %119 = vector.shape_cast %118 : vector<8xf32> to vector<8x1xf32>
    %120 = vector.broadcast %119 : vector<8x1xf32> to vector<8x16xf32>
    %121 = arith.subf %117, %120 : vector<8x16xf32>
    %122 = math.exp %121 : vector<8x16xf32>
    %cst_48 = arith.constant dense<0.000000e+00> : vector<8xf32>
    %123 = vector.multi_reduction <add>, %122, %cst_48 [1] : vector<8x16xf32> to vector<8xf32>
    %124 = vector.shape_cast %123 : vector<8xf32> to vector<8x1xf32>
    %125 = tpu.reciprocal %124 {approx = true} : vector<8x1xf32> -> vector<8x1xf32>
    %126 = vector.broadcast %125 : vector<8x1xf32> to vector<8x16xf32>
    %127 = arith.mulf %122, %126 : vector<8x16xf32>
    %128 = arith.truncf %127 : vector<8x16xf32> to vector<8x16xbf16>
    %cst_49 = arith.constant dense<0.000000e+00> : vector<8x128xf32>
    %129 = tpu.matmul %128, %114, %cst_49 {dimension_numbers = #tpu.dot_dimension_numbers<[1], [0], [0], [1], [0, 0, 1, 1], [], []>} : vector<8x16xbf16>, vector<16x128xbf16>, vector<8x128xf32> -> vector<8x128xf32>
    %130 = vector.extract_strided_slice %100 {offsets = [0, 128], sizes = [8, 128], strides = [1, 1]} : vector<8x256xf32> to vector<8x128xf32>
    %131 = arith.truncf %130 : vector<8x128xf32> to vector<8x128xbf16>
    %132 = vector.extract_strided_slice %107 {offsets = [0, 128], sizes = [16, 128], strides = [1, 1]} : vector<16x256xf32> to vector<16x128xf32>
    %133 = arith.truncf %132 : vector<16x128xf32> to vector<16x128xbf16>
    %134 = vector.extract_strided_slice %108 {offsets = [0, 128], sizes = [16, 128], strides = [1, 1]} : vector<16x256xf32> to vector<16x128xf32>
    %135 = arith.truncf %134 : vector<16x128xf32> to vector<16x128xbf16>
    %cst_50 = arith.constant dense<0.000000e+00> : vector<8x16xf32>
    %136 = tpu.matmul %131, %133, %cst_50 {dimension_numbers = #tpu.dot_dimension_numbers<[1], [1], [0], [0], [0, 0, 1, 0], [], []>} : vector<8x128xbf16>, vector<16x128xbf16>, vector<8x16xf32> -> vector<8x16xf32>
    %cst_51 = arith.constant 0.0883883461 : f32
    %137 = vector.broadcast %cst_51 : f32 to vector<8x16xf32>
    %138 = arith.mulf %136, %137 : vector<8x16xf32>
    %cst_52 = arith.constant dense<0xFF800000> : vector<8xf32>
    %139 = vector.multi_reduction <maximumf>, %138, %cst_52 [1] : vector<8x16xf32> to vector<8xf32>
    %140 = vector.shape_cast %139 : vector<8xf32> to vector<8x1xf32>
    %141 = vector.broadcast %140 : vector<8x1xf32> to vector<8x16xf32>
    %142 = arith.subf %138, %141 : vector<8x16xf32>
    %143 = math.exp %142 : vector<8x16xf32>
    %cst_53 = arith.constant dense<0.000000e+00> : vector<8xf32>
    %144 = vector.multi_reduction <add>, %143, %cst_53 [1] : vector<8x16xf32> to vector<8xf32>
    %145 = vector.shape_cast %144 : vector<8xf32> to vector<8x1xf32>
    %146 = tpu.reciprocal %145 {approx = true} : vector<8x1xf32> -> vector<8x1xf32>
    %147 = vector.broadcast %146 : vector<8x1xf32> to vector<8x16xf32>
    %148 = arith.mulf %143, %147 : vector<8x16xf32>
    %149 = arith.truncf %148 : vector<8x16xf32> to vector<8x16xbf16>
    %cst_54 = arith.constant dense<0.000000e+00> : vector<8x128xf32>
    %150 = tpu.matmul %149, %135, %cst_54 {dimension_numbers = #tpu.dot_dimension_numbers<[1], [0], [0], [1], [0, 0, 1, 1], [], []>} : vector<8x16xbf16>, vector<16x128xbf16>, vector<8x128xf32> -> vector<8x128xf32>
    %151 = tpu.concatenate %129, %150 in 1 : vector<8x128xf32>, vector<8x128xf32> -> vector<8x256xf32>
    %152 = arith.truncf %151 : vector<8x256xf32> to vector<8x256xbf16>
    %c0_55 = arith.constant 0 : index
    %c0_56 = arith.constant 0 : index
    %153 = vector.load %arg13[%c0_55, %c0_56] : memref<256x256xbf16, #tpu.memory_space<vmem>>, vector<256x256xbf16>
    %cst_57 = arith.constant dense<0.000000e+00> : vector<8x256xf32>
    %154 = tpu.matmul %152, %153, %cst_57 {dimension_numbers = #tpu.dot_dimension_numbers<[1], [0], [0], [1], [0, 0, 1, 1], [], []>} : vector<8x256xbf16>, vector<256x256xbf16>, vector<8x256xf32> -> vector<8x256xf32>
    %c0_58 = arith.constant 0 : index
    %c0_59 = arith.constant 0 : index
    %155 = vector.load %arg14[%c0_58, %c0_59] : memref<1x256xf32, #tpu.memory_space<vmem>>, vector<1x256xf32>
    %156 = vector.broadcast %155 : vector<1x256xf32> to vector<8x256xf32>
    %157 = arith.addf %154, %156 : vector<8x256xf32>
    %158 = arith.addf %94, %157 : vector<8x256xf32>
    %c0_60 = arith.constant 0 : index
    %c0_61 = arith.constant 0 : index
    %159 = vector.load %arg15[%c0_60, %c0_61] : memref<1x256xf32, #tpu.memory_space<vmem>>, vector<1x256xf32>
    %c0_62 = arith.constant 0 : index
    %c0_63 = arith.constant 0 : index
    %160 = vector.load %arg16[%c0_62, %c0_63] : memref<1x256xf32, #tpu.memory_space<vmem>>, vector<1x256xf32>
    %cst_64 = arith.constant dense<0.000000e+00> : vector<8xf32>
    %161 = vector.multi_reduction <add>, %158, %cst_64 [1] : vector<8x256xf32> to vector<8xf32>
    %162 = vector.shape_cast %161 : vector<8xf32> to vector<8x1xf32>
    %cst_65 = arith.constant 2.560000e+02 : f32
    %163 = vector.broadcast %cst_65 : f32 to vector<8x1xf32>
    %164 = arith.divf %162, %163 : vector<8x1xf32>
    %165 = vector.broadcast %164 : vector<8x1xf32> to vector<8x256xf32>
    %166 = arith.subf %158, %165 : vector<8x256xf32>
    %167 = arith.mulf %166, %166 : vector<8x256xf32>
    %cst_66 = arith.constant dense<0.000000e+00> : vector<8xf32>
    %168 = vector.multi_reduction <add>, %167, %cst_66 [1] : vector<8x256xf32> to vector<8xf32>
    %169 = vector.shape_cast %168 : vector<8xf32> to vector<8x1xf32>
    %cst_67 = arith.constant 2.560000e+02 : f32
    %170 = vector.broadcast %cst_67 : f32 to vector<8x1xf32>
    %171 = arith.divf %169, %170 : vector<8x1xf32>
    %172 = vector.broadcast %164 : vector<8x1xf32> to vector<8x256xf32>
    %173 = arith.subf %158, %172 : vector<8x256xf32>
    %cst_68 = arith.constant 9.99999974E-6 : f32
    %174 = vector.broadcast %cst_68 : f32 to vector<8x1xf32>
    %175 = arith.addf %171, %174 : vector<8x1xf32>
    %176 = math.rsqrt %175 : vector<8x1xf32>
    %177 = vector.broadcast %176 : vector<8x1xf32> to vector<8x256xf32>
    %178 = arith.mulf %173, %177 : vector<8x256xf32>
    %179 = vector.broadcast %159 : vector<1x256xf32> to vector<8x256xf32>
    %180 = arith.mulf %178, %179 : vector<8x256xf32>
    %181 = vector.broadcast %160 : vector<1x256xf32> to vector<8x256xf32>
    %182 = arith.addf %180, %181 : vector<8x256xf32>
    %183 = arith.truncf %182 : vector<8x256xf32> to vector<8x256xbf16>
    %c0_69 = arith.constant 0 : index
    %c0_70 = arith.constant 0 : index
    %184 = vector.load %arg17[%c0_69, %c0_70] : memref<256x512xbf16, #tpu.memory_space<vmem>>, vector<256x512xbf16>
    %cst_71 = arith.constant dense<0.000000e+00> : vector<8x512xf32>
    %185 = tpu.matmul %183, %184, %cst_71 {dimension_numbers = #tpu.dot_dimension_numbers<[1], [0], [0], [1], [0, 0, 1, 1], [], []>} : vector<8x256xbf16>, vector<256x512xbf16>, vector<8x512xf32> -> vector<8x512xf32>
    %c0_72 = arith.constant 0 : index
    %c0_73 = arith.constant 0 : index
    %186 = vector.load %arg18[%c0_72, %c0_73] : memref<1x512xf32, #tpu.memory_space<vmem>>, vector<1x512xf32>
    %187 = vector.broadcast %186 : vector<1x512xf32> to vector<8x512xf32>
    %188 = arith.addf %185, %187 : vector<8x512xf32>
    %cst_74 = arith.constant 0.000000e+00 : f32
    %189 = vector.broadcast %cst_74 : f32 to vector<8x512xf32>
    %190 = arith.maximumf %188, %189 : vector<8x512xf32>
    %191 = arith.truncf %190 : vector<8x512xf32> to vector<8x512xbf16>
    %c0_75 = arith.constant 0 : index
    %c0_76 = arith.constant 0 : index
    %192 = vector.load %arg19[%c0_75, %c0_76] : memref<512x256xbf16, #tpu.memory_space<vmem>>, vector<512x256xbf16>
    %cst_77 = arith.constant dense<0.000000e+00> : vector<8x256xf32>
    %193 = tpu.matmul %191, %192, %cst_77 {dimension_numbers = #tpu.dot_dimension_numbers<[1], [0], [0], [1], [0, 0, 1, 1], [], []>} : vector<8x512xbf16>, vector<512x256xbf16>, vector<8x256xf32> -> vector<8x256xf32>
    %c0_78 = arith.constant 0 : index
    %c0_79 = arith.constant 0 : index
    %194 = vector.load %arg20[%c0_78, %c0_79] : memref<1x256xf32, #tpu.memory_space<vmem>>, vector<1x256xf32>
    %195 = vector.broadcast %194 : vector<1x256xf32> to vector<8x256xf32>
    %196 = arith.addf %193, %195 : vector<8x256xf32>
    %197 = arith.addf %182, %196 : vector<8x256xf32>
    %c0_80 = arith.constant 0 : index
    %c0_81 = arith.constant 0 : index
    %198 = vector.load %arg21[%c0_80, %c0_81] : memref<1x256xf32, #tpu.memory_space<vmem>>, vector<1x256xf32>
    %c0_82 = arith.constant 0 : index
    %c0_83 = arith.constant 0 : index
    %199 = vector.load %arg22[%c0_82, %c0_83] : memref<1x256xf32, #tpu.memory_space<vmem>>, vector<1x256xf32>
    %cst_84 = arith.constant dense<0.000000e+00> : vector<8xf32>
    %200 = vector.multi_reduction <add>, %197, %cst_84 [1] : vector<8x256xf32> to vector<8xf32>
    %201 = vector.shape_cast %200 : vector<8xf32> to vector<8x1xf32>
    %cst_85 = arith.constant 2.560000e+02 : f32
    %202 = vector.broadcast %cst_85 : f32 to vector<8x1xf32>
    %203 = arith.divf %201, %202 : vector<8x1xf32>
    %204 = vector.broadcast %203 : vector<8x1xf32> to vector<8x256xf32>
    %205 = arith.subf %197, %204 : vector<8x256xf32>
    %206 = arith.mulf %205, %205 : vector<8x256xf32>
    %cst_86 = arith.constant dense<0.000000e+00> : vector<8xf32>
    %207 = vector.multi_reduction <add>, %206, %cst_86 [1] : vector<8x256xf32> to vector<8xf32>
    %208 = vector.shape_cast %207 : vector<8xf32> to vector<8x1xf32>
    %cst_87 = arith.constant 2.560000e+02 : f32
    %209 = vector.broadcast %cst_87 : f32 to vector<8x1xf32>
    %210 = arith.divf %208, %209 : vector<8x1xf32>
    %211 = vector.broadcast %203 : vector<8x1xf32> to vector<8x256xf32>
    %212 = arith.subf %197, %211 : vector<8x256xf32>
    %cst_88 = arith.constant 9.99999974E-6 : f32
    %213 = vector.broadcast %cst_88 : f32 to vector<8x1xf32>
    %214 = arith.addf %210, %213 : vector<8x1xf32>
    %215 = math.rsqrt %214 : vector<8x1xf32>
    %216 = vector.broadcast %215 : vector<8x1xf32> to vector<8x256xf32>
    %217 = arith.mulf %212, %216 : vector<8x256xf32>
    %218 = vector.broadcast %198 : vector<1x256xf32> to vector<8x256xf32>
    %219 = arith.mulf %217, %218 : vector<8x256xf32>
    %220 = vector.broadcast %199 : vector<1x256xf32> to vector<8x256xf32>
    %221 = arith.addf %219, %220 : vector<8x256xf32>
    %222 = vector.shape_cast %221 : vector<8x256xf32> to vector<1x8x256xf32>
    %c0_89 = arith.constant 0 : index
    %c0_90 = arith.constant 0 : index
    %c0_91 = arith.constant 0 : index
    %223 = vector.load %arg23[%c0_89, %c0_90, %c0_91] : memref<1x8x256xf32, #tpu.memory_space<vmem>>, vector<1x8x256xf32>
    tpu.vector_store %arg23[%c0_89, %c0_90, %c0_91], %222 {strides = array<i32>} : memref<1x8x256xf32, #tpu.memory_space<vmem>>, vector<1x8x256xf32>,
    return
  }
  func.func @transform_0(%arg0: i32) -> (i32, i32, i32) {
    %c0_i32 = arith.constant 0 : i32
    %c0_i32_0 = arith.constant 0 : i32
    %c0_i32_1 = arith.constant 0 : i32
    return %arg0, %c0_i32, %c0_i32_0 : i32, i32, i32
  }
  func.func @transform_1(%arg0: i32) -> (i32, i32, i32) {
    %c0_i32 = arith.constant 0 : i32
    %c0_i32_0 = arith.constant 0 : i32
    %c0_i32_1 = arith.constant 0 : i32
    return %arg0, %c0_i32, %c0_i32_0 : i32, i32, i32
  }
  func.func @transform_2(%arg0: i32) -> (i32, i32) {
    %c0_i32 = arith.constant 0 : i32
    %c0_i32_0 = arith.constant 0 : i32
    %c0_i32_1 = arith.constant 0 : i32
    return %c0_i32, %c0_i32_0 : i32, i32
  }
  func.func @transform_3(%arg0: i32) -> (i32, i32) {
    %c0_i32 = arith.constant 0 : i32
    %c0_i32_0 = arith.constant 0 : i32
    %c0_i32_1 = arith.constant 0 : i32
    return %c0_i32, %c0_i32_0 : i32, i32
  }
  func.func @transform_4(%arg0: i32) -> (i32, i32) {
    %c0_i32 = arith.constant 0 : i32
    %c0_i32_0 = arith.constant 0 : i32
    %c0_i32_1 = arith.constant 0 : i32
    return %c0_i32, %c0_i32_0 : i32, i32
  }
  func.func @transform_5(%arg0: i32) -> (i32, i32) {
    %c0_i32 = arith.constant 0 : i32
    %c0_i32_0 = arith.constant 0 : i32
    %c0_i32_1 = arith.constant 0 : i32
    return %c0_i32, %c0_i32_0 : i32, i32
  }
  func.func @transform_6(%arg0: i32) -> (i32, i32) {
    %c0_i32 = arith.constant 0 : i32
    %c0_i32_0 = arith.constant 0 : i32
    %c0_i32_1 = arith.constant 0 : i32
    return %c0_i32, %c0_i32_0 : i32, i32
  }
  func.func @transform_7(%arg0: i32) -> (i32, i32) {
    %c0_i32 = arith.constant 0 : i32
    %c0_i32_0 = arith.constant 0 : i32
    %c0_i32_1 = arith.constant 0 : i32
    return %c0_i32, %c0_i32_0 : i32, i32
  }
  func.func @transform_8(%arg0: i32) -> (i32, i32) {
    %c0_i32 = arith.constant 0 : i32
    %c0_i32_0 = arith.constant 0 : i32
    %c0_i32_1 = arith.constant 0 : i32
    return %c0_i32, %c0_i32_0 : i32, i32
  }
  func.func @transform_9(%arg0: i32) -> (i32, i32) {
    %c0_i32 = arith.constant 0 : i32
    %c0_i32_0 = arith.constant 0 : i32
    %c0_i32_1 = arith.constant 0 : i32
    return %c0_i32, %c0_i32_0 : i32, i32
  }
  func.func @transform_10(%arg0: i32) -> (i32, i32) {
    %c0_i32 = arith.constant 0 : i32
    %c0_i32_0 = arith.constant 0 : i32
    %c0_i32_1 = arith.constant 0 : i32
    return %c0_i32, %c0_i32_0 : i32, i32
  }
  func.func @transform_11(%arg0: i32) -> (i32, i32) {
    %c0_i32 = arith.constant 0 : i32
    %c0_i32_0 = arith.constant 0 : i32
    %c0_i32_1 = arith.constant 0 : i32
    return %c0_i32, %c0_i32_0 : i32, i32
  }
  func.func @transform_12(%arg0: i32) -> (i32, i32) {
    %c0_i32 = arith.constant 0 : i32
    %c0_i32_0 = arith.constant 0 : i32
    %c0_i32_1 = arith.constant 0 : i32
    return %c0_i32, %c0_i32_0 : i32, i32
  }
  func.func @transform_13(%arg0: i32) -> (i32, i32) {
    %c0_i32 = arith.constant 0 : i32
    %c0_i32_0 = arith.constant 0 : i32
    %c0_i32_1 = arith.constant 0 : i32
    return %c0_i32, %c0_i32_0 : i32, i32
  }
  func.func @transform_14(%arg0: i32) -> (i32, i32) {
    %c0_i32 = arith.constant 0 : i32
    %c0_i32_0 = arith.constant 0 : i32
    %c0_i32_1 = arith.constant 0 : i32
    return %c0_i32, %c0_i32_0 : i32, i32
  }
  func.func @transform_15(%arg0: i32) -> (i32, i32) {
    %c0_i32 = arith.constant 0 : i32
    %c0_i32_0 = arith.constant 0 : i32
    %c0_i32_1 = arith.constant 0 : i32
    return %c0_i32, %c0_i32_0 : i32, i32
  }
  func.func @transform_16(%arg0: i32) -> (i32, i32) {
    %c0_i32 = arith.constant 0 : i32
    %c0_i32_0 = arith.constant 0 : i32
    %c0_i32_1 = arith.constant 0 : i32
    return %c0_i32, %c0_i32_0 : i32, i32
  }
  func.func @transform_17(%arg0: i32) -> (i32, i32) {
    %c0_i32 = arith.constant 0 : i32
    %c0_i32_0 = arith.constant 0 : i32
    %c0_i32_1 = arith.constant 0 : i32
    return %c0_i32, %c0_i32_0 : i32, i32
  }
  func.func @transform_18(%arg0: i32) -> (i32, i32) {
    %c0_i32 = arith.constant 0 : i32
    %c0_i32_0 = arith.constant 0 : i32
    %c0_i32_1 = arith.constant 0 : i32
    return %c0_i32, %c0_i32_0 : i32, i32
  }
  func.func @transform_19(%arg0: i32) -> (i32, i32) {
    %c0_i32 = arith.constant 0 : i32
    %c0_i32_0 = arith.constant 0 : i32
    %c0_i32_1 = arith.constant 0 : i32
    return %c0_i32, %c0_i32_0 : i32, i32
  }
  func.func @transform_20(%arg0: i32) -> (i32, i32) {
    %c0_i32 = arith.constant 0 : i32
    %c0_i32_0 = arith.constant 0 : i32
    %c0_i32_1 = arith.constant 0 : i32
    return %c0_i32, %c0_i32_0 : i32, i32
  }
  func.func @transform_21(%arg0: i32) -> (i32, i32) {
    %c0_i32 = arith.constant 0 : i32
    %c0_i32_0 = arith.constant 0 : i32
    %c0_i32_1 = arith.constant 0 : i32
    return %c0_i32, %c0_i32_0 : i32, i32
  }
  func.func @transform_22(%arg0: i32) -> (i32, i32, i32) {
    %c0_i32 = arith.constant 0 : i32
    %c0_i32_0 = arith.constant 0 : i32
    %c0_i32_1 = arith.constant 0 : i32
    return %arg0, %c0_i32, %c0_i32_0 : i32, i32, i32
  }
}

</mosaic_0001>

<bundles_post_ra>
// kernel: tpu_custom_call.1
= control target key start
LH: loop header
LB: loop body
LE: loop exit
PB: predicated region body
PF: predicated region fallthrough
CT: control target
= control target key end

     0   :  { %s6869_s0 = inlined_call_operand.hbm [shape: f32[2,8,256], index: 0, kind: input, shape index: {}]   ;;  %s6870_s1 = inlined_call_operand.hbm [shape: f32[2,16,256], index: 1, kind: input, shape index: {}]   ;;  %s6871_s2 = inlined_call_operand.hbm [shape: bf16[256,768], index: 2, kind: input, shape index: {}]   ;;  %s6872_s3 = inlined_call_operand.hbm [shape: f32[1,768], index: 3, kind: input, shape index: {}]   ;;  %s6873_s4 = inlined_call_operand.hbm [shape: bf16[256,256], index: 4, kind: input, shape index: {}]   ;;  %s6874_s5 = inlined_call_operand.hbm [shape: f32[1,256], index: 5, kind: input, shape index: {}]   ;;  %s6875_s6 = inlined_call_operand.vmem [shape: f32[1,256], index: 6, kind: input, shape index: {}]   ;;  %s6876_s7 = inlined_call_operand.vmem [shape: f32[1,256], index: 7, kind: input, shape index: {}]   ;;  %s6877_s8 = inlined_call_operand.hbm [shape: bf16[256,256], index: 8, kind: input, shape index: {}]   ;;  %s6878_s9 = inlined_call_operand.vmem [shape: f32[1,256], index: 9, kind: input, shape index: {}]   ;;  %s6879_s10 = inlined_call_operand.hbm [shape: bf16[256,512], index: 10, kind: input, shape index: {}]   ;;  %s6880_s11 = inlined_call_operand.vmem [shape: f32[1,512], index: 11, kind: input, shape index: {}]   ;;  %s6881_s12 = inlined_call_operand.hbm [shape: bf16[256,256], index: 12, kind: input, shape index: {}]   ;;  %s6882_s13 = inlined_call_operand.vmem [shape: f32[1,256], index: 13, kind: input, shape index: {}]   ;;  %s6883_s14 = inlined_call_operand.vmem [shape: f32[1,256], index: 14, kind: input, shape index: {}]   ;;  %s6884_s15 = inlined_call_operand.vmem [shape: f32[1,256], index: 15, kind: input, shape index: {}]   ;;  %s6885_s16 = inlined_call_operand.hbm [shape: bf16[256,512], index: 16, kind: input, shape index: {}]   ;;  %s6886_s17 = inlined_call_operand.vmem [shape: f32[1,512], index: 17, kind: input, shape index: {}]   ;;  %s6887_s18 = inlined_call_operand.hbm [shape: bf16[512,256], index: 18, kind: input, shape index: {}]   ;;  %s6888_s19 = inlined_call_operand.vmem [shape: f32[1,256], index: 19, kind: input, shape index: {}]   ;;  %s6889_s20 = inlined_call_operand.vmem [shape: f32[1,256], index: 20, kind: input, shape index: {}]   ;;  %s6890_s21 = inlined_call_operand.vmem [shape: f32[1,256], index: 21, kind: input, shape index: {}]   ;;  %s6891_s22 = inlined_call_operand.hbm [shape: f32[2,8,256], index: 22, kind: output, shape index: {}]  }
   0x1   :  { %6902 = sst [smem:[#allocation30_spill]] %s6869_s0 }
   0x2   :  { %6903 = sst [smem:[#allocation31_spill]] %s6870_s1 }
   0x3   :  { %6904 = sst [smem:[#allocation32_spill]] %s6871_s2 }
   0x4   :  { %6905 = sst [smem:[#allocation33_spill]] %s6872_s3 }
   0x5   :  { %6906 = sst [smem:[#allocation34_spill]] %s6873_s4 }
   0x6   :  { %6907 = sst [smem:[#allocation35_spill]] %s6874_s5 }
   0x7   :  { %6908 = sst [smem:[#allocation36_spill]] %s6875_s6 }
   0x8   :  { %6909 = sst [smem:[#allocation37_spill]] %s6877_s8 }
   0x9   :  { %6910 = sst [smem:[#allocation38_spill]] %s6879_s10 }
   0xa   :  { %6911 = sst [smem:[#allocation39_spill]] %s6881_s12 }
   0xb   :  { %6912 = sst [smem:[#allocation40_spill]] %s6885_s16 }
   0xc   :  { %6913 = sst [smem:[#allocation41_spill]] %s6886_s17 }
   0xd   :  { %6914 = sst [smem:[#allocation42_spill]] %s6887_s18 }
   0xe   :  { %6915 = sst [smem:[#allocation43_spill]] %s6888_s19 }
   0xf   :  { %6916 = sst [smem:[#allocation44_spill]] %s6889_s20 }
  0x10   :  { %6917 = sst [smem:[#allocation45_spill]] %s6890_s21 }
  0x11   :  { %6918 = sst [smem:[#allocation46_spill]] %s6891_s22 }
  0x12   :  { %27 = vsyncpa [#allocation3], 0 }
  0x13   :  { %29 = vsyncpa [#allocation3 + $0x1], 0 }
  0x14   :  { %30 = vsyncpa [#allocation6], 0 }
  0x15   :  { %32 = vsyncpa [#allocation6 + $0x1], 0 }
  0x16   :  { %33 = vsyncpa [#allocation9], 0 }
  0x17   :  { %34 = vsyncpa [#allocation12], 0 }
  0x18   :  { %35 = vsyncpa [#allocation15], 0 }
  0x19   :  { %36 = vsyncpa [#allocation18], 0 }
  0x1a   :  { %37 = vsyncpa [#allocation4], 0 }
  0x1b   :  { %39 = vsyncpa [#allocation4 + $0x1], 0  ;;  %s6322_s3 = smov 0   ;;  %s6324_s28 = smov 0  }
  0x1c   :  { %s6326_s29 = smov 0   ;;  %s6328_s30 = smov 0  }
  0x1d LB: > { %s6186_s4 = smov [#allocation7]   ;;  %s6343_s23 = sadd.s32 4294967295, %s6184_s30   ;;  %s6184_s30 = sphi %s6328_s30, %s6966_s30   ;;  %s6180_s29 = sphi %s6326_s29, %s6965_s29   ;;  %s6176_s28 = sphi %s6324_s28, %s6964_s28   ;;  %s6172_s3 = sphi %s6322_s3, %s6963_s3  }
  0x1e   : > { %s560_s0 = sshll.u32 %s6186_s4, 4  ;;  %p4565_p0 = scmp.ge.s32.totalorder %s6184_s30, 1  ;;  %s561_s0 = int_to_ptr.vmem [resolvable:$true] %s560_s0 }
  0x1f   : > { %p6895_p1 = scmp.eq.s32.totalorder %s6343_s23, 0  ;;  %p548_p2 = scmp.lt.s32.totalorder %s6184_s30, 3 }
  0x20   : > { %s6187_s5 = smov [#allocation8]   ;;  %s6188_s25 = smov [#allocation11]  }
  0x21   : > { %p6348_p3 = pnand %p4565_p0, %p548_p2  ;;  %s574_s24 = sshll.u32 %s6187_s5, 4  ;;  %s575_s24 = int_to_ptr.vmem [resolvable:$true] %s574_s24 }
  0x22   : > { %s598_s26 = sshll.u32 %s6188_s25, 4  ;;  %s5817_s27 = scalar_lea.vmem %s561_s0, 12288  ;;  %s6361_s26 = int_to_ptr.vmem [resolvable:$true] %s598_s26 }
  0x23   : > { %s6919_s1 = scalar_select %p6348_p3, 1, 0 }
  0x24   : > { %p5097_p5 = pneg %p6348_p3  ;;  %p5818_p8 = scmp.ne.s32.totalorder %s561_s0, %s5817_s27 }
  0x25   : > { %p5825_p11 = scmp.lt.s32.totalorder %s561_s0, %s561_s0  ;;  %p5826_p12 = scmp.lt.s32.totalorder %s5817_s27, %s5817_s27 }
  0x26   : > { %p6357_p6 = pnand %p5097_p5, %p6895_p1 }
  0x27   : > { %p5827_p13 = por %p5826_p12, %p5825_p11 }
  0x28   : > { %p6365_p7 = pneg %p6357_p6 }
  0x2a   : > { %p5820_p9 = pnand %p5818_p8, %p6365_p7 }
  0x2c   : > { %p5821_p10 = pneg %p5820_p9 }
  0x2e   : > { %p5828_p0 = pnand %p5827_p13, %p5821_p10 }
  0x30   : > { %5831 = shalt.err (!%p5828_p0)
}
  0x31   : > { %s6189_s4 = smov 384   ;;  %s6190_s5 = smov 24  }
  0x32   : > { %s6922_s21 = sld [smem:[#allocation32_spill]]  ;;  %s5843_s20 = scalar_lea.vmem %s575_s24, 96 }
  0x33   : > { %p5844_p2 = scmp.ne.s32.totalorder %s575_s24, %s5843_s20  ;;  %p5851_p9 = scmp.lt.s32.totalorder %s575_s24, %s575_s24 }
  0x34   : > { %p5852_p4 = scmp.lt.s32.totalorder %s5843_s20, %s5843_s20 }
  0x35   : > { %p5846_p5 = pnand %p5844_p2, %p6365_p7 }
  0x36   : > { %p5853_p1 = por %p5852_p4, %p5851_p9 }
  0x37   : > { %p5847_p8 = pneg %p5846_p5 }
  0x38   : > { %5100 = dma.hbm_to_vmem [thread:$0]  (!%p6357_p6), %s6922_s21, 12288, %s561_s0, [#allocation6], %s6189_s4, %s6189_s4, %s6190_s5  }
  0x39   : > { %p5854_p11 = pnand %p5853_p1, %p5847_p8 }
  0x3b   : > { %5857 = shalt.err (!%p5854_p11)
}
  0x3c   : > { %s6923_s17 = sld [smem:[#allocation33_spill]]  ;;  %s5869_s21 = scalar_lea.vmem %s6361_s26, 32 }
  0x3d   : > { %p5870_p10 = scmp.ne.s32.totalorder %s6361_s26, %s5869_s21  ;;  %p5877_p0 = scmp.lt.s32.totalorder %s6361_s26, %s6361_s26 }
  0x3e   : > { %p5878_p4 = scmp.lt.s32.totalorder %s5869_s21, %s5869_s21 }
  0x3f   : > { %p5872_p12 = pnand %p5870_p10, %p6365_p7 }
  0x40   : > { %p5879_p1 = por %p5878_p4, %p5877_p0 }
  0x41   : > { %p5873_p13 = pneg %p5872_p12 }
  0x42   : > { %5103 = dma.hbm_to_vmem [thread:$0]  (!%p6357_p6), %s6923_s17, 96, %s575_s24, [#allocation9]  }
  0x43   : > { %p5880_p2 = pnand %p5879_p1, %p5873_p13 }
  0x45   : > { %5883 = shalt.err (!%p5880_p2)
}
  0x46   : > { %s6924_s22 = sld [smem:[#allocation35_spill]]  ;;  %s6191_s17 = smov [#allocation14]  }
  0x47   : > { %s630_s0 = sshll.u32 %s6191_s17, 4  ;;  %s631_s0 = int_to_ptr.vmem [resolvable:$true] %s630_s0 }
  0x48   : > { %s5895_s24 = scalar_lea.vmem %s631_s0, 8192  ;;  %p5903_p11 = scmp.lt.s32.totalorder %s631_s0, %s631_s0 }
  0x49   : > { %p5896_p5 = scmp.ne.s32.totalorder %s631_s0, %s5895_s24  ;;  %p5904_p10 = scmp.lt.s32.totalorder %s5895_s24, %s5895_s24 }
  0x4b   : > { %p5898_p8 = pnand %p5896_p5, %p6365_p7  ;;  %p5905_p12 = por %p5904_p10, %p5903_p11 }
  0x4c   : > { %5109 = dma.hbm_to_vmem [thread:$0]  (!%p6357_p6), %s6924_s22, 32, %s6361_s26, [#allocation12]  }
  0x4d   : > { %p5899_p9 = pneg %p5898_p8 }
  0x4f   : > { %p5906_p13 = pnand %p5905_p12, %p5899_p9 }
  0x51   : > { %5909 = shalt.err (!%p5906_p13)
}
  0x52   : > { %s6896_s4 = smov 256   ;;  %s6897_s5 = smov 16  }
  0x53   : > { %s6925_s10 = sld [smem:[#allocation38_spill]]  ;;  %s6194_s27 = smov [#allocation17]  }
  0x54   : > { %s668_s21 = sshll.u32 %s6194_s27, 4  ;;  %s6195_s19 = smov [#allocation10]   ;;  %s669_s21 = int_to_ptr.vmem [resolvable:$true] %s668_s21 }
  0x55   : > { %s584_s20 = sshll.u32 %s6195_s19, 4  ;;  %s5921_s22 = scalar_lea.vmem %s669_s21, 8192  ;;  %s585_s20 = int_to_ptr.vmem [resolvable:$true] %s584_s20 }
  0x56   : > { %p5922_p0 = scmp.ne.s32.totalorder %s669_s21, %s5921_s22  ;;  %p5929_p2 = scmp.lt.s32.totalorder %s669_s21, %s669_s21 }
  0x57   : > { %p5930_p5 = scmp.lt.s32.totalorder %s5921_s22, %s5921_s22 }
  0x58   : > { %p5924_p4 = pnand %p5922_p0, %p6365_p7 }
  0x59   : > { %5115 = dma.hbm_to_vmem [thread:$0]  (!%p6357_p6), %s6925_s10, 8192, %s631_s0, [#allocation15], %s6896_s4, %s6896_s4, %s6897_s5  }
  0x5a   : > { %p5925_p1 = pneg %p5924_p4  ;;  %p5931_p8 = por %p5930_p5, %p5929_p2 }
  0x5c   : > { %p5932_p9 = pnand %p5931_p8, %p5925_p1 }
  0x5e   : > { %5935 = shalt.err (!%p5932_p9)
}
  0x5f   : > { %s6926_s16 = sld [smem:[#allocation40_spill]]  ;;  %s5947_s24 = scalar_lea.vmem %s585_s20, 4096 }
  0x60   : > { %p5948_p11 = scmp.ne.s32.totalorder %s585_s20, %s5947_s24  ;;  %p5955_p13 = scmp.lt.s32.totalorder %s585_s20, %s585_s20 }
  0x61   : > { %p5956_p0 = scmp.lt.s32.totalorder %s5947_s24, %s5947_s24 }
  0x62   : > { %p5950_p10 = pnand %p5948_p11, %p6365_p7 }
  0x63   : > { %p5957_p4 = por %p5956_p0, %p5955_p13 }
  0x64   : > { %p5951_p12 = pneg %p5950_p10 }
  0x65   : > { %5121 = dma.hbm_to_vmem [thread:$0]  (!%p6357_p6), %s6926_s16, 8192, %s669_s21, [#allocation18], %s6896_s4, %s6896_s4, %s6897_s5  }
  0x66   : > { %p5958_p1 = pnand %p5957_p4, %p5951_p12 }
  0x68   : > { %5961 = shalt.err (!%p5958_p1)
}
  0x69   : > { %s6196_s26 = smov 128   ;;  %s6197_s25 = smov 8  }
  0x6a   : > { %s6927_s19 = sld [smem:[#allocation34_spill]]  ;;  %s6198_s22 = smov [#allocation13]  }
  0x6b   : > { %s614_s17 = sshll.u32 %s6198_s22, 4  ;;  %s6199_s0 = smov [#allocation16]   ;;  %s615_s17 = int_to_ptr.vmem [resolvable:$true] %s614_s17 }
  0x6c   : > { %s646_s4 = sshll.u32 %s6199_s0, 4  ;;  %s5973_s24 = scalar_lea.vmem %s615_s17, 4096  ;;  %s647_s4 = int_to_ptr.vmem [resolvable:$true] %s646_s4 }
  0x6d   : > { %p5974_p2 = scmp.ne.s32.totalorder %s615_s17, %s5973_s24  ;;  %p5981_p9 = scmp.lt.s32.totalorder %s615_s17, %s615_s17 }
  0x6e   : > { %p5982_p11 = scmp.lt.s32.totalorder %s5973_s24, %s5973_s24 }
  0x6f   : > { %p5976_p5 = pnand %p5974_p2, %p6365_p7 }
  0x70   : > { %5106 = dma.hbm_to_vmem [thread:$0]  (!%p6357_p6), %s6927_s19, 4096, %s585_s20, [#allocation9], %s6196_s26, %s6196_s26, %s6197_s25  }
  0x71   : > { %p5977_p8 = pneg %p5976_p5  ;;  %p5983_p10 = por %p5982_p11, %p5981_p9 }
  0x73   : > { %p5984_p12 = pnand %p5983_p10, %p5977_p8 }
  0x75   : > { %5987 = shalt.err (!%p5984_p12)
}
  0x76   : > { %s6928_s8 = sld [smem:[#allocation37_spill]]  ;;  %s5999_s21 = scalar_lea.vmem %s647_s4, 4096 }
  0x77   : > { %p6000_p13 = scmp.ne.s32.totalorder %s647_s4, %s5999_s21  ;;  %p6007_p1 = scmp.lt.s32.totalorder %s647_s4, %s647_s4 }
  0x78   : > { %p6008_p2 = scmp.lt.s32.totalorder %s5999_s21, %s5999_s21 }
  0x79   : > { %p6002_p0 = pnand %p6000_p13, %p6365_p7 }
  0x7a   : > { %p6009_p5 = por %p6008_p2, %p6007_p1 }
  0x7b   : > { %p6003_p4 = pneg %p6002_p0 }
  0x7c   : > { %5112 = dma.hbm_to_vmem [thread:$0]  (!%p6357_p6), %s6928_s8, 4096, %s615_s17, [#allocation12], %s6196_s26, %s6196_s26, %s6197_s25  }
  0x7d   : > { %p6010_p8 = pnand %p6009_p5, %p6003_p4 }
  0x7f   : > { %6013 = shalt.err (!%p6010_p8)
}
  0x80   : > { %s6929_s12 = sld [smem:[#allocation39_spill]]  ;;  %s6200_s17 = smov [#allocation19]  }
  0x81   : > { %s684_s0 = sshll.u32 %s6200_s17, 4  ;;  %s685_s0 = int_to_ptr.vmem [resolvable:$true] %s684_s0 }
  0x82   : > { %s6025_s24 = scalar_lea.vmem %s685_s0, 8192  ;;  %p6033_p12 = scmp.lt.s32.totalorder %s685_s0, %s685_s0 }
  0x83   : > { %p6026_p9 = scmp.ne.s32.totalorder %s685_s0, %s6025_s24  ;;  %p6034_p13 = scmp.lt.s32.totalorder %s6025_s24, %s6025_s24 }
  0x85   : > { %p6028_p11 = pnand %p6026_p9, %p6365_p7  ;;  %p6035_p0 = por %p6034_p13, %p6033_p12 }
  0x86   : > { %5118 = dma.hbm_to_vmem [thread:$0]  (!%p6357_p6), %s6929_s12, 4096, %s647_s4, [#allocation15], %s6196_s26, %s6196_s26, %s6197_s25  }
  0x87   : > { %p6029_p10 = pneg %p6028_p11 }
  0x89   : > { %p6036_p4 = pnand %p6035_p0, %p6029_p10 }
  0x8b   : > { %6039 = shalt.err (!%p6036_p4)
}
  0x8c   : > { %s6930_s18 = sld [smem:[#allocation42_spill]]  ;;  %s4564_s6 = sadd.s32 4294967294, %s6184_s30  }
  0x8d   : > { %s6457_s2 = sadd.s32 1, %s6184_s30   ;;  %s52_s27 = sadd.s32 1, %s6180_s29 }
  0x8e   : > { %s49_s21 = ssub.s32 %s6184_s30, %s6457_s2  ;;  %p59_p7 = scmp.ne.s32.totalorder %s6180_s29, %s6176_s28 }
  0x8f   : > { %p50_p1 = scmp.eq.s32.totalorder %s49_s21, 0  ;;  %p60_p2 = scmp.eq.s32.totalorder %s6184_s30, 0 }
  0x90   : > { %p65_p5 = scmp.ne.s32.totalorder %s6176_s28, %s6172_s3  ;;  %p535_p8 = scmp.eq.s32.totalorder %s6343_s23, 1 }
  0x91   : > { %s6469_s19 = scalar_select %p50_p1, %s6180_s29, %s52_s27  }
  0x92   : > { %5124 = dma.hbm_to_vmem [thread:$0]  (!%p6357_p6), %s6930_s18, 8192, %s685_s0, [#allocation18], %s6196_s26, %s6196_s26, %s6197_s25  }
  0x93   : > { %6931 = sst [smem:[#allocation29_spill]] %s6469_s19  ;;  %p61_p9 = por %p60_p2, %p59_p7 }
  0x94   : > { %p6932_p11 = scmp.eq.s32.totalorder %s6343_s23, 0  ;;  %p6477_p6 = por %p535_p8, %p59_p7 }
  0x95   : > { %p541_p12 = scmp.eq.s32.totalorder %s4564_s6, 1  ;;  %p5145_p13 = scmp.lt.s32.totalorder %s6184_s30, 2 }
  0x96   : > { %p6473_p10 = por %p6932_p11, %p65_p5  ;;  %s6483_s25 = sand.u32 1, %s6180_s29  }
  0x97   : > { %s6934_s26 = scalar_select %p6477_p6, 1, 0 }
  0x98   : > { %s6933_s22 = scalar_select %p6473_p10, 1, 0 }
  0x99   : > { %p6485_p0 = por %p541_p12, %p65_p5  ;;  %s4576_s0 = sshll.u32 %s6483_s25, 4 }
  0x9a   : > { %s4988_s24 = sshll.u32 %s6184_s30, 8  ;;  %s6936_s27 = sld [smem:[#allocation30_spill]] }
  0x9b   : > { %s6935_s17 = scalar_select %p6485_p0, 1, 0 }
  0x9c   : > { %s711_s6 = scalar_lea.vmem [#allocation2], %s4576_s0  ;;  %p6496_p4 = pnand %p5145_p13, %p61_p9 }
  0x9d   : > { %s719_s5 = sshll.u32 %s711_s6, 4  ;;  %s4579_s10 = sshll.u32 %s6483_s25, 5  ;;  %s720_s5 = int_to_ptr.vmem [resolvable:$true] %s719_s5 }
  0x9e   : > { %s708_s12 = scalar_lea.sflag [#allocation3], %s6483_s25  ;;  %p6042_p1 = pneg %p6496_p4 }
  0xa0   : > { %s6494_s21 = scalar_lea.hbm %s6936_s27, %s4988_s24  ;;  %s6045_s20 = scalar_lea.hbm %s6936_s27, 512 }
  0xa1   : > { %s6040_s16 = scalar_lea.hbm %s6494_s21, 256  ;;  %p6046_p8 = scmp.lt.s32.totalorder %s6494_s21, %s6936_s27 }
  0xa2   : > { %p6041_p7 = scmp.ne.s32.totalorder %s6494_s21, %s6040_s16  ;;  %p6047_p9 = scmp.lt.s32.totalorder %s6045_s20, %s6040_s16 }
  0xa4   : > { %p6043_p2 = pnand %p6042_p1, %p6041_p7  ;;  %p6048_p11 = por %p6047_p9, %p6046_p8 }
  0xa6   : > { %p6044_p5 = pneg %p6043_p2 }
  0xa8   : > { %p6049_p12 = pnand %p6048_p11, %p6044_p5 }
  0xaa   : > { %6052 = shalt.err (!%p6049_p12)
}
  0xab   : > { %s6053_s25 = scalar_lea.vmem %s720_s5, 256  ;;  %s6201_s18 = smov [#allocation2]  }
  0xac   : > { %p6054_p13 = scmp.ne.s32.totalorder %s720_s5, %s6053_s25  ;;  %s6058_s19 = sshll.u32 %s6201_s18, 4  ;;  %s6059_s19 = int_to_ptr.vmem [resolvable:$false] %s6058_s19 }
  0xad   : > { %s6060_s24 = scalar_lea.vmem %s6059_s19, 512  ;;  %p6061_p2 = scmp.lt.s32.totalorder %s720_s5, %s6059_s19 }
  0xae   : > { %p6056_p0 = pnand %p6054_p13, %p6042_p1  ;;  %p6062_p6 = scmp.lt.s32.totalorder %s6060_s24, %s6053_s25 }
  0xb0   : > { %p6057_p7 = pneg %p6056_p0  ;;  %p6063_p10 = por %p6062_p6, %p6061_p2 }
  0xb2   : > { %p6064_p3 = pnand %p6063_p10, %p6057_p7 }
  0xb4   : > { %6067 = shalt.err (!%p6064_p3)
}
  0xb5   : > { %5128 = dma.hbm_to_vmem [thread:$0]  (!%p6496_p4), %s6494_s21, 256, %s720_s5, %s708_s12  }
  0xb6   : > { %s730_s16 = scalar_lea.vmem [#allocation5], %s4579_s10  ;;  %s726_s20 = sand.u32 1, %s6184_s30  }
  0xb7   : > { %s737_s0 = sshll.u32 %s730_s16, 4  ;;  %s4989_s18 = sshll.u32 %s6184_s30, 9  ;;  %s6523_s0 = int_to_ptr.vmem [resolvable:$true] %s737_s0 }
  0xb8   : > { %s6938_s19 = sld [smem:[#allocation31_spill]]  ;;  %s727_s24 = scalar_lea.sflag [#allocation6], %s726_s20 }
  0xbe   : > { %s6529_s25 = scalar_lea.hbm %s6938_s19, %s4989_s18  ;;  %s6073_s5 = scalar_lea.hbm %s6938_s19, 1024 }
  0xbf   : > { %s6068_s27 = scalar_lea.hbm %s6529_s25, 512  ;;  %p6074_p0 = scmp.lt.s32.totalorder %s6529_s25, %s6938_s19 }
  0xc0   : > { %p6069_p3 = scmp.ne.s32.totalorder %s6529_s25, %s6068_s27  ;;  %p6075_p5 = scmp.lt.s32.totalorder %s6073_s5, %s6068_s27 }
  0xc2   : > { %p6071_p10 = pnand %p6069_p3, %p6042_p1  ;;  %p6076_p8 = por %p6075_p5, %p6074_p0 }
  0xc4   : > { %p6072_p6 = pneg %p6071_p10 }
  0xc6   : > { %p6077_p9 = pnand %p6076_p8, %p6072_p6 }
  0xc8   : > { %6080 = shalt.err (!%p6077_p9)
}
  0xc9   : > { %s6081_s20 = scalar_lea.vmem %s6523_s0, 512  ;;  %s6202_s18 = smov [#allocation5]  }
  0xca   : > { %p6082_p11 = scmp.ne.s32.totalorder %s6523_s0, %s6081_s20  ;;  %s6086_s4 = sshll.u32 %s6202_s18, 4  ;;  %s6087_s4 = int_to_ptr.vmem [resolvable:$false] %s6086_s4 }
  0xcb   : > { %s6088_s6 = scalar_lea.vmem %s6087_s4, 1024  ;;  %p6089_p7 = scmp.lt.s32.totalorder %s6523_s0, %s6087_s4 }
  0xcc   : > { %p6084_p12 = pnand %p6082_p11, %p6042_p1  ;;  %p6090_p2 = scmp.lt.s32.totalorder %s6088_s6, %s6081_s20 }
  0xce   : > { %p6085_p13 = pneg %p6084_p12  ;;  %p6091_p3 = por %p6090_p2, %p6089_p7 }
  0xd0   : > { %p6092_p10 = pnand %p6091_p3, %p6085_p13 }
  0xd2   : > { %6095 = shalt.err (!%p6092_p10)
}
  0xd3   : > { %s6939_s27 = smov 16   ;;  %s6940_s10 = smov 256  }
  0xd4   : > { %5131 = dma.hbm_to_vmem [thread:$0]  (!%p6496_p4), %s6529_s25, 512, %s6523_s0, %s727_s24, %s6940_s10, %s6940_s10, %s6939_s27  }
  0xd5   : > { %p6941_p1 = scmp.ne.s32.totalorder %s6919_s1, 0 }
  0xd6   : > { %s6559_s12 = sand.u32 (!%p6941_p1), 1, %s6176_s28   ;;  %p6942_p6 = scmp.ne.s32.totalorder (!%p6941_p1), %s6933_s22, 0 }
  0xd7   : > { %749 = sbr.rel (%p6941_p1) target bundleno = 4904 (0x1328), region = 108  ;;  %s4583_s5 = sshll.u32 (!%p6941_p1), %s6559_s12, 4 }
  0xd8   : > { %s752_s21 = scalar_lea.sflag (!%p6941_p1), [#allocation3], %s6559_s12  ;;  %s6565_s8 = scalar_lea.vmem (!%p6941_p1), [#allocation2], %s4583_s5 }
  0xdc   : > { %6139 = dma.done.wait (%p6942_p6), %s752_s21, 256  }
  0xdd   : > { %6141 = vsyncadd (%p6942_p6), %s752_s21, 4294967040  ;;  %s760_s1 = sand.u32 1, %s6343_s23   ;;  %s4584_s0 = sshll.u32 %s6559_s12, 5 }
  0xde   : > { %s761_s25 = scalar_lea.sflag [#allocation6], %s760_s1  ;;  %s6573_s24 = scalar_lea.vmem [#allocation5], %s4584_s0 }
  0xdf   : > { %6143 = dma.done.wait (%p6942_p6), %s761_s25, 512  }
  0xe0   : > { %6145 = vsyncadd (%p6942_p6), %s761_s25, 4294966784  ;;  %p6943_p4 = scmp.eq.s32.totalorder %s6343_s23, 0 }
  0xe2   : > { %6147 = dma.done.wait (%p6943_p4), [#allocation6], 12288   ;;  %p6944_p0 = pmov %p6943_p4 }
  0xe4   : > { %6149 = vsyncadd (%p6944_p0), [#allocation6], 4294955008  ;;  %p6945_p5 = pmov %p6944_p0 }
  0xe5   : > { %p6946_p8 = pmov %p6944_p0 }
  0xe6   : > { %6151 = dma.done.wait (%p6945_p5), [#allocation9], 4192  }
  0xe7   : > { %6153 = vsyncadd (%p6946_p8), [#allocation9], 4294963104  ;;  %p6947_p9 = pmov %p6944_p0 }
  0xe8   : > { %p6948_p11 = pmov %p6944_p0 }
  0xe9   : > { %6155 = dma.done.wait (%p6947_p9), [#allocation12], 4128  }
  0xea   : > { %6157 = vsyncadd (%p6948_p11), [#allocation12], 4294963168  ;;  %p6949_p12 = pmov %p6944_p0 }
  0xeb   : > { %p6950_p13 = pmov %p6944_p0 }
  0xec   : > { %6159 = dma.done.wait (%p6949_p12), [#allocation15], 12288  }
  0xed   : > { %6161 = vsyncadd (%p6950_p13), [#allocation15], 4294955008  ;;  %p6951_p7 = pmov %p6944_p0 }
  0xee   : > { %p6952_p2 = pmov %p6944_p0 }
  0xef   : > { %6163 = dma.done.wait (%p6951_p7), [#allocation18], 16384  }
  0xf0   : > { %6165 = vsyncadd (%p6952_p2), [#allocation18], 4294950912  ;;  %v5206_v0 = vld [vmem:[#allocation7 + $0x15c] ss:$24 sps:$4 sm:$0xff]   ;;  %v5208_v1 = vld [vmem:[#allocation7 + $0x158] ss:$24 sps:$4 sm:$0xff]  }
  0xf1   : > { %1530 = vmatprep.subr.bf16.mxu1 %v5206_v0  ;;  %v5209_v2 = vld [vmem:[#allocation7 + $0x154] ss:$24 sps:$4 sm:$0xff]   ;;  %v5211_v3 = vld [vmem:[#allocation7 + $0x150] ss:$24 sps:$4 sm:$0xff]   ;;  %v5215_v6 = vld [vmem:[#allocation7 + $0x124] ss:$24 sps:$4 sm:$0xff]  }
  0xf2   : > { %1531 = vmatpush1.bf16.msra.mxu1 %v5208_v1  ;;  %v5212_v4 = vld [vmem:[#allocation7 + $0x12c] ss:$24 sps:$4 sm:$0xff]   ;;  %v5214_v5 = vld [vmem:[#allocation7 + $0x128] ss:$24 sps:$4 sm:$0xff]   ;;  %1489 = vmatprep.subr.bf16.mxu0 %v5209_v2  ;;  %v5218_v8 = vld [vmem:[#allocation7 + $0xfc] ss:$24 sps:$4 sm:$0xff]  }
  0xf3   : > { %1490 = vmatpush1.bf16.msra.mxu0 %v5211_v3  ;;  %1532 = vmatprep.subr.bf16.mxu1 %v5212_v4  ;;  %v5217_v7 = vld [vmem:[#allocation7 + $0x120] ss:$24 sps:$4 sm:$0xff]   ;;  %v5221_v10 = vld [vmem:[#allocation7 + $0xf4] ss:$24 sps:$4 sm:$0xff]   ;;  %v5223_v12 = vld [vmem:[#allocation7 + $0xf0] ss:$24 sps:$4 sm:$0xff]  }
  0xf4   : > { %1491 = vmatprep.subr.bf16.mxu0 %v5215_v6  ;;  %v5220_v9 = vld [vmem:[#allocation7 + $0xf8] ss:$24 sps:$4 sm:$0xff]   ;;  %v5224_v11 = vld [vmem:[#allocation7 + $0xcc] ss:$24 sps:$4 sm:$0xff]   ;;  %v5226_v14 = vld [vmem:[#allocation7 + $0xc8] ss:$24 sps:$4 sm:$0xff]  }
  0xf5   : > { %v5227_v13 = vld [vmem:[#allocation7 + $0xc4] ss:$24 sps:$4 sm:$0xff]   ;;  %v5229_v16 = vld [vmem:[#allocation7 + $0xc0] ss:$24 sps:$4 sm:$0xff]   ;;  %v5233_v17 = vld [vmem:[#allocation7 + $0x94] ss:$24 sps:$4 sm:$0xff]  }
  0xf6   : > { %1533 = vmatpush1.bf16.msra.mxu1 %v5214_v5  ;;  %v5230_v15 = vld [vmem:[#allocation7 + $0x9c] ss:$24 sps:$4 sm:$0xff]   ;;  %v5232_v18 = vld [vmem:[#allocation7 + $0x98] ss:$24 sps:$4 sm:$0xff]   ;;  %v5236_v19 = vld [vmem:[#allocation7 + $0x6c] ss:$24 sps:$4 sm:$0xff]   ;;  %v873_v5 = vlaneseq }
  0xf7   : > { %1534 = vmatprep.subr.bf16.mxu1 %v5218_v8  ;;  %1492 = vmatpush1.bf16.msra.mxu0 %v5217_v7  ;;  %v5235_v20 = vld [vmem:[#allocation7 + $0x90] ss:$24 sps:$4 sm:$0xff]   ;;  %v5239_v21 = vld [vmem:[#allocation7 + $0x64] ss:$24 sps:$4 sm:$0xff]   ;;  %v5241_v24 = vld [vmem:[#allocation7 + $0x60] ss:$24 sps:$4 sm:$0xff]  }
  0xf8   : > { %1493 = vmatprep.subr.bf16.mxu0 %v5221_v10  ;;  %v5238_v22 = vld [vmem:[#allocation7 + $0x68] ss:$24 sps:$4 sm:$0xff]   ;;  %v5242_v23 = vld [vmem:[#allocation7 + $0x3c] ss:$24 sps:$4 sm:$0xff]   ;;  %v5244_v26 = vld [vmem:[#allocation7 + $0x38] ss:$24 sps:$4 sm:$0xff]  }
  0xf9   : > { %v5245_v25 = vld [vmem:[#allocation7 + $0x34] ss:$24 sps:$4 sm:$0xff]   ;;  %v5247_v28 = vld [vmem:[#allocation7 + $0x30] ss:$24 sps:$4 sm:$0xff]   ;;  %v5251_v29 = vld [vmem:[#allocation7 + $0x4] ss:$24 sps:$4 sm:$0xff]  }
  0xfa   : > { %1535 = vmatpush1.bf16.msra.mxu1 %v5220_v9  ;;  %v5248_v27 = vld [vmem:[#allocation7 + $0xc] ss:$24 sps:$4 sm:$0xff]   ;;  %v5250_v30 = vld [vmem:[#allocation7 + $0x8] ss:$24 sps:$4 sm:$0xff]   ;;  %v5254_v31 = vld [vmem:[#allocation7 + $0x2dc] ss:$24 sps:$4 sm:$0xff]  }
  0xfb   : > { %1536 = vmatprep.subr.bf16.mxu1 %v5224_v11  ;;  %1494 = vmatpush1.bf16.msra.mxu0 %v5223_v12  ;;  %v5253_v32 = vld [vmem:[#allocation7] ss:$24 sps:$4 sm:$0xff]   ;;  %v5257_v33 = vld [vmem:[#allocation7 + $0x2d4] ss:$24 sps:$4 sm:$0xff]   ;;  %v5259_v36 = vld [vmem:[#allocation7 + $0x2d0] ss:$24 sps:$4 sm:$0xff]  }
  0xfc   : > { %1495 = vmatprep.subr.bf16.mxu0 %v5227_v13  ;;  %v5256_v34 = vld [vmem:[#allocation7 + $0x2d8] ss:$24 sps:$4 sm:$0xff]   ;;  %v5260_v35 = vld [vmem:[#allocation7 + $0x2ac] ss:$24 sps:$4 sm:$0xff]   ;;  %v5262_v38 = vld [vmem:[#allocation7 + $0x2a8] ss:$24 sps:$4 sm:$0xff]  }
  0xfd   : > { %v5263_v37 = vld [vmem:[#allocation7 + $0x2a4] ss:$24 sps:$4 sm:$0xff]   ;;  %v5265_v40 = vld [vmem:[#allocation7 + $0x2a0] ss:$24 sps:$4 sm:$0xff]   ;;  %v5269_v41 = vld [vmem:[#allocation7 + $0x274] ss:$24 sps:$4 sm:$0xff]  }
  0xfe   : > { %1537 = vmatpush1.bf16.msra.mxu1 %v5226_v14  ;;  %v5266_v39 = vld [vmem:[#allocation7 + $0x27c] ss:$24 sps:$4 sm:$0xff]   ;;  %v5268_v42 = vld [vmem:[#allocation7 + $0x278] ss:$24 sps:$4 sm:$0xff]   ;;  %v5272_v43 = vld [vmem:[#allocation7 + $0x24c] ss:$24 sps:$4 sm:$0xff]  }
  0xff   : > { %1538 = vmatprep.subr.bf16.mxu1 %v5230_v15  ;;  %1496 = vmatpush1.bf16.msra.mxu0 %v5229_v16  ;;  %v5271_v44 = vld [vmem:[#allocation7 + $0x270] ss:$24 sps:$4 sm:$0xff]   ;;  %v5275_v46 = vld [vmem:[#allocation7 + $0x244] ss:$24 sps:$4 sm:$0xff]   ;;  %v5277_v48 = vld [vmem:[#allocation7 + $0x240] ss:$24 sps:$4 sm:$0xff]  }
 0x100   : > { %1497 = vmatprep.subr.bf16.mxu0 %v5233_v17  ;;  %v5274_v45 = vld [vmem:[#allocation7 + $0x248] ss:$24 sps:$4 sm:$0xff]   ;;  %v5278_v49 = vld [vmem:[#allocation7 + $0x21c] ss:$24 sps:$4 sm:$0xff]   ;;  %v5280_v52 = vld [vmem:[#allocation7 + $0x218] ss:$24 sps:$4 sm:$0xff]  }
 0x101   : > { %v868_v47 = vld [vmem:[%s6565_s8 + $0x8] sm:$0xff]  ;;  %v867_v1 = vld [vmem:[%s6565_s8] sm:$0xff]  ;;  %v6203_v4 = vmov 0.0   ;;  %vm6204_vm0 = vmmov 0   ;;  %v6609_v6 = vshrl.u32 %v873_v5, 7  ;;  %vm1657_vm2 = vcmask 64512  }
 0x102   : > { %1539 = vmatpush1.bf16.msra.mxu1 %v5232_v18  ;;  %v880_v50 = vpack.c.bf16 %v868_v47, %v868_v47  ;;  %v5281_v51 = vld [vmem:[#allocation7 + $0x214] ss:$24 sps:$4 sm:$0xff]   ;;  %v5283_v54 = vld [vmem:[#allocation7 + $0x210] ss:$24 sps:$4 sm:$0xff]   ;;  %v5287_v55 = vld [vmem:[#allocation7 + $0x1e4] ss:$24 sps:$4 sm:$0xff]   ;;  %v6601_v3 = vpack.c.bf16 %v867_v1, %v867_v1 }
 0x103   : > { %1540 = vmatprep.subr.bf16.mxu1 %v5236_v19  ;;  %1498 = vmatpush1.bf16.msra.mxu0 %v5235_v20  ;;  %v5284_v53 = vld [vmem:[#allocation7 + $0x1ec] ss:$24 sps:$4 sm:$0xff]   ;;  %v5286_v56 = vld [vmem:[#allocation7 + $0x1e8] ss:$24 sps:$4 sm:$0xff]   ;;  %v5290_v57 = vld [vmem:[#allocation7 + $0x1bc] ss:$24 sps:$4 sm:$0xff]  }
 0x104   : > { %1499 = vmatprep.subr.bf16.mxu0 %v5239_v21  ;;  %1562 = vmatprep.mubr.bf16.mxu1 %v880_v50  ;;  %v5289_v58 = vld [vmem:[#allocation7 + $0x1e0] ss:$24 sps:$4 sm:$0xff]   ;;  %v5293_v59 = vld [vmem:[#allocation7 + $0x1b4] ss:$24 sps:$4 sm:$0xff]   ;;  %v5295_v62 = vld [vmem:[#allocation7 + $0x1b0] ss:$24 sps:$4 sm:$0xff]  }
 0x105   : > { %1521 = vmatprep.mubr.bf16.mxu0 %v880_v50  ;;  %v5292_v60 = vld [vmem:[#allocation7 + $0x1b8] ss:$24 sps:$4 sm:$0xff]   ;;  %v5296_v61 = vld [vmem:[#allocation7 + $0x18c] ss:$24 sps:$4 sm:$0xff]   ;;  %v5298_v0 = vld [vmem:[#allocation7 + $0x188] ss:$24 sps:$4 sm:$0xff]  }
 0x106   : > { %1541 = vmatpush1.bf16.msra.mxu1 %v5238_v22  ;;  %v5299_v63 = vld [vmem:[#allocation7 + $0x184] ss:$24 sps:$4 sm:$0xff]   ;;  %v5301_v2 = vld [vmem:[#allocation7 + $0x180] ss:$24 sps:$4 sm:$0xff]   ;;  %v6612_v7 = vsub.s32 2, %v6609_v6  ;;  %v6617_v9 = vsub.s32 0, %v6609_v6 }
 0x107   : > { %1542 = vmatprep.subr.bf16.mxu1 %v5242_v23  ;;  %1500 = vmatpush1.bf16.msra.mxu0 %v5241_v24  ;;  %v6614_v8 = vld [vmem:[#allocation8] sm:$0x3f]  ;;  %v5335_v47 = vld [vmem:[#allocation7 + $0x250] ss:$24 sps:$4 sm:$0xff]   ;;  %vm1673_vm3 = vcmask 1043456   ;;  %s6953_s20 = sld [smem:[#allocation36_spill]] }
 0x108   : > { %1501 = vmatprep.subr.bf16.mxu0 %v5245_v25  ;;  %v990_v10 = vrot.slane %v6614_v8, %v6612_v7  ;;  %v982_v12 = vrot.slane %v6614_v8, %v6617_v9  ;;  %v5302_v24 = vld [vmem:[#allocation7 + $0x160] ss:$24 sps:$4 sm:$0xff]   ;;  %v5304_v25 = vld [vmem:[#allocation7 + $0x164] ss:$24 sps:$4 sm:$0xff]   ;;  %vm2899_vm4 = vcmask 130048   ;;  %s6954_s18 = sld [smem:[#allocation41_spill]] }
 0x109   : > { %s6955_s27 = sld [smem:[#allocation43_spill]]  ;;  %s865_s22 = scalar_lea.vmem [#allocation20], %s4583_s5 }
 0x10a   : > { %1543 = vmatpush1.bf16.msra.mxu1 %v5244_v26  ;;  %v5307_v26 = vld [vmem:[#allocation7 + $0x134] ss:$24 sps:$4 sm:$0xff]   ;;  %s6957_s25 = sld [smem:[#allocation45_spill]]  ;;  %s4386_s16 = sshll.u32 %s865_s22, 4  ;;  %s4387_s16 = int_to_ptr.vmem [resolvable:$true] %s4386_s16 }
 0x10b   : > { %1544 = vmatprep.subr.bf16.mxu1 %v5248_v27  ;;  %1502 = vmatpush1.bf16.msra.mxu0 %v5247_v28  ;;  %v5305_v27 = vld [vmem:[#allocation7 + $0x130] ss:$24 sps:$4 sm:$0xff]   ;;  %v5310_v28 = vld [vmem:[#allocation7 + $0x104] ss:$24 sps:$4 sm:$0xff]   ;;  %s6958_s4 = sld [smem:[#allocation46_spill]]  ;;  %s6096_s10 = scalar_lea.vmem %s4387_s16, 256 }
 0x10c   : > { %1503 = vmatprep.subr.bf16.mxu0 %v5251_v29  ;;  %v5308_v29 = vld [vmem:[#allocation7 + $0x100] ss:$24 sps:$4 sm:$0xff]   ;;  %p6097_p3 = scmp.ne.s32.totalorder %s4387_s16, %s6096_s10  ;;  %p6959_p10 = scmp.ne.s32.totalorder %s6934_s26, 0 }
 0x10e   : > { %1545 = vmatpush1.bf16.msra.mxu1 %v5250_v30  ;;  %v5313_v30 = vld [vmem:[#allocation7 + $0xd4] ss:$24 sps:$4 sm:$0xff]   ;;  %p6098_p1 = pnand %p6097_p3, %p6959_p10 }
 0x10f   : > { %1546 = vmatprep.subr.bf16.mxu1 %v5254_v31  ;;  %1504 = vmatpush1.bf16.msra.mxu0 %v5253_v32  ;;  %v5311_v31 = vld [vmem:[#allocation7 + $0xd0] ss:$24 sps:$4 sm:$0xff]   ;;  %v5316_v32 = vld [vmem:[#allocation7 + $0xa4] ss:$24 sps:$4 sm:$0xff]  }
 0x110   : > { %1505 = vmatprep.subr.bf16.mxu0 %v5257_v33  ;;  %v5314_v33 = vld [vmem:[#allocation7 + $0xa0] ss:$24 sps:$4 sm:$0xff]   ;;  %p6099_p6 = pneg %p6098_p1 }
 0x112   : > { %1547 = vmatpush2.bf16.msra.mxu1 %v5256_v34  ;;  %v5319_v34 = vld [vmem:[#allocation7 + $0x74] ss:$24 sps:$4 sm:$0xff]  }
 0x113   : > { %1548 = vmatprep.subr.bf16.mxu1 %v5260_v35  ;;  %1506 = vmatpush2.bf16.msra.mxu0 %v5259_v36  ;;  %v5317_v35 = vld [vmem:[#allocation7 + $0x70] ss:$24 sps:$4 sm:$0xff]   ;;  %v5322_v36 = vld [vmem:[#allocation7 + $0x44] ss:$24 sps:$4 sm:$0xff]  }
 0x114   : > { %1507 = vmatprep.subr.bf16.mxu0 %v5263_v37  ;;  %v5320_v37 = vld [vmem:[#allocation7 + $0x40] ss:$24 sps:$4 sm:$0xff]  }
 0x116   : > { %1549 = vmatpush2.bf16.msra.mxu1 %v5262_v38  ;;  %v5325_v38 = vld [vmem:[#allocation7 + $0x14] ss:$24 sps:$4 sm:$0xff]  }
 0x117   : > { %1550 = vmatprep.subr.bf16.mxu1 %v5266_v39  ;;  %1508 = vmatpush2.bf16.msra.mxu0 %v5265_v40  ;;  %v5323_v39 = vld [vmem:[#allocation7 + $0x10] ss:$24 sps:$4 sm:$0xff]   ;;  %v5328_v40 = vld [vmem:[#allocation7 + $0x2e4] ss:$24 sps:$4 sm:$0xff]  }
 0x118   : > { %1509 = vmatprep.subr.bf16.mxu0 %v5269_v41  ;;  %v5326_v41 = vld [vmem:[#allocation7 + $0x2e0] ss:$24 sps:$4 sm:$0xff]  }
 0x11a   : > { %1551 = vmatpush2.bf16.msra.mxu1 %v5268_v42  ;;  %v5331_v42 = vld [vmem:[#allocation7 + $0x2b4] ss:$24 sps:$4 sm:$0xff]  }
 0x11b   : > { %1552 = vmatprep.subr.bf16.mxu1 %v5272_v43  ;;  %1510 = vmatpush2.bf16.msra.mxu0 %v5271_v44  ;;  %v5329_v43 = vld [vmem:[#allocation7 + $0x2b0] ss:$24 sps:$4 sm:$0xff]   ;;  %v5334_v44 = vld [vmem:[#allocation7 + $0x284] ss:$24 sps:$4 sm:$0xff]  }
 0x11c   : > { %1511 = vmatprep.subr.bf16.mxu0 %v5275_v46  ;;  %v5337_v46 = vld [vmem:[#allocation7 + $0x254] ss:$24 sps:$4 sm:$0xff]  }
 0x11e   : > { %1553 = vmatpush2.bf16.msra.mxu1 %v5274_v45  ;;  %v5332_v45 = vld [vmem:[#allocation7 + $0x280] ss:$24 sps:$4 sm:$0xff]  }
 0x11f   : > { %1554 = vmatprep.subr.bf16.mxu1 %v5278_v49  ;;  %1512 = vmatpush2.bf16.msra.mxu0 %v5277_v48  ;;  %v5340_v48 = vld [vmem:[#allocation7 + $0x224] ss:$24 sps:$4 sm:$0xff]   ;;  %v5338_v49 = vld [vmem:[#allocation7 + $0x220] ss:$24 sps:$4 sm:$0xff]  }
 0x120   : > { %1513 = vmatprep.subr.bf16.mxu0 %v5281_v51  ;;  %v5341_v51 = vld [vmem:[#allocation7 + $0x1f0] ss:$24 sps:$4 sm:$0xff]  }
 0x122   : > { %1555 = vmatpush2.bf16.msra.mxu1 %v5280_v52  ;;  %v5346_v52 = vld [vmem:[#allocation7 + $0x1c4] ss:$24 sps:$4 sm:$0xff]  }
 0x123   : > { %1556 = vmatprep.subr.bf16.mxu1 %v5284_v53  ;;  %1514 = vmatpush2.bf16.msra.mxu0 %v5283_v54  ;;  %v5344_v53 = vld [vmem:[#allocation7 + $0x1c0] ss:$24 sps:$4 sm:$0xff]   ;;  %v5349_v54 = vld [vmem:[#allocation7 + $0x194] ss:$24 sps:$4 sm:$0xff]  }
 0x124   : > { %1515 = vmatprep.subr.bf16.mxu0 %v5287_v55  ;;  %v5347_v55 = vld [vmem:[#allocation7 + $0x190] ss:$24 sps:$4 sm:$0xff]  }
 0x126   : > { %1557 = vmatpush2.bf16.msra.mxu1 %v5286_v56  ;;  %v876_v56 = vand.u32 127, %v873_v5 }
 0x127   : > { %1558 = vmatprep.subr.bf16.mxu1 %v5290_v57  ;;  %1516 = vmatpush2.bf16.msra.mxu0 %v5289_v58  ;;  %v6205_v58 = vmov -1e+09  }
 0x128   : > { %1517 = vmatprep.subr.bf16.mxu0 %v5293_v59  ;;  %vm877_vm1 = vcmp.ge.s32.totalorder %v6609_v6, %v876_v56  ;;  %v5350_v56 = vld [vmem:[#allocation10 + $0x70] ss:$8 sps:$4 sm:$0xff]  }
 0x129   : > { %v878_v59 = vsel %vm877_vm1, 0.0, %v6205_v58  ;;  %v5355_v58 = vld [vmem:[#allocation10 + $0x64] ss:$8 sps:$4 sm:$0xff]  }
 0x12a   : > { %1559 = vmatpush2.bf16.msra.mxu1 %v5292_v60 }
 0x12b   : > { %1560 = vmatprep.subr.bf16.mxu1 %v5296_v61  ;;  %1518 = vmatpush2.bf16.msra.mxu0 %v5295_v62 }
 0x12c   : > { %1519 = vmatprep.subr.bf16.mxu0 %v5299_v63 }
 0x12e   : > { %1561 = vmatpush2.bf16.msra.mxu1 %v5298_v0 }
 0x12f   : > { %1520 = vmatpush2.bf16.msra.mxu0 %v5301_v2  ;;  %5007 = vmatprep.subr.bf16.mxu1 %v6203_v4  ;;  %v997_v2 = vsub.s32 4, %v6609_v6 }
 0x130   : > { %1571 = vmatprep.subr.bf16.mxu0 %v5304_v25 }
 0x131   : > { %1563 = vmatmul.mubr.bf16.vlgmr.msra.gmra.mxu1 %v6601_v3 }
 0x132   : > { %1522 = vmatmul.mubr.bf16.vlgmr.msra.gmra.mxu0 %v6601_v3  ;;  %5009 = vmatprep.mubr.msk.bf16.mxu1 %vm6204_vm0, %v6203_v4 }
 0x133   : > { %1603 = vmatprep.mubr.bf16.mxu0 %v880_v50  ;;  %1572 = vmatpush1.bf16.msra.mxu0 %v5302_v24  ;;  %v5343_v50 = vld [vmem:[#allocation7 + $0x1f4] ss:$24 sps:$4 sm:$0xff]  }
 0x134   : > { %1573 = vmatprep.subr.bf16.mxu0 %v5307_v26 }
 0x137   : > { %1574 = vmatpush1.bf16.msra.mxu0 %v5305_v27 }
 0x138   : > { %1575 = vmatprep.subr.bf16.mxu0 %v5310_v28 }
 0x13b   : > { %1576 = vmatpush1.bf16.msra.mxu0 %v5308_v29  ;;  %v6643_v29 = vsub.s32 3, %v6609_v6 }
 0x13c   : > { %1577 = vmatprep.subr.bf16.mxu0 %v5313_v30 }
 0x13d   : > { %v994_v30 = vrot.slane %v6614_v8, %v6643_v29 }
 0x13f   : > { %1578 = vmatpush1.bf16.msra.mxu0 %v5311_v31  ;;  %v6648_v31 = vsub.s32 1, %v6609_v6 }
 0x140   : > { %1579 = vmatprep.subr.bf16.mxu0 %v5316_v32 }
 0x143   : > { %1580 = vmatpush1.bf16.msra.mxu0 %v5314_v33 }
 0x144   : > { %1581 = vmatprep.subr.bf16.mxu0 %v5319_v34 }
 0x147   : > { %1582 = vmatpush1.bf16.msra.mxu0 %v5317_v35  ;;  %v986_v35 = vrot.slane %v6614_v8, %v6648_v31 }
 0x148   : > { %1583 = vmatprep.subr.bf16.mxu0 %v5322_v36 }
 0x14b   : > { %1584 = vmatpush1.bf16.msra.mxu0 %v5320_v37 }
 0x14c   : > { %1585 = vmatprep.subr.bf16.mxu0 %v5325_v38 }
 0x14f   : > { %1586 = vmatpush1.bf16.msra.mxu0 %v5323_v39 }
 0x150   : > { %1587 = vmatprep.subr.bf16.mxu0 %v5328_v40 }
 0x153   : > { %1588 = vmatpush2.bf16.msra.mxu0 %v5326_v41 }
 0x154   : > { %1589 = vmatprep.subr.bf16.mxu0 %v5331_v42 }
 0x157   : > { %1590 = vmatpush2.bf16.msra.mxu0 %v5329_v43 }
 0x158   : > { %1591 = vmatprep.subr.bf16.mxu0 %v5334_v44 }
 0x15b   : > { %1592 = vmatpush2.bf16.msra.mxu0 %v5332_v45 }
 0x15c   : > { %1593 = vmatprep.subr.bf16.mxu0 %v5337_v46 }
 0x15f   : > { %1594 = vmatpush2.bf16.msra.mxu0 %v5335_v47 }
 0x160   : > { %1595 = vmatprep.subr.bf16.mxu0 %v5340_v48 }
 0x163   : > { %1596 = vmatpush2.bf16.msra.mxu0 %v5338_v49 }
 0x164   : > { %1597 = vmatprep.subr.bf16.mxu0 %v5343_v50 }
 0x167   : > { %1598 = vmatpush2.bf16.msra.mxu0 %v5341_v51 }
 0x168   : > { %1599 = vmatprep.subr.bf16.mxu0 %v5346_v52  ;;  %v5352_v52 = vld [vmem:[#allocation10 + $0x74] ss:$8 sps:$4 sm:$0xff]  }
 0x16b   : > { %1600 = vmatpush2.bf16.msra.mxu0 %v5344_v53 }
 0x16c   : > { %1601 = vmatprep.subr.bf16.mxu0 %v5349_v54 }
 0x16f   : > { %1602 = vmatpush2.bf16.msra.mxu0 %v5347_v55 }
 0x172   : > { %1604 = vmatmul.mubr.bf16.vlgmr.msra.gmra.mxu0 %v6601_v3  ;;  %v998_v3 = vrot.slane %v6614_v8, %v997_v2  ;;  %v5367_v2 = vld [vmem:[#allocation10 + $0x24] ss:$8 sps:$4 sm:$0xff]  }
 0x1f1   : > { %v1564_v11 = vpop.f32.mrf.mxu1 }
 0x1f2   : > { %v1565_v13 = vadd.f32 %v1564_v11, %v990_v10  ;;  %v1523_v14 = vpop.f32.mrf.mxu0 }
 0x1f3   : > { %v6623_v15 = vpop.f32.mrf.mxu1  ;;  %v1524_v17 = vadd.f32 %v1523_v14, %v982_v12 }
 0x1f4   : > { %v1613_v16 = vpack.c.bf16 %v1565_v13, %v1565_v13  ;;  %v6625_v18 = vpop.f32.mrf.mxu0  ;;  %v1567_v33 = vadd.f32 %v6623_v15, %v994_v30  ;;  %v5397_v30 = vld [vmem:[#allocation10 + $0x84] ss:$8 sps:$4 sm:$0xff]  }
 0x1f5   : > { %v1568_v19 = vpop.f32.mrf.mxu1  ;;  %v1612_v22 = vpack.c.bf16 %v1524_v17, %v1524_v17  ;;  %v1526_v38 = vadd.f32 %v6625_v18, %v986_v35 }
 0x1f6   : > { %5008 = vmatpush3.bf16.xpose.msra.mxu1 %v1613_v16  ;;  %v1527_v20 = vpop.f32.mrf.mxu0  ;;  %v1718_v37 = vpack.c.bf16 %v1567_v33, %v1567_v33 }
 0x1f7   : > { %v1569_v21 = vpop.f32.mrf.mxu1  ;;  %5013 = vmatprep.subr.bf16.mxu1 %v6203_v4  ;;  %v1001_v20 = vsub.s32 5, %v6609_v6  ;;  %v1717_v6 = vpack.c.bf16 %v1526_v38, %v1526_v38 }
 0x1f8   : > { %v1528_v23 = vpop.f32.mrf.mxu0 }
 0x1fd   : > { %5010 = vmatmul.mubr.bf16.vlgmr.msra.gmra.mxu1 %v1612_v22  ;;  %v1002_v22 = vrot.slane %v6614_v8, %v1001_v20  ;;  %v5380_v20 = vld [vmem:[#allocation10 + $0xd0] ss:$8 sps:$4 sm:$0xff]  }
 0x1fe   : > { %5015 = vmatprep.mubr.msk.bf16.mxu1 %vm6204_vm0, %v6203_v4 }
 0x232   : > { %v1605_v10 = vpop.f32.mrf.mxu0 }
 0x233   : > { %v1606_v5 = vadd.f32 %v1605_v10, %v998_v3  ;;  %v5365_v3 = vld [vmem:[#allocation10 + $0x20] ss:$8 sps:$4 sm:$0xff]   ;;  %v5370_v10 = vld [vmem:[#allocation10 + $0x14] ss:$8 sps:$4 sm:$0xff]  }
 0x234   : > { %v1607_v21 = vpop.f32.mrf.mxu0 }
 0x235   : > { %v1614_v11 = vpack.c.bf16 %v1606_v5, %v1606_v5  ;;  %v1608_v24 = vadd.f32 %v1607_v21, %v1002_v22  ;;  %v5368_v5 = vld [vmem:[#allocation10 + $0x10] ss:$8 sps:$4 sm:$0xff]   ;;  %v5385_v21 = vld [vmem:[#allocation10 + $0xc4] ss:$8 sps:$4 sm:$0xff]   ;;  %v5383_v22 = vld [vmem:[#allocation10 + $0xc0] ss:$8 sps:$4 sm:$0xff]  }
 0x236   : > { %v1609_v23 = vpop.f32.mrf.mxu0 }
 0x237   : > { %v1675_v12 = vsel %vm1673_vm3, %v1614_v11, 0  ;;  %v1719_v26 = vpack.c.bf16 %v1608_v24, %v1608_v24  ;;  %v5373_v11 = vld [vmem:[#allocation10 + $0x4] ss:$8 sps:$4 sm:$0xff]   ;;  %v5388_v23 = vld [vmem:[#allocation10 + $0xb4] ss:$8 sps:$4 sm:$0xff]  }
 0x238   : > { %5014 = vmatpush3.bf16.msra.mxu1 %v1675_v12  ;;  %v1610_v25 = vpop.f32.mrf.mxu0  ;;  %v5371_v12 = vld [vmem:[#allocation10] ss:$8 sps:$4 sm:$0xff]   ;;  %v5386_v24 = vld [vmem:[#allocation10 + $0xb0] ss:$8 sps:$4 sm:$0xff]  }
 0x239   : > { %5019 = vmatprep.subr.bf16.mxu1 %v6203_v4  ;;  %v1778_v27 = vsel %vm1673_vm3, %v1719_v26, 0  ;;  %v5391_v25 = vld [vmem:[#allocation10 + $0xa4] ss:$8 sps:$4 sm:$0xff]   ;;  %v5389_v26 = vld [vmem:[#allocation10 + $0xa0] ss:$8 sps:$4 sm:$0xff]  }
 0x2bd   : > { %v1649_v57 = vpop.f32.mrf.mxu1 }
 0x2be   : > { %v1655_v60 = vmul.f32 0.088388346, %v1649_v57 }
 0x2bf   : > { %v5011_v61 = vpop.f32.mrf.mxu1 }
 0x2c0   : > { %v1656_v62 = vadd.f32 %v1655_v60, %v878_v59  ;;  %v5358_v60 = vld [vmem:[#allocation10 + $0x54] ss:$8 sps:$4 sm:$0xff]   ;;  %v5356_v61 = vld [vmem:[#allocation10 + $0x50] ss:$8 sps:$4 sm:$0xff]  }
 0x2c1   : > { %v1652_v63 = vpop.f32.mrf.mxu1 }
 0x2c2   : > { %v1658_v0 = vsel %vm1657_vm2, %v1656_v62, -inf  ;;  %v5359_v63 = vld [vmem:[#allocation10 + $0x40] ss:$8 sps:$4 sm:$0xff]  }
 0x2c3   : > { %1659 = vmax.xlane.f32.xlu0 %v1658_v0  ;;  %v5012_v1 = vpop.f32.mrf.mxu1  ;;  %v5364_v0 = vld [vmem:[#allocation10 + $0x34] ss:$8 sps:$4 sm:$0xff]  }
 0x2c4   : > { %v5362_v1 = vld [vmem:[#allocation10 + $0x30] ss:$8 sps:$4 sm:$0xff]  }
 0x34c   : > { %v1660_v13 = vpop.xlane.xlu0 %1659 }
 0x34d   : > { %v1661_v14 = vsub.f32 %v1656_v62, %v1660_v13  ;;  %v5361_v62 = vld [vmem:[#allocation10 + $0x44] ss:$8 sps:$4 sm:$0xff]   ;;  %v5376_v13 = vld [vmem:[#allocation10 + $0xf4] ss:$8 sps:$4 sm:$0xff]  }
 0x34f   : > { %v1662_v16 = vmul.f32 1.442695, %v1661_v14  ;;  %v5374_v14 = vld [vmem:[#allocation10 + $0xf0] ss:$8 sps:$4 sm:$0xff]  }
 0x351   : > { %5782 = vpow2.f32 %v1662_v16  ;;  %v5379_v16 = vld [vmem:[#allocation10 + $0xe4] ss:$8 sps:$4 sm:$0xff]  }
 0x35e   : > { %v5783_v17 = vpop.eup %5782 }
 0x35f   : > { %v1664_v19 = vsel %vm1657_vm2, %v5783_v17, 0.0 }
 0x360   : > { %1665 = vadd.xlane.f32.xlu0 %v1664_v19  ;;  %v5382_v19 = vld [vmem:[#allocation10 + $0xd4] ss:$8 sps:$4 sm:$0xff]  }
 0x3e9   : > { %v1666_v28 = vpop.xlane.xlu0 %1665 }
 0x3ea   : > { %5784 = vrcp.f32 %v1666_v28  ;;  %v5392_v28 = vld [vmem:[#allocation10 + $0x90] ss:$8 sps:$4 sm:$0xff]  }
 0x3f7   : > { %v5785_v32 = vpop.eup %5784 }
 0x3f8   : > { %v1668_v34 = vmul.f32 %v5785_v32, %v5783_v17  ;;  %v5377_v17 = vld [vmem:[#allocation10 + $0xe0] ss:$8 sps:$4 sm:$0xff]  }
 0x3f9   : > { %v5395_v32 = vld [vmem:[#allocation10 + $0x80] ss:$8 sps:$4 sm:$0xff]  }
 0x3fa   : > { %v1669_v36 = vpack.c.bf16 %v1668_v34, %v1668_v34 }
 0x3fc   : > { %5016 = vmatmul.mubr.msk.bf16.vlgmr.msra.gmra.mxu1 %vm1657_vm2, %v1669_v36 }
 0x3fd   : > { %5020 = vmatpush3.bf16.xpose.msra.mxu1 %v1718_v37  ;;  %5021 = vmatprep.mubr.msk.bf16.mxu1 %vm6204_vm0, %v6203_v4 }
 0x3fe   : > { %5025 = vmatprep.subr.bf16.mxu1 %v6203_v4 }
 0x404   : > { %5022 = vmatmul.mubr.bf16.vlgmr.msra.gmra.mxu1 %v1717_v6  ;;  %v1854_v6 = vld [vmem:[#allocation11] sm:$0x3] }
 0x405   : > { %5026 = vmatpush3.bf16.msra.mxu1 %v1778_v27  ;;  %5027 = vmatprep.mubr.msk.bf16.mxu1 %vm6204_vm0, %v6203_v4  ;;  %v5394_v27 = vld [vmem:[#allocation10 + $0x94] ss:$8 sps:$4 sm:$0xff]  }
 0x406   : > { %2026 = vmatprep.subr.bf16.mxu1 %v5352_v52  ;;  %v5401_v52 = vld [vmem:[#allocation14 + $0xc0] ss:$16 sps:$4 sm:$0xff]  }
 0x4bc   : > { %v6660_v15 = vpop.f32.mrf.mxu1 }
 0x4bd   : > { %v1820_v35 = vpack.c.bf16 %v6660_v15, %v6660_v15  ;;  %v5805_v15 = vld [vmem:[%s6565_s8 + $0x8] sm:$0xff] }
 0x4be   : > { %v5017_v8 = vpop.f32.mrf.mxu1 }
 0x4bf   : > { %v1859_v8 = vrot.slane %v1854_v6, %v6617_v9 }
 0x4c0   : > { %v1714_v39 = vpop.f32.mrf.mxu1 }
 0x4c1   : > { %v1863_v39 = vrot.slane %v1854_v6, %v6648_v31  ;;  %v5458_v6 = vld [vmem:[#allocation14 + $0x160] ss:$16 sps:$4 sm:$0xff]  }
 0x4c2   : > { %v5018_v40 = vpop.f32.mrf.mxu1 }
 0x4c4   : > { %v1754_v41 = vpop.f32.mrf.mxu1 }
 0x4c5   : > { %v1760_v42 = vmul.f32 0.088388346, %v1754_v41 }
 0x4c6   : > { %v5023_v43 = vpop.f32.mrf.mxu1 }
 0x4c7   : > { %v1761_v44 = vadd.f32 %v1760_v42, %v878_v59  ;;  %v5353_v59 = vld [vmem:[#allocation10 + $0x60] ss:$8 sps:$4 sm:$0xff]  }
 0x4c8   : > { %v1757_v45 = vpop.f32.mrf.mxu1 }
 0x4c9   : > { %v1762_v18 = vsel %vm1657_vm2, %v1761_v44, -inf  ;;  %v5804_v45 = vld [vmem:[%s6565_s8] sm:$0xff]  ;;  %s6956_s8 = sld [smem:[#allocation44_spill]] }
 0x4ca   : > { %1763 = vmax.xlane.f32.xlu1 %v1762_v18  ;;  %v5024_v46 = vpop.f32.mrf.mxu1 }
 0x553   : > { %v1764_v47 = vpop.xlane.xlu1 %1763 }
 0x554   : > { %v1765_v48 = vsub.f32 %v1761_v44, %v1764_v47 }
 0x556   : > { %v1766_v49 = vmul.f32 1.442695, %v1765_v48 }
 0x558   : > { %5786 = vpow2.f32 %v1766_v49  ;;  %v5398_v49 = vld [vmem:[#allocation14 + $0xe0] ss:$16 sps:$4 sm:$0xff]  }
 0x565   : > { %v5787_v50 = vpop.eup %5786 }
 0x566   : > { %v1768_v51 = vsel %vm1657_vm2, %v5787_v50, 0.0 }
 0x567   : > { %1769 = vadd.xlane.f32.xlu1 %v1768_v51  ;;  %v5403_v51 = vld [vmem:[#allocation14 + $0xc4] ss:$16 sps:$4 sm:$0xff]  }
 0x5f0   : > { %v1770_v53 = vpop.xlane.xlu1 %1769 }
 0x5f1   : > { %5788 = vrcp.f32 %v1770_v53  ;;  %v5413_v53 = vld [vmem:[#allocation13 + $0x70] ss:$8 sps:$4 sm:$0xff]  }
 0x5fe   : > { %v5789_v54 = vpop.eup %5788 }
 0x5ff   : > { %v1772_v55 = vmul.f32 %v5789_v54, %v5787_v50  ;;  %v5400_v50 = vld [vmem:[#allocation14 + $0xe4] ss:$16 sps:$4 sm:$0xff]  }
 0x600   : > { %v5415_v54 = vld [vmem:[#allocation13 + $0x74] ss:$8 sps:$4 sm:$0xff]  }
 0x601   : > { %v1773_v57 = vpack.c.bf16 %v1772_v55, %v1772_v55  ;;  %v5406_v55 = vld [vmem:[#allocation14 + $0xa4] ss:$16 sps:$4 sm:$0xff]   ;;  %2320 = vmatprep.subr.bf16.mxu0 %v5415_v54 }
 0x602   : > { %2321 = vmatpush1.bf16.msra.mxu0 %v5413_v53  ;;  %v870_v53 = vld [vmem:[%s6573_s24 + $0x8] sm:$0xff]  ;;  %v872_v54 = vld [vmem:[%s6573_s24 + $0x18] sm:$0xff] }
 0x603   : > { %5028 = vmatmul.mubr.msk.bf16.vlgmr.msra.gmra.mxu1 %vm1657_vm2, %v1773_v57  ;;  %v5419_v57 = vld [vmem:[#allocation13 + $0x60] ss:$8 sps:$4 sm:$0xff]  }
 0x604   : > { %2027 = vmatpush1.bf16.msra.mxu1 %v5350_v56  ;;  %v5421_v56 = vld [vmem:[#allocation13 + $0x64] ss:$8 sps:$4 sm:$0xff]  }
 0x605   : > { %2028 = vmatprep.subr.bf16.mxu1 %v5355_v58  ;;  %v5404_v58 = vld [vmem:[#allocation14 + $0xa0] ss:$16 sps:$4 sm:$0xff]   ;;  %2322 = vmatprep.subr.bf16.mxu0 %v5421_v56  ;;  %v869_v56 = vld [vmem:[%s6573_s24] sm:$0xff] }
 0x606   : > { %2323 = vmatpush1.bf16.msra.mxu0 %v5419_v57  ;;  %v871_v57 = vld [vmem:[%s6573_s24 + $0x10] sm:$0xff]  ;;  %s4990_s24 = sshll.u32 %s6343_s23, 8  ;;  %s6206_s23 = smov [#allocation20]  }
 0x607   : > { %s6832_s6 = scalar_lea.hbm %s6958_s4, %s4990_s24  ;;  %s6100_s5 = sshll.u32 %s6206_s23, 4  ;;  %s6101_s5 = int_to_ptr.vmem [resolvable:$false] %s6100_s5 }
 0x608   : > { %2029 = vmatpush1.bf16.msra.mxu1 %v5353_v59  ;;  %v5427_v59 = vld [vmem:[#allocation13 + $0x54] ss:$8 sps:$4 sm:$0xff]   ;;  %s6102_s21 = scalar_lea.vmem %s6101_s5, 512  ;;  %p6103_p4 = scmp.lt.s32.totalorder %s4387_s16, %s6101_s5 }
 0x609   : > { %2030 = vmatprep.subr.bf16.mxu1 %v5358_v60  ;;  %v5409_v60 = vld [vmem:[#allocation14 + $0x84] ss:$16 sps:$4 sm:$0xff]   ;;  %2324 = vmatprep.subr.bf16.mxu0 %v5427_v59  ;;  %p6104_p0 = scmp.lt.s32.totalorder %s6102_s21, %s6096_s10 }
 0x60a   : > { %v5484_v59 = vld [vmem:[#allocation13 + $0xb4] ss:$8 sps:$4 sm:$0xff]  }
 0x60b   : > { %p6105_p5 = por %p6104_p0, %p6103_p4 }
 0x60c   : > { %2031 = vmatpush1.bf16.msra.mxu1 %v5356_v61  ;;  %v5425_v61 = vld [vmem:[#allocation13 + $0x50] ss:$8 sps:$4 sm:$0xff]  }
 0x60d   : > { %2032 = vmatprep.subr.bf16.mxu1 %v5361_v62  ;;  %v5407_v62 = vld [vmem:[#allocation14 + $0x80] ss:$16 sps:$4 sm:$0xff]   ;;  %2325 = vmatpush1.bf16.msra.mxu0 %v5425_v61  ;;  %v5487_v61 = vld [vmem:[#allocation13 + $0xa4] ss:$8 sps:$4 sm:$0xff]   ;;  %p6106_p8 = pnand %p6105_p5, %p6099_p6 }
 0x610   : > { %2033 = vmatpush1.bf16.msra.mxu1 %v5359_v63  ;;  %v5433_v63 = vld [vmem:[#allocation13 + $0x44] ss:$8 sps:$4 sm:$0xff]  }
 0x611   : > { %2034 = vmatprep.subr.bf16.mxu1 %v5364_v0  ;;  %v5412_v0 = vld [vmem:[#allocation14 + $0x64] ss:$16 sps:$4 sm:$0xff]   ;;  %2326 = vmatprep.subr.bf16.mxu0 %v5433_v63 }
 0x612   : > { %v5490_v63 = vld [vmem:[#allocation13 + $0x94] ss:$8 sps:$4 sm:$0xff]  }
 0x614   : > { %2035 = vmatpush1.bf16.msra.mxu1 %v5362_v1  ;;  %v5431_v1 = vld [vmem:[#allocation13 + $0x40] ss:$8 sps:$4 sm:$0xff]  }
 0x615   : > { %2036 = vmatprep.subr.bf16.mxu1 %v5367_v2  ;;  %v5410_v2 = vld [vmem:[#allocation14 + $0x60] ss:$16 sps:$4 sm:$0xff]   ;;  %2327 = vmatpush1.bf16.msra.mxu0 %v5431_v1  ;;  %v5493_v1 = vld [vmem:[#allocation13 + $0x84] ss:$8 sps:$4 sm:$0xff]  }
 0x618   : > { %2037 = vmatpush1.bf16.msra.mxu1 %v5365_v3  ;;  %v5439_v3 = vld [vmem:[#allocation13 + $0x34] ss:$8 sps:$4 sm:$0xff]  }
 0x619   : > { %2038 = vmatprep.subr.bf16.mxu1 %v5370_v10  ;;  %v5418_v10 = vld [vmem:[#allocation14 + $0x44] ss:$16 sps:$4 sm:$0xff]   ;;  %2328 = vmatprep.subr.bf16.mxu0 %v5439_v3 }
 0x61c   : > { %2039 = vmatpush1.bf16.msra.mxu1 %v5368_v5  ;;  %v5437_v5 = vld [vmem:[#allocation13 + $0x30] ss:$8 sps:$4 sm:$0xff]  }
 0x61d   : > { %2040 = vmatprep.subr.bf16.mxu1 %v5373_v11  ;;  %v5416_v11 = vld [vmem:[#allocation14 + $0x40] ss:$16 sps:$4 sm:$0xff]   ;;  %2329 = vmatpush1.bf16.msra.mxu0 %v5437_v5 }
 0x620   : > { %2041 = vmatpush1.bf16.msra.mxu1 %v5371_v12  ;;  %v5445_v12 = vld [vmem:[#allocation13 + $0x24] ss:$8 sps:$4 sm:$0xff]  }
 0x621   : > { %2042 = vmatprep.subr.bf16.mxu1 %v5376_v13  ;;  %v5424_v13 = vld [vmem:[#allocation14 + $0x24] ss:$16 sps:$4 sm:$0xff]   ;;  %2330 = vmatprep.subr.bf16.mxu0 %v5445_v12  ;;  %v2070_v12 = vld [vmem:[%s6876_s7] sm:$0x3] }
 0x624   : > { %2043 = vmatpush2.bf16.msra.mxu1 %v5374_v14  ;;  %v5443_v14 = vld [vmem:[#allocation13 + $0x20] ss:$8 sps:$4 sm:$0xff]  }
 0x625   : > { %2044 = vmatprep.subr.bf16.mxu1 %v5379_v16  ;;  %v5422_v16 = vld [vmem:[#allocation14 + $0x20] ss:$16 sps:$4 sm:$0xff]   ;;  %2331 = vmatpush1.bf16.msra.mxu0 %v5443_v14 }
 0x628   : > { %2045 = vmatpush2.bf16.msra.mxu1 %v5377_v17  ;;  %v5451_v17 = vld [vmem:[#allocation13 + $0x14] ss:$8 sps:$4 sm:$0xff]  }
 0x629   : > { %2046 = vmatprep.subr.bf16.mxu1 %v5382_v19  ;;  %v5430_v19 = vld [vmem:[#allocation14 + $0x4] ss:$16 sps:$4 sm:$0xff]   ;;  %2332 = vmatprep.subr.bf16.mxu0 %v5451_v17 }
 0x62c   : > { %2047 = vmatpush2.bf16.msra.mxu1 %v5380_v20  ;;  %v5449_v20 = vld [vmem:[#allocation13 + $0x10] ss:$8 sps:$4 sm:$0xff]  }
 0x62d   : > { %2048 = vmatprep.subr.bf16.mxu1 %v5385_v21  ;;  %v5428_v21 = vld [vmem:[#allocation14] ss:$16 sps:$4 sm:$0xff]   ;;  %2333 = vmatpush1.bf16.msra.mxu0 %v5449_v20  ;;  %v2109_v20 = vrot.slane %v2070_v12, %v6648_v31 }
 0x630   : > { %2049 = vmatpush2.bf16.msra.mxu1 %v5383_v22  ;;  %v5457_v22 = vld [vmem:[#allocation13 + $0x4] ss:$8 sps:$4 sm:$0xff]  }
 0x631   : > { %2050 = vmatprep.subr.bf16.mxu1 %v5388_v23  ;;  %v5436_v23 = vld [vmem:[#allocation14 + $0x1e4] ss:$16 sps:$4 sm:$0xff]   ;;  %2334 = vmatprep.subr.bf16.mxu0 %v5457_v22 }
 0x634   : > { %2051 = vmatpush2.bf16.msra.mxu1 %v5386_v24  ;;  %v5455_v24 = vld [vmem:[#allocation13] ss:$8 sps:$4 sm:$0xff]  }
 0x635   : > { %2052 = vmatprep.subr.bf16.mxu1 %v5391_v25  ;;  %v5434_v25 = vld [vmem:[#allocation14 + $0x1e0] ss:$16 sps:$4 sm:$0xff]   ;;  %2335 = vmatpush1.bf16.msra.mxu0 %v5455_v24 }
 0x638   : > { %2053 = vmatpush2.bf16.msra.mxu1 %v5389_v26  ;;  %v5463_v26 = vld [vmem:[#allocation13 + $0xf4] ss:$8 sps:$4 sm:$0xff]  }
 0x639   : > { %2054 = vmatprep.subr.bf16.mxu1 %v5394_v27  ;;  %v5442_v27 = vld [vmem:[#allocation14 + $0x1c4] ss:$16 sps:$4 sm:$0xff]   ;;  %2336 = vmatprep.subr.bf16.mxu0 %v5463_v26 }
 0x63c   : > { %2055 = vmatpush2.bf16.msra.mxu1 %v5392_v28  ;;  %v5461_v28 = vld [vmem:[#allocation13 + $0xf0] ss:$8 sps:$4 sm:$0xff]  }
 0x63d   : > { %2056 = vmatprep.subr.bf16.mxu1 %v5397_v30  ;;  %v5440_v30 = vld [vmem:[#allocation14 + $0x1c0] ss:$16 sps:$4 sm:$0xff]   ;;  %2337 = vmatpush2.bf16.msra.mxu0 %v5461_v28  ;;  %v6710_v28 = vld [vmem:[%s6880_s11] sm:$0xf] }
 0x640   : > { %2057 = vmatpush2.bf16.msra.mxu1 %v5395_v32  ;;  %v5469_v32 = vld [vmem:[#allocation13 + $0xe4] ss:$8 sps:$4 sm:$0xff]  }
 0x641   : > { %2769 = vmatprep.subr.bf16.mxu1 %v5400_v50  ;;  %2338 = vmatprep.subr.bf16.mxu0 %v5469_v32  ;;  %v5473_v50 = vld [vmem:[#allocation13 + $0xd0] ss:$8 sps:$4 sm:$0xff]  }
 0x6c3   : > { %v1814_v33 = vpop.f32.mrf.mxu1 }
 0x6c4   : > { %v1821_v34 = vpack.c.bf16 %v1814_v33, %v1814_v33  ;;  %v5448_v33 = vld [vmem:[#allocation14 + $0x1a4] ss:$16 sps:$4 sm:$0xff]  }
 0x6c5   : > { %v5029_v36 = vpop.f32.mrf.mxu1 }
 0x6c6   : > { %2058 = vmatprep.mubr.bf16.mxu1 %v1821_v34  ;;  %v5467_v34 = vld [vmem:[#allocation13 + $0xe0] ss:$8 sps:$4 sm:$0xff]   ;;  %v5454_v36 = vld [vmem:[#allocation14 + $0x184] ss:$16 sps:$4 sm:$0xff]  }
 0x6c7   : > { %v1817_v37 = vpop.f32.mrf.mxu1  ;;  %2059 = vmatmul.mubr.bf16.vlgmr.msra.gmra.mxu1 %v1820_v35  ;;  %v5446_v35 = vld [vmem:[#allocation14 + $0x1a0] ss:$16 sps:$4 sm:$0xff]   ;;  %2339 = vmatpush2.bf16.msra.mxu0 %v5467_v34 }
 0x6c8   : > { %2770 = vmatpush1.bf16.msra.mxu1 %v5398_v49  ;;  %v5452_v37 = vld [vmem:[#allocation14 + $0x180] ss:$16 sps:$4 sm:$0xff]   ;;  %v5475_v49 = vld [vmem:[#allocation13 + $0xd4] ss:$8 sps:$4 sm:$0xff]  }
 0x6c9   : > { %v5030_v38 = vpop.f32.mrf.mxu1  ;;  %2771 = vmatprep.subr.bf16.mxu1 %v5403_v51  ;;  %2340 = vmatprep.subr.bf16.mxu0 %v5475_v49  ;;  %v5476_v51 = vld [vmem:[#allocation14 + $0x100] ss:$16 sps:$4 sm:$0xff]   ;;  %v5500_v49 = vld [vmem:[#allocation14 + $0xa8] ss:$16 sps:$4 sm:$0xff]  }
 0x6ca   : > { %v5460_v38 = vld [vmem:[#allocation14 + $0x164] ss:$16 sps:$4 sm:$0xff]  }
 0x6cb   : > { %2341 = vmatpush2.bf16.msra.mxu0 %v5473_v50  ;;  %v5505_v50 = vld [vmem:[#allocation14 + $0x8c] ss:$16 sps:$4 sm:$0xff]  }
 0x6cc   : > { %2772 = vmatpush1.bf16.msra.mxu1 %v5401_v52  ;;  %v5478_v52 = vld [vmem:[#allocation14 + $0x104] ss:$16 sps:$4 sm:$0xff]  }
 0x6cd   : > { %2773 = vmatprep.subr.bf16.mxu1 %v5406_v55  ;;  %v2362_v55 = vpack.c.bf16 %v872_v54, %v870_v53  ;;  %v5509_v53 = vld [vmem:[#allocation14 + $0x48] ss:$16 sps:$4 sm:$0xff]   ;;  %v5514_v54 = vld [vmem:[#allocation14 + $0x2c] ss:$16 sps:$4 sm:$0xff]  }
 0x6cf   : > { %2801 = vmatprep.mubr.bf16.mxu1 %v2362_v55 }
 0x6d0   : > { %2774 = vmatpush1.bf16.msra.mxu1 %v5404_v58  ;;  %v6683_v58 = vpack.c.bf16 %v871_v57, %v869_v56  ;;  %v5517_v56 = vld [vmem:[#allocation14 + $0xc] ss:$16 sps:$4 sm:$0xff]   ;;  %v5515_v57 = vld [vmem:[#allocation14 + $0x8] ss:$16 sps:$4 sm:$0xff]  }
 0x6d1   : > { %2775 = vmatprep.subr.bf16.mxu1 %v5409_v60  ;;  %v5482_v60 = vld [vmem:[#allocation13 + $0xb0] ss:$8 sps:$4 sm:$0xff]  }
 0x6d4   : > { %2776 = vmatpush1.bf16.msra.mxu1 %v5407_v62  ;;  %v5485_v62 = vld [vmem:[#allocation13 + $0xa0] ss:$8 sps:$4 sm:$0xff]  }
 0x6d5   : > { %2777 = vmatprep.subr.bf16.mxu1 %v5412_v0  ;;  %v5488_v0 = vld [vmem:[#allocation13 + $0x90] ss:$8 sps:$4 sm:$0xff]  }
 0x6d8   : > { %2778 = vmatpush1.bf16.msra.mxu1 %v5410_v2  ;;  %v5491_v2 = vld [vmem:[#allocation13 + $0x80] ss:$8 sps:$4 sm:$0xff]  }
 0x6d9   : > { %2779 = vmatprep.subr.bf16.mxu1 %v5418_v10 }
 0x6dc   : > { %2780 = vmatpush1.bf16.msra.mxu1 %v5416_v11  ;;  %v2069_v11 = vld [vmem:[%s6953_s20] sm:$0x3] }
 0x6dd   : > { %2781 = vmatprep.subr.bf16.mxu1 %v5424_v13  ;;  %v2092_v13 = vrot.slane %v2069_v11, %v6617_v9  ;;  %v2096_v14 = vrot.slane %v2069_v11, %v6648_v31  ;;  %v5533_v11 = vld [vmem:[#allocation14 + $0x148] ss:$16 sps:$4 sm:$0xff]  }
 0x6e0   : > { %2782 = vmatpush1.bf16.msra.mxu1 %v5422_v16 }
 0x6e1   : > { %2783 = vmatprep.subr.bf16.mxu1 %v5430_v19  ;;  %v2105_v19 = vrot.slane %v2070_v12, %v6617_v9  ;;  %v5538_v12 = vld [vmem:[#allocation14 + $0x12c] ss:$16 sps:$4 sm:$0xff]  }
 0x6e4   : > { %2784 = vmatpush1.bf16.msra.mxu1 %v5428_v21 }
 0x6e5   : > { %2785 = vmatprep.subr.bf16.mxu1 %v5436_v23 }
 0x6e8   : > { %2786 = vmatpush2.bf16.msra.mxu1 %v5434_v25 }
 0x6e9   : > { %2787 = vmatprep.subr.bf16.mxu1 %v5442_v27 }
 0x6ec   : > { %2788 = vmatpush2.bf16.msra.mxu1 %v5440_v30  ;;  %v2432_v30 = vrot.slane %v6710_v28, %v6617_v9 }
 0x6ed   : > { %2789 = vmatprep.subr.bf16.mxu1 %v5448_v33 }
 0x6f0   : > { %2790 = vmatpush2.bf16.msra.mxu1 %v5446_v35 }
 0x6f1   : > { %2791 = vmatprep.subr.bf16.mxu1 %v5454_v36 }
 0x6f4   : > { %2792 = vmatpush2.bf16.msra.mxu1 %v5452_v37 }
 0x6f5   : > { %2793 = vmatprep.subr.bf16.mxu1 %v5460_v38  ;;  %v6720_v38 = vld [vmem:[%s6878_s9] sm:$0x3] }
 0x6f8   : > { %2794 = vmatpush2.bf16.msra.mxu1 %v5458_v6  ;;  %v2153_v6 = vrot.slane %v6720_v38, %v6617_v9 }
 0x787   : > { %v2060_v40 = vpop.f32.mrf.mxu1 }
 0x788   : > { %v2061_v41 = vadd.f32 %v2060_v40, %v1859_v8  ;;  %v5466_v8 = vld [vmem:[#allocation14 + $0x144] ss:$16 sps:$4 sm:$0xff]  }
 0x789   : > { %v2062_v42 = vpop.f32.mrf.mxu1  ;;  %2795 = vmatprep.subr.bf16.mxu1 %v5466_v8 }
 0x78a   : > { %v2063_v43 = vadd.f32 %v2062_v42, %v1863_v39  ;;  %v6670_v18 = vadd.f32 %v5804_v45, %v2061_v41  ;;  %v5464_v39 = vld [vmem:[#allocation14 + $0x140] ss:$16 sps:$4 sm:$0xff]  }
 0x78b   : > { %v2064_v44 = vpop.f32.mrf.mxu1  ;;  %2796 = vmatpush2.bf16.msra.mxu1 %v5464_v39 }
 0x78c   : > { %v6673_v46 = vadd.f32 %v5805_v15, %v2063_v43 }
 0x78d   : > { %v2065_v47 = vpop.f32.mrf.mxu1 }
 0x78e   : > { %v2071_v48 = vadd.f32 %v6673_v46, %v6670_v18  ;;  %v5472_v47 = vld [vmem:[#allocation14 + $0x124] ss:$16 sps:$4 sm:$0xff]  }
 0x78f   : > { %2797 = vmatprep.subr.bf16.mxu1 %v5472_v47  ;;  %v5497_v47 = vld [vmem:[#allocation14 + $0xc8] ss:$16 sps:$4 sm:$0xff]  }
 0x790   : > { %2072 = vadd.xlane.f32.xlu0 %v2071_v48  ;;  %v5470_v48 = vld [vmem:[#allocation14 + $0x120] ss:$16 sps:$4 sm:$0xff]  }
 0x791   : > { %2798 = vmatpush2.bf16.msra.mxu1 %v5470_v48  ;;  %v5502_v48 = vld [vmem:[#allocation14 + $0xac] ss:$16 sps:$4 sm:$0xff]  }
 0x792   : > { %2799 = vmatprep.subr.bf16.mxu1 %v5478_v52  ;;  %v5508_v52 = vld [vmem:[#allocation14 + $0x6c] ss:$16 sps:$4 sm:$0xff]  }
 0x795   : > { %2800 = vmatpush2.bf16.msra.mxu1 %v5476_v51  ;;  %v5503_v51 = vld [vmem:[#allocation14 + $0x88] ss:$16 sps:$4 sm:$0xff]  }
 0x796   : > { %5031 = vmatprep.subr.bf16.mxu1 %v6203_v4 }
 0x798   : > { %2802 = vmatmul.mubr.bf16.vlgmr.msra.gmra.mxu1 %v6683_v58 }
 0x799   : > { %5033 = vmatprep.mubr.msk.bf16.mxu1 %vm6204_vm0, %v6203_v4 }
 0x819   : > { %v2073_v40 = vpop.xlane.xlu0 %2072 }
 0x81a   : > { %v2075_v41 = vmul.f32 0.00390625, %v2073_v40 }
 0x81c   : > { %v2076_v42 = vsub.f32 %v6670_v18, %v2075_v41  ;;  %v2077_v43 = vsub.f32 %v6673_v46, %v2075_v41  ;;  %v5479_v18 = vld [vmem:[#allocation13 + $0xc0] ss:$8 sps:$4 sm:$0xff]   ;;  %v5481_v46 = vld [vmem:[#allocation13 + $0xc4] ss:$8 sps:$4 sm:$0xff]  }
 0x81d   : > { %2342 = vmatprep.subr.bf16.mxu0 %v5481_v46  ;;  %v5511_v46 = vld [vmem:[#allocation14 + $0x4c] ss:$16 sps:$4 sm:$0xff]  }
 0x81e   : > { %v2078_v44 = vmul.f32 %v2076_v42, %v2076_v42  ;;  %v2079_v45 = vmul.f32 %v2077_v43, %v2077_v43  ;;  %2343 = vmatpush2.bf16.msra.mxu0 %v5479_v18  ;;  %v5506_v18 = vld [vmem:[#allocation14 + $0x68] ss:$16 sps:$4 sm:$0xff]  }
 0x81f   : > { %2344 = vmatprep.subr.bf16.mxu0 %v5484_v59  ;;  %v5520_v59 = vld [vmem:[#allocation14 + $0x1ec] ss:$16 sps:$4 sm:$0xff]  }
 0x820   : > { %v2080_v15 = vadd.f32 %v2079_v45, %v2078_v44  ;;  %v5494_v44 = vld [vmem:[#allocation14 + $0xe8] ss:$16 sps:$4 sm:$0xff]   ;;  %v5496_v45 = vld [vmem:[#allocation14 + $0xec] ss:$16 sps:$4 sm:$0xff]  }
 0x822   : > { %2081 = vadd.xlane.f32.xlu1 %v2080_v15  ;;  %2345 = vmatpush2.bf16.msra.mxu0 %v5482_v60  ;;  %v5499_v15 = vld [vmem:[#allocation14 + $0xcc] ss:$16 sps:$4 sm:$0xff]   ;;  %v5518_v60 = vld [vmem:[#allocation14 + $0x1e8] ss:$16 sps:$4 sm:$0xff]  }
 0x823   : > { %2346 = vmatprep.subr.bf16.mxu0 %v5487_v61  ;;  %v5523_v61 = vld [vmem:[#allocation14 + $0x1cc] ss:$16 sps:$4 sm:$0xff]  }
 0x826   : > { %2347 = vmatpush2.bf16.msra.mxu0 %v5485_v62  ;;  %v5521_v62 = vld [vmem:[#allocation14 + $0x1c8] ss:$16 sps:$4 sm:$0xff]  }
 0x827   : > { %2348 = vmatprep.subr.bf16.mxu0 %v5490_v63  ;;  %v5526_v63 = vld [vmem:[#allocation14 + $0x1ac] ss:$16 sps:$4 sm:$0xff]  }
 0x82a   : > { %2349 = vmatpush2.bf16.msra.mxu0 %v5488_v0  ;;  %v5524_v0 = vld [vmem:[#allocation14 + $0x1a8] ss:$16 sps:$4 sm:$0xff]  }
 0x82b   : > { %2350 = vmatprep.subr.bf16.mxu0 %v5493_v1  ;;  %v5529_v1 = vld [vmem:[#allocation14 + $0x18c] ss:$16 sps:$4 sm:$0xff]  }
 0x82e   : > { %2351 = vmatpush2.bf16.msra.mxu0 %v5491_v2  ;;  %v5527_v2 = vld [vmem:[#allocation14 + $0x188] ss:$16 sps:$4 sm:$0xff]  }
 0x82f   : > { %2812 = vmatprep.subr.bf16.mxu0 %v5496_v45 }
 0x858   : > { %v2803_v32 = vpop.f32.mrf.mxu1 }
 0x859   : > { %v2804_v34 = vadd.f32 %v2803_v32, %v2432_v30 }
 0x85a   : > { %v6714_v33 = vpop.f32.mrf.mxu1 }
 0x85c   : > { %v2807_v35 = vpop.f32.mrf.mxu1 }
 0x85d   : > { %v2808_v36 = vadd.f32 %v2807_v35, %v2432_v30 }
 0x85f   : > { %v2856_v37 = vpack.c.bf16 %v2808_v36, %v2804_v34 }
 0x861   : > { %5032 = vmatpush3.bf16.xpose.msra.mxu1 %v2856_v37 }
 0x862   : > { %5037 = vmatprep.subr.bf16.mxu1 %v6203_v4 }
 0x8ab   : > { %v2082_v3 = vpop.xlane.xlu1 %2081 }
 0x8ac   : > { %v2083_v10 = vmul.f32 0.00390625, %v2082_v3  ;;  %v5532_v3 = vld [vmem:[#allocation14 + $0x16c] ss:$16 sps:$4 sm:$0xff]  }
 0x8ae   : > { %v2084_v5 = vadd.f32 1e-05, %v2083_v10  ;;  %v5530_v10 = vld [vmem:[#allocation14 + $0x168] ss:$16 sps:$4 sm:$0xff]  }
 0x8b0   : > { %5790 = vrsqrt.f32 %v2084_v5  ;;  %v5535_v5 = vld [vmem:[#allocation14 + $0x14c] ss:$16 sps:$4 sm:$0xff]  }
 0x8bd   : > { %v5791_v16 = vpop.eup %5790 }
 0x8be   : > { %v2087_v17 = vmul.f32 %v5791_v16, %v2077_v43  ;;  %v2086_v21 = vmul.f32 %v5791_v16, %v2076_v42  ;;  %v5539_v16 = vld [vmem:[#allocation14 + $0x108] ss:$16 sps:$4 sm:$0xff]  }
 0x8c0   : > { %v2100_v22 = vmul.f32 %v2096_v14, %v2087_v17  ;;  %v2099_v23 = vmul.f32 %v2092_v13, %v2086_v21  ;;  %v5536_v13 = vld [vmem:[#allocation14 + $0x128] ss:$16 sps:$4 sm:$0xff]   ;;  %v5541_v14 = vld [vmem:[#allocation14 + $0x10c] ss:$16 sps:$4 sm:$0xff]   ;;  %v2809_v17 = vpop.f32.mrf.mxu1 }
 0x8c2   : > { %v6699_v24 = vadd.f32 %v2109_v20, %v2100_v22  ;;  %v6701_v25 = vadd.f32 %v2105_v19, %v2099_v23 }
 0x8c4   : > { %v2115_v26 = vpack.c.bf16 %v6699_v24, %v6699_v24  ;;  %v2114_v27 = vpack.c.bf16 %v6701_v25, %v6701_v25 }
 0x8c6   : > { %2352 = vmatprep.mubr.bf16.mxu0 %v2115_v26 }
 0x8c7   : > { %2353 = vmatmul.mubr.bf16.vlgmr.msra.gmra.mxu0 %v2114_v27 }
 0x8c8   : > { %2844 = vmatprep.mubr.bf16.mxu0 %v2362_v55  ;;  %2813 = vmatpush1.bf16.msra.mxu0 %v5494_v44  ;;  %v5512_v55 = vld [vmem:[#allocation14 + $0x28] ss:$16 sps:$4 sm:$0xff]  }
 0x8c9   : > { %2814 = vmatprep.subr.bf16.mxu0 %v5499_v15 }
 0x8cc   : > { %2815 = vmatpush1.bf16.msra.mxu0 %v5497_v47 }
 0x8cd   : > { %2816 = vmatprep.subr.bf16.mxu0 %v5502_v48  ;;  %v2157_v48 = vrot.slane %v6720_v38, %v6648_v31 }
 0x8d0   : > { %2817 = vmatpush1.bf16.msra.mxu0 %v5500_v49 }
 0x8d1   : > { %2818 = vmatprep.subr.bf16.mxu0 %v5505_v50 }
 0x8d4   : > { %2819 = vmatpush1.bf16.msra.mxu0 %v5503_v51  ;;  %v2444_v51 = vrot.slane %v6710_v28, %v6643_v29 }
 0x8d5   : > { %2820 = vmatprep.subr.bf16.mxu0 %v5508_v52 }
 0x8d8   : > { %2821 = vmatpush1.bf16.msra.mxu0 %v5506_v18 }
 0x8d9   : > { %2822 = vmatprep.subr.bf16.mxu0 %v5511_v46 }
 0x8dc   : > { %2823 = vmatpush1.bf16.msra.mxu0 %v5509_v53 }
 0x8dd   : > { %2824 = vmatprep.subr.bf16.mxu0 %v5514_v54 }
 0x8e0   : > { %2825 = vmatpush1.bf16.msra.mxu0 %v5512_v55 }
 0x8e1   : > { %2826 = vmatprep.subr.bf16.mxu0 %v5517_v56 }
 0x8e4   : > { %2827 = vmatpush1.bf16.msra.mxu0 %v5515_v57 }
 0x8e5   : > { %2828 = vmatprep.subr.bf16.mxu0 %v5520_v59 }
 0x8e8   : > { %2829 = vmatpush2.bf16.msra.mxu0 %v5518_v60 }
 0x8e9   : > { %2830 = vmatprep.subr.bf16.mxu0 %v5523_v61 }
 0x8ec   : > { %2831 = vmatpush2.bf16.msra.mxu0 %v5521_v62 }
 0x8ed   : > { %2832 = vmatprep.subr.bf16.mxu0 %v5526_v63 }
 0x8f0   : > { %2833 = vmatpush2.bf16.msra.mxu0 %v5524_v0 }
 0x8f1   : > { %2834 = vmatprep.subr.bf16.mxu0 %v5529_v1 }
 0x8f4   : > { %2835 = vmatpush2.bf16.msra.mxu0 %v5527_v2 }
 0x8f5   : > { %2836 = vmatprep.subr.bf16.mxu0 %v5532_v3  ;;  %v5542_v3 = vld [vmem:[#allocation16 + $0x70] ss:$8 sps:$4 sm:$0xff]  }
 0x8f8   : > { %2837 = vmatpush2.bf16.msra.mxu0 %v5530_v10  ;;  %v5544_v10 = vld [vmem:[#allocation16 + $0x74] ss:$8 sps:$4 sm:$0xff]  }
 0x8f9   : > { %2838 = vmatprep.subr.bf16.mxu0 %v5535_v5  ;;  %v5547_v5 = vld [vmem:[#allocation16 + $0x64] ss:$8 sps:$4 sm:$0xff]  }
 0x8fc   : > { %2839 = vmatpush2.bf16.msra.mxu0 %v5533_v11  ;;  %v5545_v11 = vld [vmem:[#allocation16 + $0x60] ss:$8 sps:$4 sm:$0xff]  }
 0x8fd   : > { %2840 = vmatprep.subr.bf16.mxu0 %v5538_v12  ;;  %v5550_v12 = vld [vmem:[#allocation16 + $0x54] ss:$8 sps:$4 sm:$0xff]  }
 0x900   : > { %2841 = vmatpush2.bf16.msra.mxu0 %v5536_v13  ;;  %v5548_v13 = vld [vmem:[#allocation16 + $0x50] ss:$8 sps:$4 sm:$0xff]  }
 0x901   : > { %2842 = vmatprep.subr.bf16.mxu0 %v5541_v14  ;;  %v5553_v14 = vld [vmem:[#allocation16 + $0x44] ss:$8 sps:$4 sm:$0xff]  }
 0x904   : > { %2843 = vmatpush2.bf16.msra.mxu0 %v5539_v16  ;;  %v5551_v16 = vld [vmem:[#allocation16 + $0x40] ss:$8 sps:$4 sm:$0xff]  }
 0x905   : > { %3260 = vmatprep.subr.bf16.mxu0 %v5544_v10  ;;  %v5601_v10 = vld [vmem:[#allocation17 + $0xcc] ss:$16 sps:$4 sm:$0xff]  }
 0x907   : > { %2845 = vmatmul.mubr.bf16.vlgmr.msra.gmra.mxu0 %v6683_v58  ;;  %v2440_v58 = vrot.slane %v6710_v28, %v6612_v7 }
 0x908   : > { %3261 = vmatpush1.bf16.msra.mxu0 %v5542_v3  ;;  %v5598_v3 = vld [vmem:[#allocation17 + $0xc4] ss:$16 sps:$4 sm:$0xff]  }
 0x909   : > { %3262 = vmatprep.subr.bf16.mxu0 %v5547_v5  ;;  %v5596_v5 = vld [vmem:[#allocation17 + $0xc0] ss:$16 sps:$4 sm:$0xff]  }
 0x90c   : > { %3263 = vmatpush1.bf16.msra.mxu0 %v5545_v11  ;;  %v5607_v11 = vld [vmem:[#allocation17 + $0xac] ss:$16 sps:$4 sm:$0xff]  }
 0x90d   : > { %3264 = vmatprep.subr.bf16.mxu0 %v5550_v12  ;;  %v5602_v12 = vld [vmem:[#allocation17 + $0xa0] ss:$16 sps:$4 sm:$0xff]  }
 0x910   : > { %3265 = vmatpush1.bf16.msra.mxu0 %v5548_v13  ;;  %v5605_v13 = vld [vmem:[#allocation17 + $0xa8] ss:$16 sps:$4 sm:$0xff]  }
 0x911   : > { %3266 = vmatprep.subr.bf16.mxu0 %v5553_v14  ;;  %v5610_v14 = vld [vmem:[#allocation17 + $0x84] ss:$16 sps:$4 sm:$0xff]  }
 0x914   : > { %3267 = vmatpush1.bf16.msra.mxu0 %v5551_v16  ;;  %v5613_v16 = vld [vmem:[#allocation17 + $0x8c] ss:$16 sps:$4 sm:$0xff]  }
 0x987   : > { %v2354_v8 = vpop.f32.mrf.mxu0 }
 0x988   : > { %v2355_v39 = vadd.f32 %v2354_v8, %v2153_v6 }
 0x989   : > { %v6724_v40 = vpop.f32.mrf.mxu0 }
 0x98a   : > { %v2855_v41 = vpack.c.bf16 %v2355_v39, %v2355_v39  ;;  %v2357_v18 = vadd.f32 %v6724_v40, %v2157_v48 }
 0x98b   : > { %v2358_v42 = vpop.f32.mrf.mxu0 }
 0x98c   : > { %5034 = vmatmul.mubr.bf16.vlgmr.msra.gmra.mxu1 %v2855_v41  ;;  %v2955_v53 = vpack.c.bf16 %v2357_v18, %v2357_v18 }
 0x98d   : > { %v2359_v43 = vpop.f32.mrf.mxu0  ;;  %5039 = vmatprep.mubr.msk.bf16.mxu1 %vm6204_vm0, %v6203_v4 }
 0x98e   : > { %v2436_v43 = vrot.slane %v6710_v28, %v6648_v31 }
 0x990   : > { %v2806_v45 = vadd.f32 %v6714_v33, %v2436_v43  ;;  %v2810_v15 = vadd.f32 %v2809_v17, %v2436_v43  ;;  %v5556_v17 = vld [vmem:[#allocation16 + $0x34] ss:$8 sps:$4 sm:$0xff]  }
 0x991   : > { %3268 = vmatprep.subr.bf16.mxu0 %v5556_v17  ;;  %v5586_v43 = vld [vmem:[#allocation16 + $0x94] ss:$8 sps:$4 sm:$0xff]   ;;  %v5608_v17 = vld [vmem:[#allocation17 + $0x80] ss:$16 sps:$4 sm:$0xff]  }
 0x992   : > { %v2956_v50 = vpack.c.bf16 %v2810_v15, %v2806_v45 }
 0x9c7   : > { %v2846_v36 = vpop.f32.mrf.mxu0 }
 0x9c8   : > { %v2847_v6 = vadd.f32 %v2846_v36, %v2440_v58  ;;  %v5574_v36 = vld [vmem:[#allocation16 + $0xd4] ss:$8 sps:$4 sm:$0xff]  }
 0x9c9   : > { %v2848_v37 = vpop.f32.mrf.mxu0 }
 0x9ca   : > { %v2849_v33 = vadd.f32 %v2848_v37, %v2444_v51  ;;  %v5577_v37 = vld [vmem:[#allocation16 + $0xc4] ss:$8 sps:$4 sm:$0xff]  }
 0x9cb   : > { %v2850_v8 = vpop.f32.mrf.mxu0 }
 0x9cc   : > { %v2851_v39 = vadd.f32 %v2850_v8, %v2440_v58  ;;  %v5572_v58 = vld [vmem:[#allocation16 + $0xd0] ss:$8 sps:$4 sm:$0xff]   ;;  %v5580_v8 = vld [vmem:[#allocation16 + $0xb4] ss:$8 sps:$4 sm:$0xff]  }
 0x9cd   : > { %v2852_v52 = vpop.f32.mrf.mxu0 }
 0x9ce   : > { %v2857_v41 = vpack.c.bf16 %v2851_v39, %v2847_v6  ;;  %v2853_v46 = vadd.f32 %v2852_v52, %v2444_v51  ;;  %v5575_v6 = vld [vmem:[#allocation16 + $0xc0] ss:$8 sps:$4 sm:$0xff]   ;;  %v5578_v39 = vld [vmem:[#allocation16 + $0xb0] ss:$8 sps:$4 sm:$0xff]  }
 0x9d0   : > { %5038 = vmatpush3.bf16.msra.mxu1 %v2857_v41  ;;  %v2957_v38 = vpack.c.bf16 %v2853_v46, %v2849_v33  ;;  %v5583_v41 = vld [vmem:[#allocation16 + $0xa4] ss:$8 sps:$4 sm:$0xff]  }
 0x9d1   : > { %5043 = vmatprep.subr.bf16.mxu1 %v6203_v4 }
 0xa4c   : > { %v2892_v19 = vpop.f32.mrf.mxu1 }
 0xa4d   : > { %v2898_v20 = vmul.f32 0.088388346, %v2892_v19  ;;  %v5554_v19 = vld [vmem:[#allocation16 + $0x30] ss:$8 sps:$4 sm:$0xff]  }
 0xa4e   : > { %v5035_v21 = vpop.f32.mrf.mxu1  ;;  %3269 = vmatpush1.bf16.msra.mxu0 %v5554_v19  ;;  %v5611_v19 = vld [vmem:[#allocation17 + $0x88] ss:$16 sps:$4 sm:$0xff]  }
 0xa4f   : > { %v2900_v22 = vsel %vm2899_vm4, %v2898_v20, -inf  ;;  %v5557_v21 = vld [vmem:[#allocation16 + $0x20] ss:$8 sps:$4 sm:$0xff]  }
 0xa50   : > { %2901 = vmax.xlane.f32.xlu0 %v2900_v22  ;;  %v2895_v23 = vpop.f32.mrf.mxu1  ;;  %v5562_v22 = vld [vmem:[#allocation16 + $0x14] ss:$8 sps:$4 sm:$0xff]  }
 0xa51   : > { %v5560_v23 = vld [vmem:[#allocation16 + $0x10] ss:$8 sps:$4 sm:$0xff]  }
 0xa52   : > { %v5036_v26 = vpop.f32.mrf.mxu1 }
 0xa53   : > { %v5565_v26 = vld [vmem:[#allocation16 + $0x4] ss:$8 sps:$4 sm:$0xff]  }
 0xad9   : > { %v2902_v27 = vpop.xlane.xlu0 %2901 }
 0xada   : > { %v2903_v30 = vsub.f32 %v2898_v20, %v2902_v27  ;;  %v5559_v20 = vld [vmem:[#allocation16 + $0x24] ss:$8 sps:$4 sm:$0xff]   ;;  %v5563_v27 = vld [vmem:[#allocation16] ss:$8 sps:$4 sm:$0xff]  }
 0xadb   : > { %3270 = vmatprep.subr.bf16.mxu0 %v5559_v20  ;;  %v5616_v20 = vld [vmem:[#allocation17 + $0x64] ss:$16 sps:$4 sm:$0xff]  }
 0xadc   : > { %v2904_v32 = vmul.f32 1.442695, %v2903_v30  ;;  %3271 = vmatpush1.bf16.msra.mxu0 %v5557_v21  ;;  %v5568_v30 = vld [vmem:[#allocation16 + $0xf4] ss:$8 sps:$4 sm:$0xff]  }
 0xadd   : > { %3272 = vmatprep.subr.bf16.mxu0 %v5562_v22  ;;  %v5619_v21 = vld [vmem:[#allocation17 + $0x6c] ss:$16 sps:$4 sm:$0xff]   ;;  %v5614_v22 = vld [vmem:[#allocation17 + $0x60] ss:$16 sps:$4 sm:$0xff]  }
 0xade   : > { %5792 = vpow2.f32 %v2904_v32  ;;  %v5566_v32 = vld [vmem:[#allocation16 + $0xf0] ss:$8 sps:$4 sm:$0xff]  }
 0xae0   : > { %3273 = vmatpush1.bf16.msra.mxu0 %v5560_v23  ;;  %v5617_v23 = vld [vmem:[#allocation17 + $0x68] ss:$16 sps:$4 sm:$0xff]  }
 0xae1   : > { %3274 = vmatprep.subr.bf16.mxu0 %v5565_v26  ;;  %v5622_v26 = vld [vmem:[#allocation17 + $0x44] ss:$16 sps:$4 sm:$0xff]  }
 0xae4   : > { %3275 = vmatpush1.bf16.msra.mxu0 %v5563_v27  ;;  %v5625_v27 = vld [vmem:[#allocation17 + $0x4c] ss:$16 sps:$4 sm:$0xff]  }
 0xae5   : > { %3276 = vmatprep.subr.bf16.mxu0 %v5568_v30  ;;  %v5620_v30 = vld [vmem:[#allocation17 + $0x40] ss:$16 sps:$4 sm:$0xff]  }
 0xae8   : > { %3277 = vmatpush2.bf16.msra.mxu0 %v5566_v32  ;;  %v5623_v32 = vld [vmem:[#allocation17 + $0x48] ss:$16 sps:$4 sm:$0xff]  }
 0xaeb   : > { %v5793_v34 = vpop.eup %5792 }
 0xaec   : > { %v2906_v35 = vsel %vm2899_vm4, %v5793_v34, 0.0 }
 0xaed   : > { %2907 = vadd.xlane.f32.xlu1 %v2906_v35  ;;  %v5569_v35 = vld [vmem:[#allocation16 + $0xe0] ss:$8 sps:$4 sm:$0xff]  }
 0xb76   : > { %v2908_v42 = vpop.xlane.xlu1 %2907 }
 0xb77   : > { %5794 = vrcp.f32 %v2908_v42  ;;  %v5581_v42 = vld [vmem:[#allocation16 + $0xa0] ss:$8 sps:$4 sm:$0xff]  }
 0xb84   : > { %v5795_v44 = vpop.eup %5794 }
 0xb85   : > { %v2910_v47 = vmul.f32 %v5795_v44, %v5793_v34  ;;  %v5571_v34 = vld [vmem:[#allocation16 + $0xe4] ss:$8 sps:$4 sm:$0xff]   ;;  %v5584_v44 = vld [vmem:[#allocation16 + $0x90] ss:$8 sps:$4 sm:$0xff]  }
 0xb86   : > { %3278 = vmatprep.subr.bf16.mxu0 %v5571_v34  ;;  %v5628_v34 = vld [vmem:[#allocation17 + $0x24] ss:$16 sps:$4 sm:$0xff]  }
 0xb87   : > { %v2911_v49 = vpack.c.bf16 %v2910_v47, %v2910_v47  ;;  %3279 = vmatpush2.bf16.msra.mxu0 %v5569_v35  ;;  %v5631_v35 = vld [vmem:[#allocation17 + $0x2c] ss:$16 sps:$4 sm:$0xff]  }
 0xb88   : > { %3280 = vmatprep.subr.bf16.mxu0 %v5574_v36  ;;  %v5626_v36 = vld [vmem:[#allocation17 + $0x20] ss:$16 sps:$4 sm:$0xff]  }
 0xb89   : > { %5040 = vmatmul.mubr.msk.bf16.vlgmr.msra.gmra.mxu1 %vm2899_vm4, %v2911_v49  ;;  %v5589_v49 = vld [vmem:[#allocation16 + $0x84] ss:$8 sps:$4 sm:$0xff]  }
 0xb8a   : > { %5044 = vmatpush3.bf16.xpose.msra.mxu1 %v2956_v50  ;;  %5045 = vmatprep.mubr.msk.bf16.mxu1 %vm6204_vm0, %v6203_v4  ;;  %v5587_v50 = vld [vmem:[#allocation16 + $0x80] ss:$8 sps:$4 sm:$0xff]  }
 0xb8b   : > { %5049 = vmatprep.subr.bf16.mxu1 %v6203_v4  ;;  %3281 = vmatpush2.bf16.msra.mxu0 %v5572_v58  ;;  %v5629_v58 = vld [vmem:[#allocation17 + $0x28] ss:$16 sps:$4 sm:$0xff]  }
 0xb8c   : > { %3282 = vmatprep.subr.bf16.mxu0 %v5577_v37  ;;  %v5634_v37 = vld [vmem:[#allocation17 + $0x4] ss:$16 sps:$4 sm:$0xff]  }
 0xb8f   : > { %3283 = vmatpush2.bf16.msra.mxu0 %v5575_v6  ;;  %v5637_v6 = vld [vmem:[#allocation17 + $0xc] ss:$16 sps:$4 sm:$0xff]  }
 0xb90   : > { %3284 = vmatprep.subr.bf16.mxu0 %v5580_v8  ;;  %v5632_v8 = vld [vmem:[#allocation17] ss:$16 sps:$4 sm:$0xff]  }
 0xb91   : > { %5046 = vmatmul.mubr.bf16.vlgmr.msra.gmra.mxu1 %v2955_v53 }
 0xb92   : > { %5050 = vmatpush3.bf16.msra.mxu1 %v2957_v38  ;;  %5051 = vmatprep.mubr.msk.bf16.mxu1 %vm6204_vm0, %v6203_v4  ;;  %v3088_v38 = vld [vmem:[%s6882_s13] sm:$0x3] }
 0xb93   : > { %3285 = vmatpush2.bf16.msra.mxu0 %v5578_v39  ;;  %v5635_v39 = vld [vmem:[#allocation17 + $0x8] ss:$16 sps:$4 sm:$0xff]  }
 0xb94   : > { %3286 = vmatprep.subr.bf16.mxu0 %v5583_v41  ;;  %v5640_v41 = vld [vmem:[#allocation17 + $0x1e4] ss:$16 sps:$4 sm:$0xff]  }
 0xb97   : > { %3287 = vmatpush2.bf16.msra.mxu0 %v5581_v42  ;;  %v5643_v42 = vld [vmem:[#allocation17 + $0x1ec] ss:$16 sps:$4 sm:$0xff]  }
 0xb98   : > { %3288 = vmatprep.subr.bf16.mxu0 %v5586_v43  ;;  %v5638_v43 = vld [vmem:[#allocation17 + $0x1e0] ss:$16 sps:$4 sm:$0xff]  }
 0xb9b   : > { %3289 = vmatpush2.bf16.msra.mxu0 %v5584_v44  ;;  %v5641_v44 = vld [vmem:[#allocation17 + $0x1e8] ss:$16 sps:$4 sm:$0xff]  }
 0xb9c   : > { %3290 = vmatprep.subr.bf16.mxu0 %v5589_v49 }
 0xb9f   : > { %3291 = vmatpush2.bf16.msra.mxu0 %v5587_v50 }
 0xc49   : > { %v6748_v28 = vpop.f32.mrf.mxu1 }
 0xc4a   : > { %v3054_v18 = vpack.c.bf16 %v6748_v28, %v6748_v28 }
 0xc4b   : > { %v5041_v54 = vpop.f32.mrf.mxu1 }
 0xc4c   : > { %v3093_v54 = vrot.slane %v3088_v38, %v6617_v9 }
 0xc4d   : > { %v2952_v55 = vpop.f32.mrf.mxu1 }
 0xc4e   : > { %v3097_v55 = vrot.slane %v3088_v38, %v6648_v31  ;;  %v5655_v38 = vld [vmem:[#allocation17 + $0x1ac] ss:$16 sps:$4 sm:$0xff]  }
 0xc4f   : > { %v5042_v56 = vpop.f32.mrf.mxu1 }
 0xc51   : > { %v2992_v57 = vpop.f32.mrf.mxu1 }
 0xc52   : > { %v2998_v59 = vmul.f32 0.088388346, %v2992_v57 }
 0xc53   : > { %v5047_v60 = vpop.f32.mrf.mxu1 }
 0xc54   : > { %v2999_v40 = vsel %vm2899_vm4, %v2998_v59, -inf }
 0xc55   : > { %3000 = vmax.xlane.f32.xlu0 %v2999_v40  ;;  %v2995_v61 = vpop.f32.mrf.mxu1 }
 0xc57   : > { %v5048_v62 = vpop.f32.mrf.mxu1 }
 0xcde   : > { %v3001_v63 = vpop.xlane.xlu0 %3000 }
 0xcdf   : > { %v3002_v0 = vsub.f32 %v2998_v59, %v3001_v63 }
 0xce1   : > { %v3003_v1 = vmul.f32 1.442695, %v3002_v0  ;;  %v5590_v0 = vld [vmem:[#allocation17 + $0xe0] ss:$16 sps:$4 sm:$0xff]  }
 0xce3   : > { %5796 = vpow2.f32 %v3003_v1  ;;  %v5592_v1 = vld [vmem:[#allocation17 + $0xe4] ss:$16 sps:$4 sm:$0xff]  }
 0xce4   : > { %3755 = vmatprep.subr.bf16.mxu1 %v5592_v1  ;;  %v5668_v1 = vld [vmem:[#allocation17 + $0x140] ss:$16 sps:$4 sm:$0xff]  }
 0xcf0   : > { %v6751_v2 = vpop.eup %5796 }
 0xcf1   : > { %v3005_v4 = vsel %vm2899_vm4, %v6751_v2, 0.0 }
 0xcf2   : > { %3006 = vadd.xlane.f32.xlu1 %v3005_v4  ;;  %v5595_v4 = vld [vmem:[#allocation17 + $0xec] ss:$16 sps:$4 sm:$0xff]  }
 0xcf3   : > { %3796 = vmatprep.subr.bf16.mxu0 %v5595_v4  ;;  %v5676_v4 = vld [vmem:[#allocation17 + $0x124] ss:$16 sps:$4 sm:$0xff]  }
 0xd7b   : > { %v3007_v45 = vpop.xlane.xlu1 %3006 }
 0xd7c   : > { %5798 = vrcp.f32 %v3007_v45  ;;  %v5646_v45 = vld [vmem:[#allocation17 + $0x1c4] ss:$16 sps:$4 sm:$0xff]  }
 0xd89   : > { %v5799_v15 = vpop.eup %5798 }
 0xd8a   : > { %v3009_v47 = vmul.f32 %v5799_v15, %v6751_v2  ;;  %v5593_v2 = vld [vmem:[#allocation17 + $0xe8] ss:$16 sps:$4 sm:$0xff]   ;;  %v5649_v15 = vld [vmem:[#allocation17 + $0x1cc] ss:$16 sps:$4 sm:$0xff]  }
 0xd8c   : > { %v3010_v48 = vpack.c.bf16 %v3009_v47, %v3009_v47  ;;  %v5644_v47 = vld [vmem:[#allocation17 + $0x1c0] ss:$16 sps:$4 sm:$0xff]  }
 0xd8e   : > { %5052 = vmatmul.mubr.msk.bf16.vlgmr.msra.gmra.mxu1 %vm2899_vm4, %v3010_v48  ;;  %v5647_v48 = vld [vmem:[#allocation17 + $0x1c8] ss:$16 sps:$4 sm:$0xff]  }
 0xd8f   : > { %3756 = vmatpush1.bf16.msra.mxu1 %v5590_v0  ;;  %v5673_v0 = vld [vmem:[#allocation17 + $0x14c] ss:$16 sps:$4 sm:$0xff]  }
 0xd90   : > { %3757 = vmatprep.subr.bf16.mxu1 %v5598_v3  ;;  %v5679_v3 = vld [vmem:[#allocation17 + $0x12c] ss:$16 sps:$4 sm:$0xff]  }
 0xd93   : > { %3758 = vmatpush1.bf16.msra.mxu1 %v5596_v5  ;;  %v5677_v5 = vld [vmem:[#allocation17 + $0x128] ss:$16 sps:$4 sm:$0xff]  }
 0xe4e   : > { %v3048_v51 = vpop.f32.mrf.mxu1 }
 0xe4f   : > { %v3055_v52 = vpack.c.bf16 %v3048_v51, %v3048_v51 }
 0xe50   : > { %v5053_v33 = vpop.f32.mrf.mxu1 }
 0xe51   : > { %3292 = vmatprep.mubr.bf16.mxu0 %v3055_v52 }
 0xe52   : > { %v3051_v46 = vpop.f32.mrf.mxu1  ;;  %3293 = vmatmul.mubr.bf16.vlgmr.msra.gmra.mxu0 %v3054_v18 }
 0xe53   : > { %3797 = vmatpush1.bf16.msra.mxu0 %v5593_v2  ;;  %v5671_v2 = vld [vmem:[#allocation17 + $0x148] ss:$16 sps:$4 sm:$0xff]  }
 0xe54   : > { %v5054_v53 = vpop.f32.mrf.mxu1  ;;  %3798 = vmatprep.subr.bf16.mxu0 %v5601_v10  ;;  %v5674_v10 = vld [vmem:[#allocation17 + $0x120] ss:$16 sps:$4 sm:$0xff]  }
 0xe55   : > { %v5652_v53 = vld [vmem:[#allocation17 + $0x1a4] ss:$16 sps:$4 sm:$0xff]  }
 0xf12   : > { %v3294_v56 = vpop.f32.mrf.mxu0 }
 0xf13   : > { %v3295_v57 = vadd.f32 %v3294_v56, %v3093_v54  ;;  %v5650_v54 = vld [vmem:[#allocation17 + $0x1a0] ss:$16 sps:$4 sm:$0xff]   ;;  %v5658_v56 = vld [vmem:[#allocation17 + $0x184] ss:$16 sps:$4 sm:$0xff]  }
 0xf14   : > { %v3296_v59 = vpop.f32.mrf.mxu0 }
 0xf15   : > { %v3297_v60 = vadd.f32 %v3296_v59, %v3097_v55  ;;  %v6765_v28 = vadd.f32 %v3295_v57, %v6701_v25  ;;  %v5599_v25 = vld [vmem:[#allocation17 + $0xc8] ss:$16 sps:$4 sm:$0xff]   ;;  %v5656_v57 = vld [vmem:[#allocation17 + $0x180] ss:$16 sps:$4 sm:$0xff]  }
 0xf16   : > { %v3298_v40 = vpop.f32.mrf.mxu0  ;;  %3799 = vmatpush1.bf16.msra.mxu0 %v5599_v25  ;;  %v5653_v55 = vld [vmem:[#allocation17 + $0x1a8] ss:$16 sps:$4 sm:$0xff]   ;;  %v5682_v25 = vld [vmem:[#allocation17 + $0x104] ss:$16 sps:$4 sm:$0xff]  }
 0xf17   : > { %v6768_v61 = vadd.f32 %v3297_v60, %v6699_v24  ;;  %v5604_v24 = vld [vmem:[#allocation17 + $0xa4] ss:$16 sps:$4 sm:$0xff]   ;;  %3800 = vmatprep.subr.bf16.mxu0 %v5607_v11  ;;  %v5659_v59 = vld [vmem:[#allocation17 + $0x188] ss:$16 sps:$4 sm:$0xff]   ;;  %v5661_v60 = vld [vmem:[#allocation17 + $0x18c] ss:$16 sps:$4 sm:$0xff]  }
 0xf18   : > { %v3299_v62 = vpop.f32.mrf.mxu0  ;;  %3759 = vmatprep.subr.bf16.mxu1 %v5604_v24  ;;  %v5664_v40 = vld [vmem:[#allocation17 + $0x164] ss:$16 sps:$4 sm:$0xff]   ;;  %v5685_v24 = vld [vmem:[#allocation17 + $0x10c] ss:$16 sps:$4 sm:$0xff]   ;;  %v5680_v11 = vld [vmem:[#allocation17 + $0x100] ss:$16 sps:$4 sm:$0xff]  }
 0xf19   : > { %v3305_v63 = vadd.f32 %v6768_v61, %v6765_v28  ;;  %3760 = vmatpush1.bf16.msra.mxu1 %v5602_v12  ;;  %v5665_v62 = vld [vmem:[#allocation17 + $0x168] ss:$16 sps:$4 sm:$0xff]  }
 0xf1a   : > { %3801 = vmatpush1.bf16.msra.mxu0 %v5605_v13  ;;  %3761 = vmatprep.subr.bf16.mxu1 %v5610_v14  ;;  %v5683_v12 = vld [vmem:[#allocation17 + $0x108] ss:$16 sps:$4 sm:$0xff]   ;;  %v5688_v13 = vld [vmem:[#allocation19 + $0x74] ss:$8 sps:$4 sm:$0xff]  }
 0xf1b   : > { %3306 = vadd.xlane.f32.xlu0 %v3305_v63  ;;  %3802 = vmatprep.subr.bf16.mxu0 %v5613_v16  ;;  %v5670_v63 = vld [vmem:[#allocation17 + $0x144] ss:$16 sps:$4 sm:$0xff]  }
 0xf1c   : > { %v5691_v14 = vld [vmem:[#allocation19 + $0x174] ss:$8 sps:$4 sm:$0xff]  }
 0xf1d   : > { %3762 = vmatpush1.bf16.msra.mxu1 %v5608_v17 }
 0xf1e   : > { %3803 = vmatpush1.bf16.msra.mxu0 %v5611_v19  ;;  %3763 = vmatprep.subr.bf16.mxu1 %v5616_v20  ;;  %v3303_v20 = vld [vmem:[%s6883_s14] sm:$0x3] }
 0xf1f   : > { %3804 = vmatprep.subr.bf16.mxu0 %v5619_v21  ;;  %v3304_v21 = vld [vmem:[%s6884_s15] sm:$0x3] }
 0xf21   : > { %3764 = vmatpush1.bf16.msra.mxu1 %v5614_v22  ;;  %v3325_v22 = vrot.slane %v3303_v20, %v6617_v9 }
 0xf22   : > { %3805 = vmatpush1.bf16.msra.mxu0 %v5617_v23  ;;  %3765 = vmatprep.subr.bf16.mxu1 %v5622_v26  ;;  %v3329_v23 = vrot.slane %v3303_v20, %v6648_v31  ;;  %v5755_v20 = vld [vmem:[#allocation19 + $0x1c0] ss:$8 sps:$4 sm:$0xff]  }
 0xf23   : > { %3806 = vmatprep.subr.bf16.mxu0 %v5625_v27 }
 0xf25   : > { %3766 = vmatpush1.bf16.msra.mxu1 %v5620_v30  ;;  %v3338_v30 = vrot.slane %v3304_v21, %v6617_v9 }
 0xf26   : > { %3807 = vmatpush1.bf16.msra.mxu0 %v5623_v32  ;;  %3767 = vmatprep.subr.bf16.mxu1 %v5628_v34  ;;  %v3342_v32 = vrot.slane %v3304_v21, %v6648_v31  ;;  %v5760_v21 = vld [vmem:[#allocation19 + $0xb4] ss:$8 sps:$4 sm:$0xff]  }
 0xf27   : > { %3808 = vmatprep.subr.bf16.mxu0 %v5631_v35 }
 0xf29   : > { %3768 = vmatpush1.bf16.msra.mxu1 %v5626_v36 }
 0xf2a   : > { %3809 = vmatpush1.bf16.msra.mxu0 %v5629_v58  ;;  %3769 = vmatprep.subr.bf16.mxu1 %v5634_v37 }
 0xf2b   : > { %3810 = vmatprep.subr.bf16.mxu0 %v5637_v6 }
 0xf2d   : > { %3770 = vmatpush1.bf16.msra.mxu1 %v5632_v8 }
 0xf2e   : > { %3811 = vmatpush1.bf16.msra.mxu0 %v5635_v39  ;;  %3771 = vmatprep.subr.bf16.mxu1 %v5640_v41  ;;  %v5686_v39 = vld [vmem:[#allocation19 + $0x70] ss:$8 sps:$4 sm:$0xff]  }
 0xf2f   : > { %3812 = vmatprep.subr.bf16.mxu0 %v5643_v42  ;;  %v5689_v41 = vld [vmem:[#allocation19 + $0x170] ss:$8 sps:$4 sm:$0xff]   ;;  %v5694_v42 = vld [vmem:[#allocation19 + $0x64] ss:$8 sps:$4 sm:$0xff]  }
 0xf31   : > { %3772 = vmatpush2.bf16.msra.mxu1 %v5638_v43  ;;  %v5697_v43 = vld [vmem:[#allocation19 + $0x164] ss:$8 sps:$4 sm:$0xff]  }
 0xf32   : > { %3813 = vmatpush2.bf16.msra.mxu0 %v5641_v44  ;;  %3773 = vmatprep.subr.bf16.mxu1 %v5646_v45  ;;  %v5692_v44 = vld [vmem:[#allocation19 + $0x60] ss:$8 sps:$4 sm:$0xff]  }
 0xf33   : > { %3814 = vmatprep.subr.bf16.mxu0 %v5649_v15  ;;  %v5695_v45 = vld [vmem:[#allocation19 + $0x160] ss:$8 sps:$4 sm:$0xff]   ;;  %v5700_v15 = vld [vmem:[#allocation19 + $0x54] ss:$8 sps:$4 sm:$0xff]  }
 0xf35   : > { %3774 = vmatpush2.bf16.msra.mxu1 %v5644_v47  ;;  %v5703_v47 = vld [vmem:[#allocation19 + $0x154] ss:$8 sps:$4 sm:$0xff]  }
 0xf36   : > { %3815 = vmatpush2.bf16.msra.mxu0 %v5647_v48  ;;  %3775 = vmatprep.subr.bf16.mxu1 %v5652_v53  ;;  %v5698_v48 = vld [vmem:[#allocation19 + $0x50] ss:$8 sps:$4 sm:$0xff]  }
 0xf37   : > { %3816 = vmatprep.subr.bf16.mxu0 %v5655_v38  ;;  %v5710_v53 = vld [vmem:[#allocation19 + $0x30] ss:$8 sps:$4 sm:$0xff]  }
 0xf38   : > { %v5713_v38 = vld [vmem:[#allocation19 + $0x130] ss:$8 sps:$4 sm:$0xff]  }
 0xf39   : > { %3776 = vmatpush2.bf16.msra.mxu1 %v5650_v54  ;;  %v5718_v54 = vld [vmem:[#allocation19 + $0x24] ss:$8 sps:$4 sm:$0xff]  }
 0xf3a   : > { %3817 = vmatpush2.bf16.msra.mxu0 %v5653_v55  ;;  %3777 = vmatprep.subr.bf16.mxu1 %v5658_v56  ;;  %v5721_v55 = vld [vmem:[#allocation19 + $0x124] ss:$8 sps:$4 sm:$0xff]   ;;  %v5716_v56 = vld [vmem:[#allocation19 + $0x20] ss:$8 sps:$4 sm:$0xff]  }
 0xf3b   : > { %3818 = vmatprep.subr.bf16.mxu0 %v5661_v60  ;;  %v5727_v60 = vld [vmem:[#allocation19 + $0x114] ss:$8 sps:$4 sm:$0xff]  }
 0xf3d   : > { %3778 = vmatpush2.bf16.msra.mxu1 %v5656_v57  ;;  %v5719_v57 = vld [vmem:[#allocation19 + $0x120] ss:$8 sps:$4 sm:$0xff]  }
 0xf3e   : > { %3819 = vmatpush2.bf16.msra.mxu0 %v5659_v59  ;;  %3779 = vmatprep.subr.bf16.mxu1 %v5664_v40  ;;  %v5724_v59 = vld [vmem:[#allocation19 + $0x14] ss:$8 sps:$4 sm:$0xff]   ;;  %v5722_v40 = vld [vmem:[#allocation19 + $0x10] ss:$8 sps:$4 sm:$0xff]  }
 0xfa4   : > { %v3307_v49 = vpop.xlane.xlu0 %3306 }
 0xfa5   : > { %v3308_v50 = vmul.f32 0.00390625, %v3307_v49  ;;  %v5701_v49 = vld [vmem:[#allocation19 + $0x150] ss:$8 sps:$4 sm:$0xff]  }
 0xfa7   : > { %v6773_v51 = vsub.f32 %v6765_v28, %v3308_v50  ;;  %v6776_v52 = vsub.f32 %v6768_v61, %v3308_v50  ;;  %v5667_v28 = vld [vmem:[#allocation17 + $0x16c] ss:$16 sps:$4 sm:$0xff]   ;;  %v5662_v61 = vld [vmem:[#allocation17 + $0x160] ss:$16 sps:$4 sm:$0xff]  }
 0xfa8   : > { %3820 = vmatprep.subr.bf16.mxu0 %v5667_v28  ;;  %3780 = vmatpush2.bf16.msra.mxu1 %v5662_v61  ;;  %v5706_v50 = vld [vmem:[#allocation19 + $0x44] ss:$8 sps:$4 sm:$0xff]   ;;  %v5725_v28 = vld [vmem:[#allocation19 + $0x110] ss:$8 sps:$4 sm:$0xff]  }
 0xfa9   : > { %v3311_v18 = vmul.f32 %v6773_v51, %v6773_v51  ;;  %v3312_v33 = vmul.f32 %v6776_v52, %v6776_v52  ;;  %3821 = vmatpush2.bf16.msra.mxu0 %v5665_v62  ;;  %3781 = vmatprep.subr.bf16.mxu1 %v5670_v63  ;;  %v5730_v61 = vld [vmem:[#allocation19 + $0x4] ss:$8 sps:$4 sm:$0xff]   ;;  %v5728_v63 = vld [vmem:[#allocation19] ss:$8 sps:$4 sm:$0xff]  }
 0xfaa   : > { %3822 = vmatprep.subr.bf16.mxu0 %v5673_v0  ;;  %v5733_v62 = vld [vmem:[#allocation19 + $0x104] ss:$8 sps:$4 sm:$0xff]   ;;  %v5731_v0 = vld [vmem:[#allocation19 + $0x100] ss:$8 sps:$4 sm:$0xff]  }
 0xfab   : > { %v3313_v46 = vadd.f32 %v3312_v33, %v3311_v18  ;;  %v5707_v18 = vld [vmem:[#allocation19 + $0x140] ss:$8 sps:$4 sm:$0xff]   ;;  %v5712_v33 = vld [vmem:[#allocation19 + $0x34] ss:$8 sps:$4 sm:$0xff]  }
 0xfac   : > { %3782 = vmatpush2.bf16.msra.mxu1 %v5668_v1  ;;  %v5736_v1 = vld [vmem:[#allocation19 + $0xf4] ss:$8 sps:$4 sm:$0xff]  }
 0xfad   : > { %3314 = vadd.xlane.f32.xlu1 %v3313_v46  ;;  %3823 = vmatpush2.bf16.msra.mxu0 %v5671_v2  ;;  %v5715_v46 = vld [vmem:[#allocation19 + $0x134] ss:$8 sps:$4 sm:$0xff]  }
 0xfae   : > { %3783 = vmatprep.subr.bf16.mxu1 %v5676_v4  ;;  %3824 = vmatprep.subr.bf16.mxu0 %v5679_v3  ;;  %v5739_v2 = vld [vmem:[#allocation19 + $0x1f4] ss:$8 sps:$4 sm:$0xff]   ;;  %v5734_v4 = vld [vmem:[#allocation19 + $0xf0] ss:$8 sps:$4 sm:$0xff]  }
 0xfaf   : > { %v5737_v3 = vld [vmem:[#allocation19 + $0x1f0] ss:$8 sps:$4 sm:$0xff]  }
 0xfb0   : > { %3784 = vmatpush2.bf16.msra.mxu1 %v5674_v10  ;;  %v5742_v10 = vld [vmem:[#allocation19 + $0xe4] ss:$8 sps:$4 sm:$0xff]  }
 0xfb1   : > { %3825 = vmatpush2.bf16.msra.mxu0 %v5677_v5  ;;  %3785 = vmatprep.subr.bf16.mxu1 %v5682_v25  ;;  %v5745_v5 = vld [vmem:[#allocation19 + $0x1e4] ss:$8 sps:$4 sm:$0xff]   ;;  %v5740_v25 = vld [vmem:[#allocation19 + $0xe0] ss:$8 sps:$4 sm:$0xff]  }
 0xfb2   : > { %3826 = vmatprep.subr.bf16.mxu0 %v5685_v24  ;;  %v5743_v24 = vld [vmem:[#allocation19 + $0x1e0] ss:$8 sps:$4 sm:$0xff]  }
 0xfb4   : > { %3786 = vmatpush2.bf16.msra.mxu1 %v5680_v11  ;;  %v5748_v11 = vld [vmem:[#allocation19 + $0xd4] ss:$8 sps:$4 sm:$0xff]  }
 0xfb5   : > { %3827 = vmatpush2.bf16.msra.mxu0 %v5683_v12  ;;  %4241 = vmatprep.subr.bf16.mxu1 %v5688_v13  ;;  %v5751_v12 = vld [vmem:[#allocation19 + $0x1d4] ss:$8 sps:$4 sm:$0xff]   ;;  %v5746_v13 = vld [vmem:[#allocation19 + $0xd0] ss:$8 sps:$4 sm:$0xff]  }
 0xfb6   : > { %4282 = vmatprep.subr.bf16.mxu0 %v5691_v14  ;;  %v5749_v14 = vld [vmem:[#allocation19 + $0x1d0] ss:$8 sps:$4 sm:$0xff]  }
0x1036   : > { %v3315_v16 = vpop.xlane.xlu1 %3314 }
0x1037   : > { %v3316_v17 = vmul.f32 0.00390625, %v3315_v16  ;;  %v5754_v16 = vld [vmem:[#allocation19 + $0xc4] ss:$8 sps:$4 sm:$0xff]  }
0x1039   : > { %v3317_v19 = vadd.f32 1e-05, %v3316_v17  ;;  %v5757_v17 = vld [vmem:[#allocation19 + $0x1c4] ss:$8 sps:$4 sm:$0xff]  }
0x103b   : > { %5800 = vrsqrt.f32 %v3317_v19  ;;  %v5752_v19 = vld [vmem:[#allocation19 + $0xc0] ss:$8 sps:$4 sm:$0xff]  }
0x1048   : > { %v5801_v26 = vpop.eup %5800 }
0x1049   : > { %v3320_v27 = vmul.f32 %v5801_v26, %v6776_v52  ;;  %v3319_v34 = vmul.f32 %v5801_v26, %v6773_v51  ;;  %v5709_v51 = vld [vmem:[#allocation19 + $0x144] ss:$8 sps:$4 sm:$0xff]   ;;  %v5704_v52 = vld [vmem:[#allocation19 + $0x40] ss:$8 sps:$4 sm:$0xff]   ;;  %v5761_v26 = vld [vmem:[#allocation19 + $0x1b0] ss:$8 sps:$4 sm:$0xff]  }
0x104b   : > { %v3333_v35 = vmul.f32 %v3329_v23, %v3320_v27  ;;  %v3332_v36 = vmul.f32 %v3325_v22, %v3319_v34  ;;  %v5763_v22 = vld [vmem:[#allocation19 + $0x1b4] ss:$8 sps:$4 sm:$0xff]   ;;  %v5758_v23 = vld [vmem:[#allocation19 + $0xb0] ss:$8 sps:$4 sm:$0xff]   ;;  %v5766_v27 = vld [vmem:[#allocation19 + $0xa4] ss:$8 sps:$4 sm:$0xff]  }
0x104c   : > { %v5767_v34 = vld [vmem:[#allocation19 + $0x1a0] ss:$8 sps:$4 sm:$0xff]  }
0x104d   : > { %v6794_v58 = vadd.f32 %v3342_v32, %v3333_v35  ;;  %v6796_v37 = vadd.f32 %v3338_v30, %v3332_v36  ;;  %v5769_v30 = vld [vmem:[#allocation19 + $0x1a4] ss:$8 sps:$4 sm:$0xff]   ;;  %v5764_v32 = vld [vmem:[#allocation19 + $0xa0] ss:$8 sps:$4 sm:$0xff]   ;;  %v5772_v35 = vld [vmem:[#allocation19 + $0x94] ss:$8 sps:$4 sm:$0xff]  }
0x104e   : > { %v5775_v36 = vld [vmem:[#allocation19 + $0x194] ss:$8 sps:$4 sm:$0xff]  }
0x104f   : > { %v3348_v6 = vpack.c.bf16 %v6794_v58, %v6794_v58  ;;  %v3347_v8 = vpack.c.bf16 %v6796_v37, %v6796_v37 }
0x1051   : > { %3787 = vmatprep.mubr.bf16.mxu1 %v3348_v6  ;;  %3828 = vmatprep.mubr.bf16.mxu0 %v3348_v6  ;;  %v5770_v6 = vld [vmem:[#allocation19 + $0x90] ss:$8 sps:$4 sm:$0xff]  }
0x1052   : > { %3788 = vmatmul.mubr.bf16.vlgmr.msra.gmra.mxu1 %v3347_v8  ;;  %3829 = vmatmul.mubr.bf16.vlgmr.msra.gmra.mxu0 %v3347_v8  ;;  %v5773_v8 = vld [vmem:[#allocation19 + $0x190] ss:$8 sps:$4 sm:$0xff]  }
0x1053   : > { %4242 = vmatpush1.bf16.msra.mxu1 %v5686_v39  ;;  %4283 = vmatpush1.bf16.msra.mxu0 %v5689_v41  ;;  %v5778_v39 = vld [vmem:[#allocation19 + $0x84] ss:$8 sps:$4 sm:$0xff]  }
0x1054   : > { %4243 = vmatprep.subr.bf16.mxu1 %v5694_v42  ;;  %4284 = vmatprep.subr.bf16.mxu0 %v5697_v43  ;;  %v5781_v41 = vld [vmem:[#allocation19 + $0x184] ss:$8 sps:$4 sm:$0xff]   ;;  %v5776_v42 = vld [vmem:[#allocation19 + $0x80] ss:$8 sps:$4 sm:$0xff]  }
0x1055   : > { %v5779_v43 = vld [vmem:[#allocation19 + $0x180] ss:$8 sps:$4 sm:$0xff]  }
0x1057   : > { %4244 = vmatpush1.bf16.msra.mxu1 %v5692_v44  ;;  %4285 = vmatpush1.bf16.msra.mxu0 %v5695_v45  ;;  %v3413_v44 = vld [vmem:[%s6954_s18] sm:$0xf] }
0x1058   : > { %4245 = vmatprep.subr.bf16.mxu1 %v5700_v15  ;;  %4286 = vmatprep.subr.bf16.mxu0 %v5703_v47  ;;  %v3418_v45 = vrot.slane %v3413_v44, %v6617_v9  ;;  %v3426_v15 = vrot.slane %v3413_v44, %v6612_v7  ;;  %v3422_v47 = vrot.slane %v3413_v44, %v6648_v31 }
0x105b   : > { %4246 = vmatpush1.bf16.msra.mxu1 %v5698_v48  ;;  %4287 = vmatpush1.bf16.msra.mxu0 %v5701_v49  ;;  %v3430_v48 = vrot.slane %v3413_v44, %v6643_v29 }
0x105c   : > { %4247 = vmatprep.subr.bf16.mxu1 %v5706_v50  ;;  %4288 = vmatprep.subr.bf16.mxu0 %v5709_v51 }
0x105f   : > { %4248 = vmatpush1.bf16.msra.mxu1 %v5704_v52  ;;  %4289 = vmatpush1.bf16.msra.mxu0 %v5707_v18 }
0x1060   : > { %4249 = vmatprep.subr.bf16.mxu1 %v5712_v33  ;;  %4290 = vmatprep.subr.bf16.mxu0 %v5715_v46 }
0x1063   : > { %4250 = vmatpush1.bf16.msra.mxu1 %v5710_v53  ;;  %4291 = vmatpush1.bf16.msra.mxu0 %v5713_v38 }
0x1064   : > { %4251 = vmatprep.subr.bf16.mxu1 %v5718_v54  ;;  %4292 = vmatprep.subr.bf16.mxu0 %v5721_v55 }
0x1067   : > { %4252 = vmatpush1.bf16.msra.mxu1 %v5716_v56  ;;  %4293 = vmatpush1.bf16.msra.mxu0 %v5719_v57 }
0x1068   : > { %4253 = vmatprep.subr.bf16.mxu1 %v5724_v59  ;;  %4294 = vmatprep.subr.bf16.mxu0 %v5727_v60 }
0x106b   : > { %4254 = vmatpush1.bf16.msra.mxu1 %v5722_v40  ;;  %4295 = vmatpush1.bf16.msra.mxu0 %v5725_v28 }
0x106c   : > { %4255 = vmatprep.subr.bf16.mxu1 %v5730_v61  ;;  %4296 = vmatprep.subr.bf16.mxu0 %v5733_v62  ;;  %v3909_v62 = vld [vmem:[%s6955_s27] sm:$0x3]  ;;  %s4372_s27 = scalar_lea.sflag [#allocation4], %s6559_s12 }
0x106f   : > { %4256 = vmatpush1.bf16.msra.mxu1 %v5728_v63  ;;  %4297 = vmatpush1.bf16.msra.mxu0 %v5731_v0  ;;  %v3914_v63 = vrot.slane %v3909_v62, %v6617_v9  ;;  %v3918_v0 = vrot.slane %v3909_v62, %v6648_v31 }
0x1070   : > { %4257 = vmatprep.subr.bf16.mxu1 %v5736_v1  ;;  %4298 = vmatprep.subr.bf16.mxu0 %v5739_v2 }
0x1073   : > { %4258 = vmatpush2.bf16.msra.mxu1 %v5734_v4  ;;  %4299 = vmatpush2.bf16.msra.mxu0 %v5737_v3 }
0x1074   : > { %4259 = vmatprep.subr.bf16.mxu1 %v5742_v10  ;;  %4300 = vmatprep.subr.bf16.mxu0 %v5745_v5 }
0x1077   : > { %4260 = vmatpush2.bf16.msra.mxu1 %v5740_v25  ;;  %4301 = vmatpush2.bf16.msra.mxu0 %v5743_v24 }
0x1078   : > { %4261 = vmatprep.subr.bf16.mxu1 %v5748_v11  ;;  %4302 = vmatprep.subr.bf16.mxu0 %v5751_v12 }
0x107b   : > { %4262 = vmatpush2.bf16.msra.mxu1 %v5746_v13  ;;  %4303 = vmatpush2.bf16.msra.mxu0 %v5749_v14 }
0x107c   : > { %4263 = vmatprep.subr.bf16.mxu1 %v5754_v16  ;;  %4304 = vmatprep.subr.bf16.mxu0 %v5757_v17 }
0x107f   : > { %4264 = vmatpush2.bf16.msra.mxu1 %v5752_v19  ;;  %4305 = vmatpush2.bf16.msra.mxu0 %v5755_v20 }
0x1080   : > { %4265 = vmatprep.subr.bf16.mxu1 %v5760_v21  ;;  %4306 = vmatprep.subr.bf16.mxu0 %v5763_v22 }
0x1083   : > { %4266 = vmatpush2.bf16.msra.mxu1 %v5758_v23  ;;  %4307 = vmatpush2.bf16.msra.mxu0 %v5761_v26 }
0x1084   : > { %4267 = vmatprep.subr.bf16.mxu1 %v5766_v27  ;;  %4308 = vmatprep.subr.bf16.mxu0 %v5769_v30 }
0x1087   : > { %4268 = vmatpush2.bf16.msra.mxu1 %v5764_v32  ;;  %4309 = vmatpush2.bf16.msra.mxu0 %v5767_v34 }
0x1088   : > { %4269 = vmatprep.subr.bf16.mxu1 %v5772_v35  ;;  %4310 = vmatprep.subr.bf16.mxu0 %v5775_v36 }
0x108b   : > { %4270 = vmatpush2.bf16.msra.mxu1 %v5770_v6  ;;  %4311 = vmatpush2.bf16.msra.mxu0 %v5773_v8 }
0x108c   : > { %4271 = vmatprep.subr.bf16.mxu1 %v5778_v39  ;;  %4312 = vmatprep.subr.bf16.mxu0 %v5781_v41 }
0x108f   : > { %4272 = vmatpush2.bf16.msra.mxu1 %v5776_v42  ;;  %4313 = vmatpush2.bf16.msra.mxu0 %v5779_v43 }
0x1112   : > { %v3789_v49 = vpop.f32.mrf.mxu1  ;;  %v3830_v50 = vpop.f32.mrf.mxu0 }
0x1113   : > { %v3790_v51 = vadd.f32 %v3789_v49, %v3418_v45  ;;  %v3831_v52 = vadd.f32 %v3830_v50, %v3426_v15 }
0x1114   : > { %v3791_v18 = vpop.f32.mrf.mxu1  ;;  %v3832_v33 = vpop.f32.mrf.mxu0 }
0x1115   : > { %v3792_v46 = vadd.f32 %v3791_v18, %v3422_v47  ;;  %v3833_v53 = vadd.f32 %v3832_v33, %v3430_v48  ;;  %v3837_v38 = vmax.f32 %v3790_v51, 0.0  ;;  %v3839_v54 = vmax.f32 %v3831_v52, 0.0 }
0x1116   : > { %v3793_v55 = vpop.f32.mrf.mxu1  ;;  %v3834_v56 = vpop.f32.mrf.mxu0 }
0x1117   : > { %v3838_v57 = vmax.f32 %v3792_v46, 0.0  ;;  %v3840_v59 = vmax.f32 %v3833_v53, 0.0  ;;  %v3841_v61 = vpack.c.bf16 %v3837_v38, %v3837_v38  ;;  %v3843_v29 = vpack.c.bf16 %v3839_v54, %v3839_v54 }
0x1118   : > { %v3794_v60 = vpop.f32.mrf.mxu1  ;;  %v3835_v7 = vpop.f32.mrf.mxu0 }
0x1119   : > { %v3842_v40 = vpack.c.bf16 %v3838_v57, %v3838_v57  ;;  %v3844_v28 = vpack.c.bf16 %v3840_v59, %v3840_v59 }
0x111b   : > { %4273 = vmatprep.mubr.bf16.mxu1 %v3842_v40  ;;  %4314 = vmatprep.mubr.bf16.mxu0 %v3844_v28 }
0x111c   : > { %4274 = vmatmul.mubr.bf16.vlgmr.msra.gmra.mxu1 %v3841_v61  ;;  %4315 = vmatmul.mubr.bf16.vlgmr.msra.gmra.mxu0 %v3843_v29 }
0x11dc   : > { %v4275_v1 = vpop.f32.mrf.mxu1  ;;  %v4316_v2 = vpop.f32.mrf.mxu0 }
0x11dd   : > { %v4276_v4 = vadd.f32 %v4275_v1, %v3914_v63 }
0x11de   : > { %v4277_v3 = vpop.f32.mrf.mxu1  ;;  %v4318_v10 = vpop.f32.mrf.mxu0 }
0x11df   : > { %v4317_v5 = vadd.f32 %v4316_v2, %v4276_v4  ;;  %v4278_v25 = vadd.f32 %v4277_v3, %v3918_v0 }
0x11e0   : > { %v4279_v24 = vpop.f32.mrf.mxu1  ;;  %v4320_v11 = vpop.f32.mrf.mxu0 }
0x11e1   : > { %v4319_v12 = vadd.f32 %v4318_v10, %v4278_v25  ;;  %v4323_v16 = vadd.f32 %v4317_v5, %v6796_v37  ;;  %v4326_v37 = vld [vmem:[%s6957_s25] sm:$0x3] }
0x11e2   : > { %v4280_v13 = vpop.f32.mrf.mxu1  ;;  %v4321_v14 = vpop.f32.mrf.mxu0  ;;  %v4360_v42 = vrot.slane %v4326_v37, %v6617_v9  ;;  %v4364_v43 = vrot.slane %v4326_v37, %v6648_v31 }
0x11e3   : > { %v4324_v17 = vadd.f32 %v4319_v12, %v6794_v58  ;;  %v4325_v58 = vld [vmem:[%s6956_s8] sm:$0x3] }
0x11e4   : > { %v4347_v36 = vrot.slane %v4325_v58, %v6617_v9  ;;  %v4351_v6 = vrot.slane %v4325_v58, %v6648_v31 }
0x11e5   : > { %v4327_v19 = vadd.f32 %v4324_v17, %v4323_v16 }
0x11e7   : > { %4328 = vadd.xlane.f32.xlu0 %v4327_v19 }
0x1270   : > { %v4329_v20 = vpop.xlane.xlu0 %4328 }
0x1271   : > { %v4330_v21 = vmul.f32 0.00390625, %v4329_v20 }
0x1273   : > { %v4331_v22 = vsub.f32 %v4323_v16, %v4330_v21  ;;  %v4332_v23 = vsub.f32 %v4324_v17, %v4330_v21 }
0x1275   : > { %v4333_v26 = vmul.f32 %v4331_v22, %v4331_v22  ;;  %v4334_v27 = vmul.f32 %v4332_v23, %v4332_v23 }
0x1277   : > { %v4335_v30 = vadd.f32 %v4334_v27, %v4333_v26 }
0x1279   : > { %4336 = vadd.xlane.f32.xlu1 %v4335_v30 }
0x1302   : > { %v4337_v32 = vpop.xlane.xlu1 %4336 }
0x1303   : > { %v4338_v34 = vmul.f32 0.00390625, %v4337_v32 }
0x1305   : > { %v4339_v35 = vadd.f32 1e-05, %v4338_v34 }
0x1307   : > { %5802 = vrsqrt.f32 %v4339_v35 }
0x1314   : > { %v5803_v8 = vpop.eup %5802 }
0x1315   : > { %v4341_v39 = vmul.f32 %v5803_v8, %v4331_v22  ;;  %v4342_v41 = vmul.f32 %v5803_v8, %v4332_v23 }
0x1317   : > { %v4354_v44 = vmul.f32 %v4347_v36, %v4341_v39  ;;  %v4355_v45 = vmul.f32 %v4351_v6, %v4342_v41 }
0x1319   : > { %v4367_v15 = vadd.f32 %v4360_v42, %v4354_v44  ;;  %v4368_v47 = vadd.f32 %v4364_v43, %v4355_v45 }
0x131b   : > { %4369 = vst [vmem:[%s865_s22] sm:$0xff] %v4367_v15  ;;  %4370 = vst [vmem:[%s865_s22 + $0x8] sm:$0xff] %v4368_v47 }
0x131c   : > { %6109 = shalt.err (!%p6106_p8)
}
0x131d   : > { %s6110_s8 = scalar_lea.hbm %s6832_s6, 256  ;;  %s6114_s0 = scalar_lea.hbm %s6958_s4, 512 }
0x131e   : > { %p6111_p9 = scmp.ne.s32.totalorder %s6832_s6, %s6110_s8  ;;  %p6115_p13 = scmp.lt.s32.totalorder %s6832_s6, %s6958_s4 }
0x131f   : > { %p6116_p7 = scmp.lt.s32.totalorder %s6114_s0, %s6110_s8 }
0x1320   : > { %p6112_p11 = pnand %p6111_p9, %p6959_p10 }
0x1321   : > { %p6117_p2 = por %p6116_p7, %p6115_p13 }
0x1322   : > { %p6113_p12 = pneg %p6112_p11 }
0x1324   : > { %p6118_p3 = pnand %p6117_p2, %p6113_p12 }
0x1326   : > { %6121 = shalt.err (!%p6118_p3)
}
0x1327   : > { %5095 = dma.vmem_to_hbm [thread:$0]  (%p6959_p10), %s4387_s16, 256, %s6832_s6, %s4372_s27  }
0x1328 PF: > { %s4398_s22 = sand.u32 1, %s6172_s3   ;;  %p6960_p1 = scmp.ne.s32.totalorder %s6935_s17, 0 }
0x1329   : > { %p6961_p6 = scmp.ge.s32.totalorder %s6184_s30, 2  ;;  %s4399_s20 = scalar_lea.sflag [#allocation4], %s4398_s22 }
0x132b   : > { %p5133_p4 = pnand %p6961_p6, %p6960_p1 }
0x132d   : > { %p5134_p0 = pneg %p5133_p4 }
0x132f   : > { %6167 = dma.done.wait (%p5134_p0), %s4399_s20, 256  }
0x1330   : > { %6169 = vsyncadd (%p5134_p0), %s4399_s20, 4294967040  ;;  %s6962_s18 = sld [smem:[#allocation29_spill]]  ;;  %p42_p5 = scmp.ge.s32.totalorder %s6457_s2, 4  }
0x1331   : > { %s6963_s3 = smov %s6176_s28  ;;  %s6964_s28 = smov %s6180_s29 }
0x1332   : > { %s6966_s30 = smov %s6457_s2  ;;  %44 = sbr.rel (!%p42_p5) target bundleno = 29 (0x1d), region = 202 }
0x1336   : > { %s6965_s29 = smov %s6962_s18 }
0x1337   :  { %4404 = vsyncpa [#allocation3], 1 }
0x1338   :  { %4406 = vsyncpa [#allocation3 + $0x1], 1 }
0x1339   :  { %4407 = vsyncpa [#allocation6], 1 }
0x133a   :  { %4409 = vsyncpa [#allocation6 + $0x1], 1 }
0x133b   :  { %4410 = vsyncpa [#allocation9], 1 }
0x133c   :  { %4411 = vsyncpa [#allocation12], 1 }
0x133d   :  { %4412 = vsyncpa [#allocation15], 1 }
0x133e   :  { %4413 = vsyncpa [#allocation18], 1 }
0x133f   :  { %4414 = vsyncpa [#allocation4], 1 }
0x1340   :  { %4416 = vsyncpa [#allocation4 + $0x1], 1 }

</bundles_post_ra>
